<compile_context>
chip_gen: v7x
topology: tpu7x:2x2x1
jax: 0.10.0
libtpu: 0.0.40
codegen_flags: <defaults>
</compile_context>

<pallas_src>
import functools

import jax
import jax.numpy as jnp
from jax.experimental import pallas as pl
from jax.experimental.pallas import tpu as pltpu

LAYERS = [4, 80, 80, 80, 80, 80, 80, 1]
DEPTH = len(LAYERS) - 1          # 7 linear layers
N_HIDDEN = DEPTH - 2             # 5 hidden 80x80 layers (layers 1..5)


def _round_up(a, b):
    return ((a + b - 1) // b) * b


def _mlp_kernel(x_ref, w0_ref, wh_ref, wlast_ref, b_ref, blast_ref, o_ref,
                *, use_bf16):
    """Fused MLP forward for one batch tile.

    x_ref     : (TM, 4)        f32
    w0_ref    : (4, 80)        f32   (layer 0 weight, used on the VPU)
    wh_ref    : (5, 80, 80)    bf16 or f32 (pre-cast), hidden layers 1..5
    wlast_ref : (1, 80)        f32   (last layer weight as a row)
    b_ref     : (6, 80)        f32   (biases of layers 0..5)
    blast_ref : (1, 1)         f32   (last layer bias)
    o_ref     : (TM, 1)
    """
    in_dim = x_ref.shape[1]
    n_hidden = wh_ref.shape[0]

    xf = x_ref[...]                      # (TM, 4)  f32
    w0 = w0_ref[...]                     # (4, 80)  f32
    b_all = b_ref[...]                   # (6, 80)  f32

    def act(z):
        if use_bf16:
            # bf16 EUP tanh (v6e/v7x native rate); also feeds the next MXU
            # matmul directly without an f32 round-trip.  On v5e the compiler
            # upconverts, which is no worse than the old f32 path.
            return jnp.tanh(z.astype(jnp.bfloat16))
        return jnp.tanh(z)

    # ---- Layer 0 (K = 4): VPU broadcast-FMAs.  An MXU pass here would cost
    # the same TM/8 pushes as a full 80x80 layer with K padded to 128/256.
    acc = xf[:, 0:1] * w0[0:1, :]
    for k in range(1, in_dim):
        acc = acc + xf[:, k:k + 1] * w0[k:k + 1, :]
    h = act(acc + b_all[0:1, :])                       # (TM, 80)

    # ---- Hidden layers 1..5: MXU matmuls, f32 accumulation.  Weights were
    # pre-cast in the wrapper, so there is no per-step astype of resident
    # blocks.
    for li in range(n_hidden):
        w = wh_ref[li]                                 # (80, 80), mm dtype
        z = jnp.dot(h, w, preferred_element_type=jnp.float32) \
            + b_all[li + 1:li + 2, :]
        h = act(z)

    # ---- Output layer (80 -> 1): OFF the MXU.  VPU multiply + XLU lane
    # reduction; those slots are otherwise idle, so this removes ~1/6 of the
    # MXU pushes for free.
    hf = h.astype(jnp.float32)
    out = jnp.sum(hf * wlast_ref[...], axis=-1, keepdims=True) + blast_ref[...]
    o_ref[...] = out.astype(o_ref.dtype)


def dnn1_forward(x, weights, biases, *, tile_m=512, use_bf16=True):
    """x: (N, 4) f32.  weights[i]: (in_i, out_i).  biases[i]: (1, out_i)."""
    N, in_dim = x.shape
    assert in_dim == LAYERS[0]
    hidden = LAYERS[1]
    out_dim = LAYERS[-1]

    mm_dtype = jnp.bfloat16 if use_bf16 else jnp.float32

    # Pack / pre-cast parameters once in the wrapper (resident in VMEM via
    # constant-index BlockSpecs; casting them in-kernel would repeat every
    # grid step).
    w0 = weights[0].astype(jnp.float32)                                # (4, 80)
    wh = jnp.stack([weights[i].astype(mm_dtype)
                    for i in range(1, DEPTH - 1)])                     # (5, 80, 80)
    wlast = weights[-1].astype(jnp.float32).reshape(1, hidden)         # (1, 80)
    b_stack = jnp.concatenate([biases[i].astype(jnp.float32)
                               for i in range(DEPTH - 1)], axis=0)     # (6, 80)
    blast = biases[-1].astype(jnp.float32).reshape(1, 1)               # (1, 1)

    # Batch tiling: sublane-multiple tile, padded batch, and an even number of
    # grid steps when >1 so v7x's 2 TensorCores split the "parallel" axis
    # evenly (odd counts give one core up to 50% more tiles).
    tm = _round_up(min(tile_m, max(N, 8)), 8)
    n_steps = pl.cdiv(N, tm)
    if n_steps > 1 and n_steps % 2 == 1:
        n_steps += 1
    n_pad = n_steps * tm
    if n_pad != N:
        x = jnp.pad(x, ((0, n_pad - N), (0, 0)))

    grid = (n_steps,)

    x_spec = pl.BlockSpec((tm, in_dim), lambda i: (i, 0))
    w0_spec = pl.BlockSpec(w0.shape, lambda i: (0, 0))
    wh_spec = pl.BlockSpec(wh.shape, lambda i: (0, 0, 0))
    wlast_spec = pl.BlockSpec(wlast.shape, lambda i: (0, 0))
    b_spec = pl.BlockSpec(b_stack.shape, lambda i: (0, 0))
    blast_spec = pl.BlockSpec(blast.shape, lambda i: (0, 0))
    out_spec = pl.BlockSpec((tm, out_dim), lambda i: (i, 0))

    # Advisory cost estimate so XLA can schedule surrounding PINN graph work
    # around the call.
    flops = 0
    param_bytes = 0
    for li in range(DEPTH):
        flops += 2 * n_pad * LAYERS[li] * LAYERS[li + 1] + n_pad * LAYERS[li + 1]
        param_bytes += 4 * (LAYERS[li] * LAYERS[li + 1] + LAYERS[li + 1])
    transcendentals = n_pad * sum(LAYERS[1:-1])
    bytes_accessed = 4 * n_pad * (in_dim + out_dim) + param_bytes
    cost = pl.CostEstimate(flops=int(flops),
                           transcendentals=int(transcendentals),
                           bytes_accessed=int(bytes_accessed))

    fn = pl.pallas_call(
        functools.partial(_mlp_kernel, use_bf16=use_bf16),
        out_shape=jax.ShapeDtypeStruct((n_pad, out_dim), x.dtype),
        grid_spec=pltpu.PrefetchScalarGridSpec(
            num_scalar_prefetch=0,
            grid=grid,
            in_specs=[x_spec, w0_spec, wh_spec, wlast_spec, b_spec, blast_spec],
            out_specs=out_spec,
        ),
        compiler_params=pltpu.CompilerParams(
            dimension_semantics=("parallel",),
            vmem_limit_bytes=32 * 1024 * 1024,
        ),
        cost_estimate=cost,
    )
    out = fn(x, w0, wh, wlast, b_stack, blast)
    return out[:N]


def init_params(key):
    """Deterministic PyTorch-style (uniform +-1/sqrt(fan_in)) init."""
    weights, biases = [], []
    for li in range(DEPTH):
        fan_in, fan_out = LAYERS[li], LAYERS[li + 1]
        key, kw, kb = jax.random.split(key, 3)
        bound = 1.0 / jnp.sqrt(jnp.float32(fan_in))
        w = jax.random.uniform(kw, (fan_in, fan_out), jnp.float32,
                               minval=-bound, maxval=bound)
        b = jax.random.uniform(kb, (1, fan_out), jnp.float32,
                               minval=-bound, maxval=bound)
        weights.append(w)
        biases.append(b)
    return weights, biases


def dnn1_reference(x, weights, biases):
    h = x
    for li in range(DEPTH):
        h = jnp.dot(h, weights[li],
                    precision=jax.lax.Precision.HIGHEST) + biases[li]
        if li < DEPTH - 1:
            h = jnp.tanh(h)
    return h


if __name__ == "__main__":
    key = jax.random.PRNGKey(0)
    key, kx = jax.random.split(key)

    # Small collocation-point style input: N points x 4 features.  N is
    # deliberately not a multiple of any tile size (exercises the padding
    # path).
    N = 300
    x = jax.random.uniform(kx, (N, LAYERS[0]), jnp.float32,
                           minval=-1.0, maxval=1.0)

    weights, biases = init_params(key)
    ref = dnn1_reference(x, weights, biases)

    # Default path: bf16 MXU inputs + f32 accumulation (all generations).
    out_bf16 = jax.block_until_ready(dnn1_forward(x, weights, biases))
    assert out_bf16.shape == (N, LAYERS[-1])
    err_bf16 = float(jnp.max(jnp.abs(out_bf16 - ref)))
    assert err_bf16 < 5e-2, err_bf16

    # Full-f32 MXU path with a small tile (exercises the multi-step grid and
    # the even-step rounding for v7x: cdiv(300, 64)=5 -> 6 steps).
    out_f32 = jax.block_until_ready(
        dnn1_forward(x, weights, biases, tile_m=64, use_bf16=False))
    err_f32 = float(jnp.max(jnp.abs(out_f32 - ref)))
    assert err_f32 < 5e-4, err_f32

    print("KERNEL_OK")
</pallas_src>

<mosaic_0001>
module attributes {stable_mosaic.version = 11 : i64} {
  func.func @_mlp_kernel(%arg0: i32, %arg1: memref<304x4xf32, #tpu.memory_space<vmem>>, %arg2: memref<4x80xf32, #tpu.memory_space<vmem>>, %arg3: memref<5x80x80xbf16, #tpu.memory_space<vmem>>, %arg4: memref<1x80xf32, #tpu.memory_space<vmem>>, %arg5: memref<6x80xf32, #tpu.memory_space<vmem>>, %arg6: memref<1x1xf32, #tpu.memory_space<vmem>>, %arg7: memref<304x1xf32, #tpu.memory_space<vmem>>) attributes {dimension_semantics = [#tpu.dimension_semantics<parallel>], iteration_bounds = array<i64: 1>, scalar_prefetch = 0 : i64, scratch_operands = 0 : i64, tpu.core_type = #tpu.core_type<tc>, window_params = [{transform_indices = @transform_0, window_bounds = array<i64: 304, 4>}, {pipeline_mode = #tpu.pipeline_mode<synchronous>, transform_indices = @transform_1, window_bounds = array<i64: 4, 80>}, {pipeline_mode = #tpu.pipeline_mode<synchronous>, transform_indices = @transform_2, window_bounds = array<i64: 5, 80, 80>}, {pipeline_mode = #tpu.pipeline_mode<synchronous>, transform_indices = @transform_3, window_bounds = array<i64: 1, 80>}, {pipeline_mode = #tpu.pipeline_mode<synchronous>, transform_indices = @transform_4, window_bounds = array<i64: 6, 80>}, {pipeline_mode = #tpu.pipeline_mode<synchronous>, transform_indices = @transform_5, window_bounds = array<i64: 1, 1>}, {transform_indices = @transform_6, window_bounds = array<i64: 304, 1>}]} {
    %c0 = arith.constant 0 : index
    %c0_0 = arith.constant 0 : index
    %0 = vector.load %arg1[%c0, %c0_0] : memref<304x4xf32, #tpu.memory_space<vmem>>, vector<304x4xf32>
    %c0_1 = arith.constant 0 : index
    %c0_2 = arith.constant 0 : index
    %1 = vector.load %arg2[%c0_1, %c0_2] : memref<4x80xf32, #tpu.memory_space<vmem>>, vector<4x80xf32>
    %c0_3 = arith.constant 0 : index
    %c0_4 = arith.constant 0 : index
    %2 = vector.load %arg5[%c0_3, %c0_4] : memref<6x80xf32, #tpu.memory_space<vmem>>, vector<6x80xf32>
    %3 = vector.extract_strided_slice %0 {offsets = [0, 0], sizes = [304, 1], strides = [1, 1]} : vector<304x4xf32> to vector<304x1xf32>
    %4 = vector.extract_strided_slice %1 {offsets = [0, 0], sizes = [1, 80], strides = [1, 1]} : vector<4x80xf32> to vector<1x80xf32>
    %5 = vector.broadcast %3 : vector<304x1xf32> to vector<304x80xf32>
    %6 = vector.broadcast %4 : vector<1x80xf32> to vector<304x80xf32>
    %7 = arith.mulf %5, %6 : vector<304x80xf32>
    %8 = vector.extract_strided_slice %0 {offsets = [0, 1], sizes = [304, 1], strides = [1, 1]} : vector<304x4xf32> to vector<304x1xf32>
    %9 = vector.extract_strided_slice %1 {offsets = [1, 0], sizes = [1, 80], strides = [1, 1]} : vector<4x80xf32> to vector<1x80xf32>
    %10 = vector.broadcast %8 : vector<304x1xf32> to vector<304x80xf32>
    %11 = vector.broadcast %9 : vector<1x80xf32> to vector<304x80xf32>
    %12 = arith.mulf %10, %11 : vector<304x80xf32>
    %13 = arith.addf %7, %12 : vector<304x80xf32>
    %14 = vector.extract_strided_slice %0 {offsets = [0, 2], sizes = [304, 1], strides = [1, 1]} : vector<304x4xf32> to vector<304x1xf32>
    %15 = vector.extract_strided_slice %1 {offsets = [2, 0], sizes = [1, 80], strides = [1, 1]} : vector<4x80xf32> to vector<1x80xf32>
    %16 = vector.broadcast %14 : vector<304x1xf32> to vector<304x80xf32>
    %17 = vector.broadcast %15 : vector<1x80xf32> to vector<304x80xf32>
    %18 = arith.mulf %16, %17 : vector<304x80xf32>
    %19 = arith.addf %13, %18 : vector<304x80xf32>
    %20 = vector.extract_strided_slice %0 {offsets = [0, 3], sizes = [304, 1], strides = [1, 1]} : vector<304x4xf32> to vector<304x1xf32>
    %21 = vector.extract_strided_slice %1 {offsets = [3, 0], sizes = [1, 80], strides = [1, 1]} : vector<4x80xf32> to vector<1x80xf32>
    %22 = vector.broadcast %20 : vector<304x1xf32> to vector<304x80xf32>
    %23 = vector.broadcast %21 : vector<1x80xf32> to vector<304x80xf32>
    %24 = arith.mulf %22, %23 : vector<304x80xf32>
    %25 = arith.addf %19, %24 : vector<304x80xf32>
    %26 = vector.extract_strided_slice %2 {offsets = [0, 0], sizes = [1, 80], strides = [1, 1]} : vector<6x80xf32> to vector<1x80xf32>
    %27 = vector.broadcast %26 : vector<1x80xf32> to vector<304x80xf32>
    %28 = arith.addf %25, %27 : vector<304x80xf32>
    %29 = arith.truncf %28 : vector<304x80xf32> to vector<304x80xbf16>
    %30 = math.tanh %29 : vector<304x80xbf16>
    %c0_5 = arith.constant 0 : index
    %c0_6 = arith.constant 0 : index
    %c0_7 = arith.constant 0 : index
    %31 = vector.load %arg3[%c0_5, %c0_6, %c0_7] : memref<5x80x80xbf16, #tpu.memory_space<vmem>>, vector<1x80x80xbf16>
    %32 = vector.shape_cast %31 : vector<1x80x80xbf16> to vector<80x80xbf16>
    %cst = arith.constant dense<0.000000e+00> : vector<304x80xf32>
    %33 = tpu.matmul %30, %32, %cst {dimension_numbers = #tpu.dot_dimension_numbers<[1], [0], [0], [1], [0, 0, 1, 1], [], []>} : vector<304x80xbf16>, vector<80x80xbf16>, vector<304x80xf32> -> vector<304x80xf32>
    %34 = vector.extract_strided_slice %2 {offsets = [1, 0], sizes = [1, 80], strides = [1, 1]} : vector<6x80xf32> to vector<1x80xf32>
    %35 = vector.broadcast %34 : vector<1x80xf32> to vector<304x80xf32>
    %36 = arith.addf %33, %35 : vector<304x80xf32>
    %37 = arith.truncf %36 : vector<304x80xf32> to vector<304x80xbf16>
    %38 = math.tanh %37 : vector<304x80xbf16>
    %c1 = arith.constant 1 : index
    %c0_8 = arith.constant 0 : index
    %c0_9 = arith.constant 0 : index
    %39 = vector.load %arg3[%c1, %c0_8, %c0_9] : memref<5x80x80xbf16, #tpu.memory_space<vmem>>, vector<1x80x80xbf16>
    %40 = vector.shape_cast %39 : vector<1x80x80xbf16> to vector<80x80xbf16>
    %cst_10 = arith.constant dense<0.000000e+00> : vector<304x80xf32>
    %41 = tpu.matmul %38, %40, %cst_10 {dimension_numbers = #tpu.dot_dimension_numbers<[1], [0], [0], [1], [0, 0, 1, 1], [], []>} : vector<304x80xbf16>, vector<80x80xbf16>, vector<304x80xf32> -> vector<304x80xf32>
    %42 = vector.extract_strided_slice %2 {offsets = [2, 0], sizes = [1, 80], strides = [1, 1]} : vector<6x80xf32> to vector<1x80xf32>
    %43 = vector.broadcast %42 : vector<1x80xf32> to vector<304x80xf32>
    %44 = arith.addf %41, %43 : vector<304x80xf32>
    %45 = arith.truncf %44 : vector<304x80xf32> to vector<304x80xbf16>
    %46 = math.tanh %45 : vector<304x80xbf16>
    %c2 = arith.constant 2 : index
    %c0_11 = arith.constant 0 : index
    %c0_12 = arith.constant 0 : index
    %47 = vector.load %arg3[%c2, %c0_11, %c0_12] : memref<5x80x80xbf16, #tpu.memory_space<vmem>>, vector<1x80x80xbf16>
    %48 = vector.shape_cast %47 : vector<1x80x80xbf16> to vector<80x80xbf16>
    %cst_13 = arith.constant dense<0.000000e+00> : vector<304x80xf32>
    %49 = tpu.matmul %46, %48, %cst_13 {dimension_numbers = #tpu.dot_dimension_numbers<[1], [0], [0], [1], [0, 0, 1, 1], [], []>} : vector<304x80xbf16>, vector<80x80xbf16>, vector<304x80xf32> -> vector<304x80xf32>
    %50 = vector.extract_strided_slice %2 {offsets = [3, 0], sizes = [1, 80], strides = [1, 1]} : vector<6x80xf32> to vector<1x80xf32>
    %51 = vector.broadcast %50 : vector<1x80xf32> to vector<304x80xf32>
    %52 = arith.addf %49, %51 : vector<304x80xf32>
    %53 = arith.truncf %52 : vector<304x80xf32> to vector<304x80xbf16>
    %54 = math.tanh %53 : vector<304x80xbf16>
    %c3 = arith.constant 3 : index
    %c0_14 = arith.constant 0 : index
    %c0_15 = arith.constant 0 : index
    %55 = vector.load %arg3[%c3, %c0_14, %c0_15] : memref<5x80x80xbf16, #tpu.memory_space<vmem>>, vector<1x80x80xbf16>
    %56 = vector.shape_cast %55 : vector<1x80x80xbf16> to vector<80x80xbf16>
    %cst_16 = arith.constant dense<0.000000e+00> : vector<304x80xf32>
    %57 = tpu.matmul %54, %56, %cst_16 {dimension_numbers = #tpu.dot_dimension_numbers<[1], [0], [0], [1], [0, 0, 1, 1], [], []>} : vector<304x80xbf16>, vector<80x80xbf16>, vector<304x80xf32> -> vector<304x80xf32>
    %58 = vector.extract_strided_slice %2 {offsets = [4, 0], sizes = [1, 80], strides = [1, 1]} : vector<6x80xf32> to vector<1x80xf32>
    %59 = vector.broadcast %58 : vector<1x80xf32> to vector<304x80xf32>
    %60 = arith.addf %57, %59 : vector<304x80xf32>
    %61 = arith.truncf %60 : vector<304x80xf32> to vector<304x80xbf16>
    %62 = math.tanh %61 : vector<304x80xbf16>
    %c4 = arith.constant 4 : index
    %c0_17 = arith.constant 0 : index
    %c0_18 = arith.constant 0 : index
    %63 = vector.load %arg3[%c4, %c0_17, %c0_18] : memref<5x80x80xbf16, #tpu.memory_space<vmem>>, vector<1x80x80xbf16>
    %64 = vector.shape_cast %63 : vector<1x80x80xbf16> to vector<80x80xbf16>
    %cst_19 = arith.constant dense<0.000000e+00> : vector<304x80xf32>
    %65 = tpu.matmul %62, %64, %cst_19 {dimension_numbers = #tpu.dot_dimension_numbers<[1], [0], [0], [1], [0, 0, 1, 1], [], []>} : vector<304x80xbf16>, vector<80x80xbf16>, vector<304x80xf32> -> vector<304x80xf32>
    %66 = vector.extract_strided_slice %2 {offsets = [5, 0], sizes = [1, 80], strides = [1, 1]} : vector<6x80xf32> to vector<1x80xf32>
    %67 = vector.broadcast %66 : vector<1x80xf32> to vector<304x80xf32>
    %68 = arith.addf %65, %67 : vector<304x80xf32>
    %69 = arith.truncf %68 : vector<304x80xf32> to vector<304x80xbf16>
    %70 = math.tanh %69 : vector<304x80xbf16>
    %71 = arith.extf %70 : vector<304x80xbf16> to vector<304x80xf32>
    %c0_20 = arith.constant 0 : index
    %c0_21 = arith.constant 0 : index
    %72 = vector.load %arg4[%c0_20, %c0_21] : memref<1x80xf32, #tpu.memory_space<vmem>>, vector<1x80xf32>
    %73 = vector.broadcast %72 : vector<1x80xf32> to vector<304x80xf32>
    %74 = arith.mulf %71, %73 : vector<304x80xf32>
    %cst_22 = arith.constant dense<0.000000e+00> : vector<304xf32>
    %75 = vector.multi_reduction <add>, %74, %cst_22 [1] : vector<304x80xf32> to vector<304xf32>
    %76 = vector.shape_cast %75 : vector<304xf32> to vector<304x1xf32>
    %c0_23 = arith.constant 0 : index
    %c0_24 = arith.constant 0 : index
    %77 = vector.load %arg6[%c0_23, %c0_24] : memref<1x1xf32, #tpu.memory_space<vmem>>, vector<1x1xf32>
    %78 = vector.broadcast %77 : vector<1x1xf32> to vector<304x1xf32>
    %79 = arith.addf %76, %78 : vector<304x1xf32>
    %c0_25 = arith.constant 0 : index
    %c0_26 = arith.constant 0 : index
    %80 = vector.load %arg7[%c0_25, %c0_26] : memref<304x1xf32, #tpu.memory_space<vmem>>, vector<304x1xf32>
    tpu.vector_store %arg7[%c0_25, %c0_26], %79 {strides = array<i32>} : memref<304x1xf32, #tpu.memory_space<vmem>>, vector<304x1xf32>,
    return
  }
  func.func @transform_0(%arg0: i32) -> (i32, i32) {
    %c0_i32 = arith.constant 0 : i32
    %c0_i32_0 = arith.constant 0 : i32
    return %arg0, %c0_i32 : i32, i32
  }
  func.func @transform_1(%arg0: i32) -> (i32, i32) {
    %c0_i32 = arith.constant 0 : i32
    %c0_i32_0 = arith.constant 0 : i32
    %c0_i32_1 = arith.constant 0 : i32
    return %c0_i32, %c0_i32_0 : i32, i32
  }
  func.func @transform_2(%arg0: i32) -> (i32, i32, i32) {
    %c0_i32 = arith.constant 0 : i32
    %c0_i32_0 = arith.constant 0 : i32
    %c0_i32_1 = arith.constant 0 : i32
    %c0_i32_2 = arith.constant 0 : i32
    return %c0_i32, %c0_i32_0, %c0_i32_1 : i32, i32, i32
  }
  func.func @transform_3(%arg0: i32) -> (i32, i32) {
    %c0_i32 = arith.constant 0 : i32
    %c0_i32_0 = arith.constant 0 : i32
    %c0_i32_1 = arith.constant 0 : i32
    return %c0_i32, %c0_i32_0 : i32, i32
  }
  func.func @transform_4(%arg0: i32) -> (i32, i32) {
    %c0_i32 = arith.constant 0 : i32
    %c0_i32_0 = arith.constant 0 : i32
    %c0_i32_1 = arith.constant 0 : i32
    return %c0_i32, %c0_i32_0 : i32, i32
  }
  func.func @transform_5(%arg0: i32) -> (i32, i32) {
    %c0_i32 = arith.constant 0 : i32
    %c0_i32_0 = arith.constant 0 : i32
    %c0_i32_1 = arith.constant 0 : i32
    return %c0_i32, %c0_i32_0 : i32, i32
  }
  func.func @transform_6(%arg0: i32) -> (i32, i32) {
    %c0_i32 = arith.constant 0 : i32
    %c0_i32_0 = arith.constant 0 : i32
    return %arg0, %c0_i32 : i32, i32
  }
}

</mosaic_0001>

<bundles_post_ra>
// kernel: tpu_custom_call.1
= control target key start
LH: loop header
LB: loop body
LE: loop exit
PB: predicated region body
PF: predicated region fallthrough
CT: control target
= control target key end

     0   :  { %v4053_v0 = vmov 1   ;;  %v5806_v1 = vmov 0   ;;  %v5808_v4 = vmov 2   ;;  %v4056_v6 = vmov 3   ;;  %s5794_s0 = inlined_call_operand.vmem [shape: f32[304,4], index: 0, kind: input, shape index: {}]   ;;  %s5795_s2 = inlined_call_operand.vmem [shape: bf16[5,80,80], index: 2, kind: input, shape index: {}]   ;;  %s5796_s1 = inlined_call_operand.vmem [shape: f32[4,80], index: 1, kind: input, shape index: {}]   ;;  %s5797_s4 = inlined_call_operand.vmem [shape: f32[6,80], index: 4, kind: input, shape index: {}]   ;;  %s5798_s3 = inlined_call_operand.vmem [shape: f32[1,80], index: 3, kind: input, shape index: {}]   ;;  %s5799_s5 = inlined_call_operand.<no memory space> [shape: f32[1,1], index: 5, kind: input, shape index: {}]   ;;  %s5800_s6 = inlined_call_operand.vmem [shape: f32[304,1], index: 6, kind: output, shape index: {}]  }
   0x1   :  { %3713 = vset.pattern.permute.xlu1 %v4053_v0  ;;  %3712 = vset.pattern.permute.xlu0 %v5806_v1  ;;  %v26_v2 = vld [vmem:[%s5794_s0] sm:$0xff]  ;;  %v27_v3 = vld [vmem:[%s5794_s0 + $0x8] sm:$0xff]  ;;  %v29_v5 = vld [vmem:[%s5794_s0 + $0x18] sm:$0xff]  ;;  %v5804_v19 = vmov 0.0   ;;  %vm4058_vm0 = vmmov 0   ;;  %v256_v57 = vlaneseq  ;;  %vm1118_vm1 = vcmask 654336  }
   0x2   :  { %299 = vperm.xlu1 %3713, %v26_v2   ;;  %68 = vperm.xlu0 %3712, %v26_v2   ;;  %v4111_v7 = vld [vmem:[%s5794_s0 + $0x30] sm:$0xff]  ;;  %v4121_v9 = vld [vmem:[%s5794_s0 + $0x48] sm:$0xff]  ;;  %v4127_v10 = vld [vmem:[%s5794_s0 + $0x60] sm:$0xff]  ;;  %vm2941_vm2 = vcmask 7168  }
   0x3   :  { %v28_v8 = vld [vmem:[%s5794_s0 + $0x10] sm:$0xff]  ;;  %v31_v11 = vld [vmem:[%s5794_s0 + $0x28] sm:$0xff]  ;;  %v4139_v12 = vld [vmem:[%s5794_s0 + $0x40] sm:$0xff]  ;;  %3266 = vmatprep.subr.bf16.mxu0 %v5804_v19  ;;  %3696 = vmatprep.subr.bf16.mxu1 %v5804_v19  ;;  %v4381_v61 = vshrl.u32 %v256_v57, 7 }
   0x4   :  { %v4146_v13 = vld [vmem:[%s5794_s0 + $0x58] sm:$0xff]  ;;  %v4152_v14 = vld [vmem:[%s5794_s0 + $0x70] sm:$0xff]  ;;  %v4159_v15 = vld [vmem:[%s5794_s0 + $0x88] sm:$0xff]  ;;  %3276 = vmatprep.mubr.msk.bf16.mxu0 %vm4058_vm0, %v5804_v19  ;;  %3316 = vmatprep.mubr.msk.bf16.mxu1 %vm4058_vm0, %v5804_v19 }
   0x5   :  { %v4164_v16 = vld [vmem:[%s5794_s0 + $0x20] sm:$0xff]  ;;  %v33_v20 = vld [vmem:[%s5794_s0 + $0x38] sm:$0xff]  ;;  %v3799_v21 = vld [vmem:[%s5795_s2 + $0x8] sm:$0xff]  }
   0x6   :  { %303 = vperm.xlu1 %3713, %v27_v3   ;;  %73 = vperm.xlu0 %3712, %v27_v3   ;;  %v4171_v17 = vld [vmem:[%s5794_s0 + $0xa0] sm:$0xff]  ;;  %v4197_v22 = vld [vmem:[%s5794_s0 + $0x50] sm:$0xff]  ;;  %v4208_v24 = vld [vmem:[%s5794_s0 + $0x68] sm:$0xff] }
   0x7   :  { %v3798_v18 = vld [vmem:[%s5795_s2] sm:$0xff]   ;;  %v3800_v23 = vld [vmem:[%s5795_s2 + $0x10] sm:$0xff]   ;;  %v3801_v25 = vld [vmem:[%s5795_s2 + $0x18] sm:$0xff]  }
   0x8   :  { %3267 = vmatpush3.bf16.msra.mxu0 %v3798_v18  ;;  %3701 = vmatpush3.bf16.msra.mxu1 %v3798_v18  ;;  %v3802_v26 = vld [vmem:[%s5795_s2 + $0x20] sm:$0xff]   ;;  %v4238_v28 = vld [vmem:[%s5794_s0 + $0x98] sm:$0xff]  ;;  %v4246_v29 = vld [vmem:[%s5794_s0 + $0xb0] sm:$0xff] }
   0x9   :  { %3268 = vmatprep.subr.bf16.mxu0 %v5804_v19  ;;  %3697 = vmatprep.subr.bf16.mxu1 %v5804_v19  ;;  %v4226_v27 = vld [vmem:[%s5794_s0 + $0x80] sm:$0xff]  ;;  %v4252_v30 = vld [vmem:[%s5794_s0 + $0xc8] sm:$0xff]  ;;  %v4292_v34 = vld [vmem:[%s5794_s0 + $0xf8] sm:$0xff] }
   0xa   :  { %3715 = vset.pattern.permute.xlu1 %v5808_v4  ;;  %3714 = vset.pattern.permute.xlu0 %v5808_v4  ;;  %v4280_v31 = vld [vmem:[%s5794_s0 + $0xe0] sm:$0xff]  ;;  %v4308_v39 = vld [vmem:[%s5794_s0 + $0x78] sm:$0xff]  ;;  %v4318_v41 = vld [vmem:[%s5794_s0 + $0x90] sm:$0xff] }
   0xb   :  { %535 = vperm.xlu1 %3715, %v27_v3   ;;  %531 = vperm.xlu0 %3714, %v26_v2   ;;  %v4330_v44 = vld [vmem:[%s5794_s0 + $0xa8] sm:$0xff]  ;;  %v4339_v46 = vld [vmem:[%s5794_s0 + $0xc0] sm:$0xff]  ;;  %v4348_v49 = vld [vmem:[%s5794_s0 + $0xd8] sm:$0xff] }
   0xc   :  { %3269 = vmatpush3.bf16.msra.mxu0 %v3799_v21  ;;  %3702 = vmatpush3.bf16.msra.mxu1 %v3799_v21  ;;  %v4358_v51 = vld [vmem:[%s5794_s0 + $0xf0] sm:$0xff]  ;;  %v4365_v54 = vld [vmem:[%s5794_s0 + $0x108] sm:$0xff]  ;;  %v4375_v58 = vld [vmem:[%s5794_s0 + $0xb8] sm:$0xff] }
   0xd   :  { %3270 = vmatprep.subr.bf16.mxu0 %v5804_v19  ;;  %3698 = vmatprep.subr.bf16.mxu1 %v5804_v19 }
   0xf   :  { %3716 = vset.pattern.permute.xlu1 %v4056_v6  ;;  %543 = vperm.xlu0 %3714, %v29_v5  }
  0x10   :  { %763 = vperm.xlu1 %3716, %v26_v2   ;;  %3271 = vmatpush3.bf16.msra.mxu0 %v3800_v23  ;;  %v5803_v2 = vsub.s32 1, %v4381_v61 }
  0x11   :  { %3272 = vmatprep.subr.bf16.mxu0 %v5804_v19  ;;  %3703 = vmatpush3.bf16.msra.mxu1 %v3800_v23 }
  0x12   :  { %3699 = vmatprep.subr.bf16.mxu1 %v5804_v19 }
  0x13   :  { %555 = vperm.xlu0 %3714, %v4111_v7  }
  0x14   :  { %3717 = vset.pattern.permute.xlu1 %v5806_v1  ;;  %3273 = vmatpush3.bf16.msra.mxu0 %v3801_v25 }
  0x15   :  { %78 = vperm.xlu1 %3717, %v28_v8   ;;  %3274 = vmatprep.subr.bf16.mxu0 %v5804_v19 }
  0x16   :  { %3704 = vmatpush3.bf16.msra.mxu1 %v3801_v25 }
  0x17   :  { %567 = vperm.xlu0 %3714, %v4121_v9   ;;  %3700 = vmatprep.subr.bf16.mxu1 %v5804_v19 }
  0x18   :  { %3275 = vmatpush3.bf16.msra.mxu0 %v3802_v26 }
  0x19   :  { %83 = vperm.xlu1 %3717, %v29_v5   ;;  %3438 = vmatprep.subr.bf16.mxu0 %v5804_v19 }
  0x1a   :  { %3705 = vmatpush3.bf16.msra.mxu1 %v3802_v26 }
  0x1b   :  { %579 = vperm.xlu0 %3714, %v4127_v10   ;;  %3352 = vmatprep.subr.bf16.mxu1 %v5804_v19 }
  0x1d   :  { %3718 = vset.pattern.permute.xlu1 %v4053_v0 }
  0x1e   :  { %311 = vperm.xlu1 %3718, %v29_v5  }
  0x1f   :  { %3739 = vset.pattern.permute.xlu0 %v4053_v0 }
  0x20   :  { %307 = vperm.xlu0 %3739, %v28_v8  }
  0x22   :  { %3719 = vset.pattern.permute.xlu1 %v5808_v4 }
  0x23   :  { %539 = vperm.xlu1 %3719, %v28_v8  }
  0x24   :  { %319 = vperm.xlu0 %3739, %v31_v11  }
  0x27   :  { %3720 = vset.pattern.permute.xlu1 %v4056_v6 }
  0x28   :  { %771 = vperm.xlu1 %3720, %v28_v8   ;;  %331 = vperm.xlu0 %3739, %v4139_v12  }
  0x2c   :  { %775 = vperm.xlu1 %3720, %v29_v5   ;;  %343 = vperm.xlu0 %3739, %v4146_v13   ;;  %v64_v5 = vld [vmem:[%s5796_s1] sm:$0xf] }
  0x30   :  { %3721 = vset.pattern.permute.xlu1 %v5806_v1  ;;  %355 = vperm.xlu0 %3739, %v4152_v14  }
  0x31   :  { %93 = vperm.xlu1 %3721, %v31_v11  }
  0x34   :  { %367 = vperm.xlu0 %3739, %v4159_v15  }
  0x35   :  { %3722 = vset.pattern.permute.xlu1 %v4053_v0 }
  0x36   :  { %315 = vperm.xlu1 %3722, %v4164_v16  }
  0x38   :  { %379 = vperm.xlu0 %3739, %v4171_v17  }
  0x3a   :  { %3723 = vset.pattern.permute.xlu1 %v5808_v4 }
  0x3b   :  { %547 = vperm.xlu1 %3723, %v4164_v16  }
  0x3c   :  { %3755 = vset.pattern.permute.xlu0 %v4056_v6 }
  0x3d   :  { %767 = vperm.xlu0 %3755, %v27_v3   ;;  %v258_v3 = vsub.s32 0, %v4381_v61 }
  0x3f   :  { %551 = vperm.xlu1 %3723, %v31_v11  }
  0x41   :  { %779 = vperm.xlu0 %3755, %v4164_v16  }
  0x43   :  { %3724 = vset.pattern.permute.xlu1 %v4056_v6 }
  0x44   :  { %783 = vperm.xlu1 %3724, %v31_v11   ;;  %v5801_v11 = vsub.s32 3, %v4381_v61 }
  0x45   :  { %791 = vperm.xlu0 %3755, %v33_v20  }
  0x46   :  { %v4419_v21 = vrot.slane %v64_v5, %v5801_v11 }
  0x48   :  { %3725 = vset.pattern.permute.xlu1 %v5806_v1 }
  0x49   :  { %98 = vperm.xlu1 %3725, %v4111_v7   ;;  %803 = vperm.xlu0 %3755, %v4197_v22  }
  0x4d   :  { %3726 = vset.pattern.permute.xlu1 %v4053_v0  ;;  %815 = vperm.xlu0 %3755, %v4208_v24  }
  0x4e   :  { %323 = vperm.xlu1 %3726, %v4111_v7  }
  0x51   :  { %827 = vperm.xlu0 %3755, %v4226_v27  }
  0x52   :  { %327 = vperm.xlu1 %3726, %v33_v20  }
  0x55   :  { %839 = vperm.xlu0 %3755, %v4238_v28  }
  0x56   :  { %3727 = vset.pattern.permute.xlu1 %v5808_v4 }
  0x57   :  { %559 = vperm.xlu1 %3727, %v33_v20  }
  0x59   :  { %851 = vperm.xlu0 %3755, %v4246_v29  }
  0x5b   :  { %3728 = vset.pattern.permute.xlu1 %v4056_v6 }
  0x5c   :  { %787 = vperm.xlu1 %3728, %v4111_v7   ;;  %v5802_v7 = vsub.s32 2, %v4381_v61 }
  0x5d   :  { %863 = vperm.xlu0 %3755, %v4252_v30  }
  0x60   :  { %3729 = vset.pattern.permute.xlu1 %v5806_v1 }
  0x61   :  { %108 = vperm.xlu1 %3729, %v4139_v12   ;;  %3767 = vset.pattern.permute.xlu0 %v5806_v1 }
  0x62   :  { %88 = vperm.xlu0 %3767, %v4164_v16  }
  0x65   :  { %113 = vperm.xlu1 %3729, %v4121_v9  }
  0x66   :  { %103 = vperm.xlu0 %3767, %v33_v20  }
  0x69   :  { %3730 = vset.pattern.permute.xlu1 %v4053_v0 }
  0x6a   :  { %335 = vperm.xlu1 %3730, %v4121_v9   ;;  %118 = vperm.xlu0 %3767, %v4197_v22  }
  0x6e   :  { %3731 = vset.pattern.permute.xlu1 %v5808_v4  ;;  %133 = vperm.xlu0 %3767, %v4208_v24  }
  0x6f   :  { %563 = vperm.xlu1 %3731, %v4139_v12  }
  0x72   :  { %148 = vperm.xlu0 %3767, %v4226_v27  }
  0x73   :  { %3732 = vset.pattern.permute.xlu1 %v4056_v6 }
  0x74   :  { %795 = vperm.xlu1 %3732, %v4139_v12  }
  0x76   :  { %163 = vperm.xlu0 %3767, %v4238_v28  }
  0x78   :  { %799 = vperm.xlu1 %3732, %v4121_v9   ;;  %v4399_v9 = vrot.slane %v64_v5, %v5803_v2 }
  0x7a   :  { %178 = vperm.xlu0 %3767, %v4246_v29  }
  0x7c   :  { %3733 = vset.pattern.permute.xlu1 %v5806_v1 }
  0x7d   :  { %123 = vperm.xlu1 %3733, %v4146_v13  }
  0x7e   :  { %193 = vperm.xlu0 %3767, %v4252_v30  }
  0x81   :  { %3734 = vset.pattern.permute.xlu1 %v4053_v0  ;;  %v4283_v32 = vpop.permute.xlu1 %299  ;;  %v4285_v33 = vpop.permute.xlu0 %68 }
  0x82   :  { %339 = vperm.xlu1 %3734, %v4197_v22   ;;  %208 = vperm.xlu0 %3767, %v4280_v31   ;;  %v454_v18 = vmul.f32 %v4399_v9, %v4283_v32 }
  0x85   :  { %v4294_v35 = vpop.permute.xlu1 %303  ;;  %v4296_v36 = vpop.permute.xlu0 %73 }
  0x86   :  { %3735 = vset.pattern.permute.xlu1 %v5808_v4  ;;  %223 = vperm.xlu0 %3767, %v4292_v34   ;;  %v455_v23 = vmul.f32 %v4399_v9, %v4294_v35  ;;  %v4441_v35 = vld [vmem:[%s5797_s4] sm:$0x3f] }
  0x87   :  { %571 = vperm.xlu1 %3735, %v4197_v22  }
  0x8a   :  { %v4301_v37 = vpop.permute.xlu1 %535  ;;  %v4303_v38 = vpop.permute.xlu0 %531  ;;  %3777 = vset.pattern.permute.xlu0 %v5808_v4 }
  0x8b   :  { %575 = vperm.xlu1 %3735, %v4146_v13   ;;  %591 = vperm.xlu0 %3777, %v4308_v39  }
  0x8e   :  { %v4313_v40 = vpop.permute.xlu0 %543 }
  0x8f   :  { %3736 = vset.pattern.permute.xlu1 %v4056_v6  ;;  %v4321_v42 = vpop.permute.xlu1 %763  ;;  %603 = vperm.xlu0 %3777, %v4318_v41  }
  0x90   :  { %807 = vperm.xlu1 %3736, %v4146_v13   ;;  %v4409_v13 = vrot.slane %v64_v5, %v5802_v7 }
  0x92   :  { %v4325_v43 = vpop.permute.xlu0 %555  ;;  %v686_v25 = vmul.f32 %v4409_v13, %v4303_v38  ;;  %v687_v57 = vmul.f32 %v4409_v13, %v4301_v37  ;;  %v689_v37 = vmul.f32 %v4409_v13, %v4313_v40 }
  0x93   :  { %615 = vperm.xlu0 %3777, %v4330_v44  }
  0x94   :  { %3737 = vset.pattern.permute.xlu1 %v5806_v1  ;;  %v4334_v45 = vpop.permute.xlu1 %78 }
  0x95   :  { %128 = vperm.xlu1 %3737, %v4127_v10  }
  0x96   :  { %v4342_v47 = vpop.permute.xlu0 %567 }
  0x97   :  { %627 = vperm.xlu0 %3777, %v4339_v46  }
  0x98   :  { %v84_v48 = vpop.permute.xlu1 %83 }
  0x99   :  { %3738 = vset.pattern.permute.xlu1 %v4053_v0 }
  0x9a   :  { %347 = vperm.xlu1 %3738, %v4127_v10   ;;  %v4352_v50 = vpop.permute.xlu0 %579 }
  0x9b   :  { %639 = vperm.xlu0 %3777, %v4348_v49  }
  0x9d   :  { %v312_v52 = vpop.permute.xlu1 %311 }
  0x9e   :  { %351 = vperm.xlu1 %3738, %v4208_v24   ;;  %v457_v26 = vmul.f32 %v4399_v9, %v312_v52 }
  0x9f   :  { %v308_v53 = vpop.permute.xlu0 %307  ;;  %651 = vperm.xlu0 %3777, %v4358_v51  }
  0xa0   :  { %v456_v38 = vmul.f32 %v4399_v9, %v308_v53 }
  0xa2   :  { %3740 = vset.pattern.permute.xlu1 %v5808_v4  ;;  %v540_v55 = vpop.permute.xlu1 %539 }
  0xa3   :  { %583 = vperm.xlu1 %3740, %v4208_v24   ;;  %v4369_v56 = vpop.permute.xlu0 %319  ;;  %663 = vperm.xlu0 %3777, %v4365_v54  }
  0xa7   :  { %3741 = vset.pattern.permute.xlu1 %v4056_v6  ;;  %v772_v59 = vpop.permute.xlu1 %771  ;;  %v4378_v60 = vpop.permute.xlu0 %331  ;;  %3784 = vset.pattern.permute.xlu0 %v4053_v0 }
  0xa8   :  { %811 = vperm.xlu1 %3741, %v4127_v10   ;;  %391 = vperm.xlu0 %3784, %v4375_v58   ;;  %v4401_v10 = vrot.slane %v64_v5, %v258_v3  ;;  %v918_v5 = vmul.f32 %v4419_v21, %v4321_v42  ;;  %v920_v19 = vmul.f32 %v4419_v21, %v772_v59  ;;  %v4470_v59 = vld [vmem:[%s5794_s0 + $0xd0] sm:$0xff] }
  0xaa   :  { %v260_v20 = vmul.f32 %v4401_v10, %v4285_v33  ;;  %v261_v24 = vmul.f32 %v4401_v10, %v4296_v36  ;;  %v263_v36 = vmul.f32 %v4401_v10, %v84_v48  ;;  %v262_v42 = vmul.f32 %v4401_v10, %v4334_v45 }
  0xab   :  { %v776_v62 = vpop.permute.xlu1 %775  ;;  %v4385_v63 = vpop.permute.xlu0 %343  ;;  %v4454_v48 = vrot.slane %v4441_v35, %v258_v3 }
  0xac   :  { %3742 = vset.pattern.permute.xlu1 %v5806_v1  ;;  %v492_v33 = vadd.f32 %v454_v18, %v260_v20  ;;  %v493_v11 = vadd.f32 %v455_v23, %v261_v24  ;;  %v495_v20 = vadd.f32 %v457_v26, %v263_v36  ;;  %v494_v24 = vadd.f32 %v456_v38, %v262_v42 }
  0xad   :  { %138 = vperm.xlu1 %3742, %v4152_v14   ;;  %403 = vperm.xlu0 %3784, %v4470_v59  }
  0xae   :  { %v724_v52 = vadd.f32 %v686_v25, %v492_v33  ;;  %v725_v7 = vadd.f32 %v687_v57, %v493_v11  ;;  %v688_v25 = vmul.f32 %v4409_v13, %v540_v55  ;;  %v921_v33 = vmul.f32 %v4419_v21, %v776_v62 }
  0xaf   :  { %v4395_v8 = vpop.permute.xlu0 %355  ;;  %v727_v45 = vadd.f32 %v689_v37, %v495_v20 }
  0xb0   :  { %v4404_v12 = vpop.permute.xlu1 %93  ;;  %v956_v53 = vadd.f32 %v918_v5, %v724_v52  ;;  %v726_v57 = vadd.f32 %v688_v25, %v494_v24  ;;  %v5810_v24 = vmov 0.0  }
  0xb1   :  { %143 = vperm.xlu1 %3742, %v4308_v39   ;;  %v959_v5 = vadd.f32 %v921_v33, %v727_v45 }
  0xb2   :  { %v998_v11 = vadd.f32 %v4454_v48, %v956_v53  ;;  %v958_v36 = vadd.f32 %v920_v19, %v726_v57 }
  0xb3   :  { %v4411_v16 = vpop.permute.xlu0 %367 }
  0xb5   :  { %3743 = vset.pattern.permute.xlu1 %v4053_v0  ;;  %v4422_v22 = vpop.permute.xlu1 %315 }
  0xb6   :  { %359 = vperm.xlu1 %3743, %v4308_v39  }
  0xb7   :  { %v4432_v32 = vpop.permute.xlu0 %379 }
  0xba   :  { %3744 = vset.pattern.permute.xlu1 %v5808_v4  ;;  %v4446_v18 = vpop.permute.xlu1 %547 }
  0xbb   :  { %587 = vperm.xlu1 %3744, %v4152_v14  }
  0xbc   :  { %v768_v23 = vpop.permute.xlu0 %767 }
  0xbd   :  { %v919_v2 = vmul.f32 %v4419_v21, %v768_v23 }
  0xbe   :  { %v552_v40 = vpop.permute.xlu1 %551 }
  0xbf   :  { %v957_v26 = vadd.f32 %v919_v2, %v725_v7  ;;  %3745 = vset.pattern.permute.xlu1 %v4056_v6  ;;  %v1000_v2 = vadd.f32 %v4454_v48, %v958_v36  ;;  %v4510_v36 = vld [vmem:[%s5794_s0 + $0xe8] sm:$0xff] }
  0xc0   :  { %819 = vperm.xlu1 %3745, %v4152_v14   ;;  %v780_v3 = vpop.permute.xlu0 %779  ;;  %v1001_v14 = vadd.f32 %v4454_v48, %v959_v5  ;;  %v265_v5 = vmul.f32 %v4401_v10, %v4404_v12  ;;  %415 = vperm.xlu0 %3784, %v4510_v36   ;;  %v458_v12 = vmul.f32 %v4399_v9, %v4422_v22 }
  0xc1   :  { %v999_v55 = vadd.f32 %v4454_v48, %v957_v26  ;;  %v692_v22 = vmul.f32 %v4409_v13, %v4325_v43 }
  0xc3   :  { %v1036_v62 = vpack.c.bf16 %v999_v55, %v998_v11  ;;  %v784_v38 = vpop.permute.xlu1 %783  ;;  %v691_v55 = vmul.f32 %v4409_v13, %v552_v40 }
  0xc4   :  { %823 = vperm.xlu1 %3745, %v4308_v39   ;;  %v4465_v52 = vpop.permute.xlu0 %791  ;;  %v1037_v39 = vpack.c.bf16 %v1001_v14, %v1000_v2  ;;  %v923_v14 = vmul.f32 %v4419_v21, %v784_v38  ;;  %v922_v38 = vmul.f32 %v4419_v21, %v780_v3 }
  0xc5   :  { %3823 = vtanh.bf16 %v1036_v62  ;;  %v925_v3 = vmul.f32 %v4419_v21, %v4465_v52 }
  0xc6   :  { %3825 = vtanh.bf16 %v1037_v39 }
  0xc8   :  { %3746 = vset.pattern.permute.xlu1 %v5806_v1  ;;  %v99_v19 = vpop.permute.xlu1 %98  ;;  %v4476_v7 = vpop.permute.xlu0 %803 }
  0xc9   :  { %153 = vperm.xlu1 %3746, %v4159_v15  }
  0xcc   :  { %v4479_v37 = vpop.permute.xlu0 %815 }
  0xcd   :  { %3747 = vset.pattern.permute.xlu1 %v4053_v0  ;;  %v324_v42 = vpop.permute.xlu1 %323 }
  0xce   :  { %363 = vperm.xlu1 %3747, %v4226_v27   ;;  %v460_v40 = vmul.f32 %v4399_v9, %v324_v42 }
  0xd0   :  { %v3824_v20 = vpop.eup %3823  ;;  %v4483_v53 = vpop.permute.xlu0 %827 }
  0xd1   :  { %v328_v23 = vpop.permute.xlu1 %327  ;;  %3277 = vmatmul.mubr.msk.bf16.vlgmr.msra.gmra.mrb[0].mxu0 %vm1118_vm1, %v3824_v20  ;;  %v3826_v45 = vpop.eup %3825  ;;  %v4523_v20 = vld [vmem:[%s5794_s0 + $0x100] sm:$0xff] }
  0xd2   :  { %3748 = vset.pattern.permute.xlu1 %v5808_v4  ;;  %3280 = vmatprep.mubr.msk.bf16.mxu0 %vm4058_vm0, %v5810_v24 }
  0xd3   :  { %595 = vperm.xlu1 %3748, %v4226_v27   ;;  %v459_v27 = vmul.f32 %v4399_v9, %v4369_v56  ;;  %427 = vperm.xlu0 %3784, %v4523_v20  }
  0xd4   :  { %v4490_v25 = vpop.permute.xlu0 %839 }
  0xd6   :  { %v560_v33 = vpop.permute.xlu1 %559 }
  0xd7   :  { %599 = vperm.xlu1 %3748, %v4159_v15   ;;  %v693_v43 = vmul.f32 %v4409_v13, %v560_v33  ;;  %v5811_v33 = vmov 2  }
  0xd8   :  { %v4493_v26 = vpop.permute.xlu0 %851 }
  0xd9   :  { %3281 = vmatmul.mubr.msk.bf16.gmra.mrb[4].mxu0 %vm1118_vm1, %v3826_v45  ;;  %v690_v45 = vmul.f32 %v4409_v13, %v4446_v18 }
  0xda   :  { %3284 = vmatprep.mubr.msk.bf16.mxu0 %vm4058_vm0, %v5810_v24 }
  0xdb   :  { %3749 = vset.pattern.permute.xlu1 %v4056_v6  ;;  %v788_v11 = vpop.permute.xlu1 %787 }
  0xdc   :  { %831 = vperm.xlu1 %3749, %v4159_v15   ;;  %v4500_v57 = vpop.permute.xlu0 %863  ;;  %v497_v15 = vadd.f32 %v459_v27, %v265_v5  ;;  %v266_v27 = vmul.f32 %v4401_v10, %v99_v19  ;;  %v4541_v19 = vld [vmem:[%s5794_s0 + $0x118] sm:$0xff] }
  0xdd   :  { %439 = vperm.xlu0 %3784, %v4541_v19  }
  0xde   :  { %v729_v39 = vadd.f32 %v691_v55, %v497_v15  ;;  %v498_v15 = vadd.f32 %v460_v40, %v266_v27 }
  0xe0   :  { %3750 = vset.pattern.permute.xlu1 %v5806_v1  ;;  %v109_v62 = vpop.permute.xlu1 %108  ;;  %v961_v42 = vadd.f32 %v923_v14, %v729_v39  ;;  %v924_v14 = vmul.f32 %v4419_v21, %v788_v11  ;;  %v730_v39 = vadd.f32 %v692_v22, %v498_v15 }
  0xe1   :  { %158 = vperm.xlu1 %3750, %v4318_v41   ;;  %v89_v56 = vpop.permute.xlu0 %88  ;;  %3788 = vset.pattern.permute.xlu0 %v4056_v6 }
  0xe2   :  { %v264_v2 = vmul.f32 %v4401_v10, %v89_v56  ;;  %v461_v56 = vmul.f32 %v4399_v9, %v328_v23  ;;  %v962_v27 = vadd.f32 %v924_v14, %v730_v39  ;;  %875 = vperm.xlu0 %3788, %v4280_v31   ;;  %v5812_v39 = vmov 0  }
  0xe4   :  { %v496_v5 = vadd.f32 %v458_v12, %v264_v2  ;;  %v114_v1 = vpop.permute.xlu1 %113  ;;  %v1003_v2 = vadd.f32 %v4454_v48, %v961_v42  ;;  %v1004_v22 = vadd.f32 %v4454_v48, %v962_v27  ;;  %v268_v42 = vmul.f32 %v4401_v10, %v109_v62 }
  0xe5   :  { %3751 = vset.pattern.permute.xlu1 %v4053_v0  ;;  %v104_v55 = vpop.permute.xlu0 %103 }
  0xe6   :  { %v728_v4 = vadd.f32 %v690_v45, %v496_v5  ;;  %v267_v18 = vmul.f32 %v4401_v10, %v104_v55  ;;  %371 = vperm.xlu1 %3751, %v4318_v41   ;;  %887 = vperm.xlu0 %3788, %v4292_v34  }
  0xe8   :  { %v960_v12 = vadd.f32 %v922_v38, %v728_v4  ;;  %v499_v40 = vadd.f32 %v461_v56, %v267_v18  ;;  %v462_v38 = vmul.f32 %v4399_v9, %v4378_v60  ;;  %v269_v56 = vmul.f32 %v4401_v10, %v114_v1 }
  0xe9   :  { %v336_v23 = vpop.permute.xlu1 %335 }
  0xea   :  { %v1002_v45 = vadd.f32 %v4454_v48, %v960_v12  ;;  %v731_v52 = vadd.f32 %v693_v43, %v499_v40  ;;  %375 = vperm.xlu1 %3751, %v4238_v28   ;;  %v463_v15 = vmul.f32 %v4399_v9, %v336_v23  ;;  %v500_v60 = vadd.f32 %v462_v38, %v268_v42 }
  0xec   :  { %v1038_v5 = vpack.c.bf16 %v1003_v2, %v1002_v45  ;;  %v963_v55 = vadd.f32 %v925_v3, %v731_v52  ;;  %v501_v14 = vadd.f32 %v463_v15, %v269_v56  ;;  %v465_v56 = vmul.f32 %v4399_v9, %v4385_v63 }
  0xee   :  { %3827 = vtanh.bf16 %v1038_v5  ;;  %v1005_v4 = vadd.f32 %v4454_v48, %v963_v55  ;;  %3752 = vset.pattern.permute.xlu1 %v5811_v33  ;;  %v564_v11 = vpop.permute.xlu1 %563 }
  0xef   :  { %607 = vperm.xlu1 %3752, %v4238_v28   ;;  %v694_v3 = vmul.f32 %v4409_v13, %v564_v11  ;;  %v695_v28 = vmul.f32 %v4409_v13, %v4342_v47  ;;  %v119_v11 = vpop.permute.xlu0 %118 }
  0xf0   :  { %v1039_v18 = vpack.c.bf16 %v1005_v4, %v1004_v22  ;;  %v270_v22 = vmul.f32 %v4401_v10, %v119_v11 }
  0xf1   :  { %v732_v62 = vadd.f32 %v694_v3, %v500_v60  ;;  %v733_v1 = vadd.f32 %v695_v28, %v501_v14  ;;  %v928_v60 = vmul.f32 %v4419_v21, %v4476_v7 }
  0xf2   :  { %3829 = vtanh.bf16 %v1039_v18 }
  0xf3   :  { %3753 = vset.pattern.permute.xlu1 %v4056_v6  ;;  %v796_v43 = vpop.permute.xlu1 %795  ;;  %v134_v7 = vpop.permute.xlu0 %133 }
  0xf4   :  { %v926_v12 = vmul.f32 %v4419_v21, %v796_v43  ;;  %835 = vperm.xlu1 %3753, %v4318_v41  }
  0xf6   :  { %v964_v23 = vadd.f32 %v926_v12, %v732_v62 }
  0xf7   :  { %v800_v40 = vpop.permute.xlu1 %799 }
  0xf8   :  { %v927_v2 = vmul.f32 %v4419_v21, %v800_v40  ;;  %3754 = vset.pattern.permute.xlu1 %v5812_v39  ;;  %v1006_v41 = vadd.f32 %v4454_v48, %v964_v23 }
  0xf9   :  { %v3828_v45 = vpop.eup %3827  ;;  %168 = vperm.xlu1 %3754, %v4171_v17  }
  0xfa   :  { %v965_v52 = vadd.f32 %v927_v2, %v733_v1  ;;  %3285 = vmatmul.mubr.msk.bf16.gmra.mrb[8].mxu0 %vm1118_vm1, %v3828_v45 }
  0xfb   :  { %3288 = vmatprep.mubr.msk.bf16.mxu0 %vm4058_vm0, %v5810_v24 }
  0xfc   :  { %v1007_v47 = vadd.f32 %v4454_v48, %v965_v52  ;;  %v124_v27 = vpop.permute.xlu1 %123 }
  0xfd   :  { %173 = vperm.xlu1 %3754, %v4330_v44   ;;  %v3830_v55 = vpop.eup %3829  ;;  %v271_v18 = vmul.f32 %v4401_v10, %v124_v27  ;;  %v4604_v27 = vpop.permute.xlu0 %148 }
  0xfe   :  { %v1040_v5 = vpack.c.bf16 %v1007_v47, %v1006_v41 }
  0xff   :  { %v503_v63 = vadd.f32 %v465_v56, %v271_v18  ;;  %v698_v18 = vmul.f32 %v4409_v13, %v4352_v50 }
 0x100   :  { %3831 = vtanh.bf16 %v1040_v5  ;;  %v273_v5 = vmul.f32 %v4401_v10, %v134_v7 }
 0x101   :  { %3756 = vset.pattern.permute.xlu1 %v4053_v0  ;;  %v340_v4 = vpop.permute.xlu1 %339 }
 0x102   :  { %383 = vperm.xlu1 %3756, %v4330_v44   ;;  %3289 = vmatmul.mubr.msk.bf16.gmra.mrb[12].mxu0 %vm1118_vm1, %v3830_v55  ;;  %v464_v38 = vmul.f32 %v4399_v9, %v340_v4  ;;  %v4611_v4 = vpop.permute.xlu0 %163 }
 0x103   :  { %3292 = vmatprep.mubr.msk.bf16.mxu0 %vm4058_vm0, %v5810_v24 }
 0x104   :  { %v502_v3 = vadd.f32 %v464_v38, %v270_v22 }
 0x106   :  { %3757 = vset.pattern.permute.xlu1 %v5811_v33  ;;  %v572_v42 = vpop.permute.xlu1 %571 }
 0x107   :  { %611 = vperm.xlu1 %3757, %v4171_v17   ;;  %v696_v15 = vmul.f32 %v4409_v13, %v572_v42 }
 0x109   :  { %v734_v14 = vadd.f32 %v696_v15, %v502_v3  ;;  %v931_v3 = vmul.f32 %v4419_v21, %v4479_v37 }
 0x10a   :  { %v576_v43 = vpop.permute.xlu1 %575 }
 0x10b   :  { %v3832_v28 = vpop.eup %3831  ;;  %3758 = vset.pattern.permute.xlu1 %v4056_v6  ;;  %v697_v12 = vmul.f32 %v4409_v13, %v576_v43  ;;  %v966_v40 = vadd.f32 %v928_v60, %v734_v14 }
 0x10c   :  { %843 = vperm.xlu1 %3758, %v4171_v17   ;;  %3293 = vmatmul.mubr.msk.bf16.gmra.mrb[16].mxu0 %vm1118_vm1, %v3832_v28  ;;  %v4622_v28 = vpop.permute.xlu0 %178 }
 0x10d   :  { %3296 = vmatprep.mubr.msk.bf16.mxu0 %vm4058_vm0, %v5810_v24  ;;  %v735_v23 = vadd.f32 %v697_v12, %v503_v63  ;;  %v1008_v45 = vadd.f32 %v4454_v48, %v966_v40 }
 0x10f   :  { %v808_v62 = vpop.permute.xlu1 %807 }
 0x110   :  { %v929_v1 = vmul.f32 %v4419_v21, %v808_v62  ;;  %847 = vperm.xlu1 %3758, %v4330_v44   ;;  %v4629_v37 = vpop.permute.xlu0 %193 }
 0x112   :  { %v967_v2 = vadd.f32 %v929_v1, %v735_v23  ;;  %v4637_v1 = vld [vmem:[%s5794_s0 + $0x110] sm:$0xff] }
 0x113   :  { %899 = vperm.xlu0 %3788, %v4637_v1  }
 0x114   :  { %v1009_v52 = vadd.f32 %v4454_v48, %v967_v2  ;;  %3759 = vset.pattern.permute.xlu1 %v5812_v39  ;;  %v129_v17 = vpop.permute.xlu1 %128  ;;  %v4641_v7 = vpop.permute.xlu0 %208 }
 0x115   :  { %183 = vperm.xlu1 %3759, %v4375_v58   ;;  %v272_v38 = vmul.f32 %v4401_v10, %v129_v17 }
 0x116   :  { %v1041_v41 = vpack.c.bf16 %v1009_v52, %v1008_v45 }
 0x117   :  { %3790 = vset.pattern.permute.xlu0 %v5812_v39 }
 0x118   :  { %3833 = vtanh.bf16 %v1041_v41  ;;  %238 = vperm.xlu0 %3790, %v4637_v1   ;;  %v4648_v52 = vpop.permute.xlu0 %223 }
 0x119   :  { %3760 = vset.pattern.permute.xlu1 %v4053_v0  ;;  %v348_v47 = vpop.permute.xlu1 %347 }
 0x11a   :  { %387 = vperm.xlu1 %3760, %v4246_v29   ;;  %v466_v11 = vmul.f32 %v4399_v9, %v348_v47  ;;  %v468_v47 = vmul.f32 %v4399_v9, %v4395_v8 }
 0x11d   :  { %v352_v44 = vpop.permute.xlu1 %351 }
 0x11e   :  { %3761 = vset.pattern.permute.xlu1 %v5811_v33  ;;  %v467_v55 = vmul.f32 %v4399_v9, %v352_v44 }
 0x11f   :  { %619 = vperm.xlu1 %3761, %v4246_v29   ;;  %v504_v29 = vadd.f32 %v466_v11, %v272_v38 }
 0x120   :  { %v505_v15 = vadd.f32 %v467_v55, %v273_v5  ;;  %v592_v55 = vpop.permute.xlu0 %591 }
 0x121   :  { %v736_v12 = vadd.f32 %v698_v18, %v504_v29  ;;  %v701_v8 = vmul.f32 %v4409_v13, %v592_v55 }
 0x122   :  { %v584_v22 = vpop.permute.xlu1 %583 }
 0x123   :  { %v3834_v42 = vpop.eup %3833  ;;  %v699_v56 = vmul.f32 %v4409_v13, %v584_v22  ;;  %623 = vperm.xlu1 %3761, %v4375_v58  }
 0x124   :  { %3297 = vmatmul.mubr.msk.bf16.gmra.mrb[20].mxu0 %vm1118_vm1, %v3834_v42 }
 0x125   :  { %v737_v43 = vadd.f32 %v699_v56, %v505_v15  ;;  %3300 = vmatprep.mubr.msk.bf16.mxu0 %vm4058_vm0, %v5810_v24 }
 0x127   :  { %3762 = vset.pattern.permute.xlu1 %v4056_v6  ;;  %v812_v60 = vpop.permute.xlu1 %811  ;;  %v969_v14 = vadd.f32 %v931_v3, %v737_v43 }
 0x128   :  { %v930_v63 = vmul.f32 %v4419_v21, %v812_v60  ;;  %855 = vperm.xlu1 %3762, %v4375_v58  }
 0x129   :  { %v1011_v62 = vadd.f32 %v4454_v48, %v969_v14  ;;  %v4671_v14 = vld [vmem:[%s5794_s0 + $0x128] sm:$0xff] }
 0x12a   :  { %v968_v50 = vadd.f32 %v930_v63, %v736_v12  ;;  %253 = vperm.xlu0 %3790, %v4671_v14  }
 0x12c   :  { %v1010_v40 = vadd.f32 %v4454_v48, %v968_v50  ;;  %3763 = vset.pattern.permute.xlu1 %v5812_v39  ;;  %v139_v23 = vpop.permute.xlu1 %138 }
 0x12d   :  { %188 = vperm.xlu1 %3763, %v4339_v46   ;;  %v274_v44 = vmul.f32 %v4401_v10, %v139_v23  ;;  %v276_v23 = vmul.f32 %v4401_v10, %v4604_v27  ;;  %v934_v27 = vmul.f32 %v4419_v21, %v4483_v53 }
 0x12e   :  { %v1042_v58 = vpack.c.bf16 %v1011_v62, %v1010_v40  ;;  %v4680_v62 = vld [vmem:[%s5794_s0 + $0x120] sm:$0xff]  ;;  %3794 = vset.pattern.permute.xlu0 %v5811_v33 }
 0x12f   :  { %v506_v22 = vadd.f32 %v468_v47, %v274_v44  ;;  %675 = vperm.xlu0 %3794, %v4680_v62  }
 0x130   :  { %3835 = vtanh.bf16 %v1042_v58  ;;  %v144_v2 = vpop.permute.xlu1 %143 }
 0x131   :  { %3764 = vset.pattern.permute.xlu1 %v4053_v0  ;;  %v275_v11 = vmul.f32 %v4401_v10, %v144_v2 }
 0x132   :  { %395 = vperm.xlu1 %3764, %v4339_v46  }
 0x133   :  { %3797 = vset.pattern.permute.xlu0 %v4056_v6 }
 0x134   :  { %911 = vperm.xlu0 %3797, %v4671_v14  }
 0x135   :  { %v360_v45 = vpop.permute.xlu1 %359 }
 0x136   :  { %399 = vperm.xlu1 %3764, %v4252_v30   ;;  %v469_v5 = vmul.f32 %v4399_v9, %v360_v45 }
 0x138   :  { %v507_v42 = vadd.f32 %v469_v5, %v275_v11 }
 0x13a   :  { %3765 = vset.pattern.permute.xlu1 %v5811_v33  ;;  %v588_v17 = vpop.permute.xlu1 %587  ;;  %v739_v3 = vadd.f32 %v701_v8, %v507_v42 }
 0x13b   :  { %v3836_v41 = vpop.eup %3835  ;;  %631 = vperm.xlu1 %3765, %v4252_v30   ;;  %v700_v38 = vmul.f32 %v4409_v13, %v588_v17  ;;  %v471_v17 = vmul.f32 %v4399_v9, %v4411_v16 }
 0x13c   :  { %3301 = vmatmul.mubr.msk.bf16.gmra.mrb[24].mxu0 %vm1118_vm1, %v3836_v41 }
 0x13d   :  { %3304 = vmatprep.mubr.msk.bf16.mxu0 %vm4058_vm0, %v5810_v24  ;;  %v738_v56 = vadd.f32 %v700_v38, %v506_v22 }
 0x13f   :  { %3766 = vset.pattern.permute.xlu1 %v4056_v6  ;;  %v820_v30 = vpop.permute.xlu1 %819 }
 0x140   :  { %v932_v15 = vmul.f32 %v4419_v21, %v820_v30  ;;  %859 = vperm.xlu1 %3766, %v4339_v46  }
 0x142   :  { %v970_v29 = vadd.f32 %v932_v15, %v738_v56 }
 0x143   :  { %v824_v18 = vpop.permute.xlu1 %823 }
 0x144   :  { %v933_v43 = vmul.f32 %v4419_v21, %v824_v18  ;;  %3768 = vset.pattern.permute.xlu1 %v5812_v39  ;;  %v1012_v46 = vadd.f32 %v4454_v48, %v970_v29 }
 0x145   :  { %198 = vperm.xlu1 %3768, %v4470_v59  }
 0x146   :  { %v971_v60 = vadd.f32 %v933_v43, %v739_v3 }
 0x148   :  { %v1013_v12 = vadd.f32 %v4454_v48, %v971_v60  ;;  %v154_v63 = vpop.permute.xlu1 %153  ;;  %v604_v60 = vpop.permute.xlu0 %603 }
 0x149   :  { %203 = vperm.xlu1 %3768, %v4348_v49   ;;  %v277_v41 = vmul.f32 %v4401_v10, %v154_v63 }
 0x14a   :  { %v1043_v50 = vpack.c.bf16 %v1013_v12, %v1012_v46 }
 0x14b   :  { %v509_v16 = vadd.f32 %v471_v17, %v277_v41 }
 0x14c   :  { %3837 = vtanh.bf16 %v1043_v50 }
 0x14d   :  { %3769 = vset.pattern.permute.xlu1 %v4053_v0  ;;  %v364_v40 = vpop.permute.xlu1 %363 }
 0x14e   :  { %407 = vperm.xlu1 %3769, %v4348_v49   ;;  %v470_v58 = vmul.f32 %v4399_v9, %v364_v40 }
 0x150   :  { %v508_v47 = vadd.f32 %v470_v58, %v276_v23  ;;  %v937_v23 = vmul.f32 %v4419_v21, %v4490_v25  ;;  %v704_v58 = vmul.f32 %v4409_v13, %v604_v60 }
 0x152   :  { %3770 = vset.pattern.permute.xlu1 %v5811_v33  ;;  %v596_v2 = vpop.permute.xlu1 %595 }
 0x153   :  { %635 = vperm.xlu1 %3770, %v4470_v59   ;;  %v702_v45 = vmul.f32 %v4409_v13, %v596_v2 }
 0x155   :  { %v740_v55 = vadd.f32 %v702_v45, %v508_v47 }
 0x156   :  { %v600_v44 = vpop.permute.xlu1 %599 }
 0x157   :  { %v3838_v5 = vpop.eup %3837  ;;  %3771 = vset.pattern.permute.xlu1 %v4056_v6  ;;  %v703_v11 = vmul.f32 %v4409_v13, %v600_v44  ;;  %v972_v30 = vadd.f32 %v934_v27, %v740_v55 }
 0x158   :  { %867 = vperm.xlu1 %3771, %v4470_v59   ;;  %3305 = vmatmul.mubr.msk.bf16.gmra.mrb[28].mxu0 %vm1118_vm1, %v3838_v5 }
 0x159   :  { %3308 = vmatprep.mubr.msk.bf16.mxu0 %vm4058_vm0, %v5810_v24  ;;  %v741_v22 = vadd.f32 %v703_v11, %v509_v16  ;;  %v1014_v53 = vadd.f32 %v4454_v48, %v972_v30  ;;  %v616_v11 = vpop.permute.xlu0 %615 }
 0x15b   :  { %v832_v38 = vpop.permute.xlu1 %831 }
 0x15c   :  { %v935_v42 = vmul.f32 %v4419_v21, %v832_v38  ;;  %871 = vperm.xlu1 %3771, %v4348_v49   ;;  %v279_v49 = vmul.f32 %v4401_v10, %v4611_v4 }
 0x15d   :  { %v4739_v30 = vpop.permute.xlu0 %627 }
 0x15e   :  { %v973_v8 = vadd.f32 %v935_v42, %v741_v22  ;;  %v474_v22 = vmul.f32 %v4399_v9, %v4432_v32 }
 0x160   :  { %v1015_v15 = vadd.f32 %v4454_v48, %v973_v8  ;;  %3772 = vset.pattern.permute.xlu1 %v5812_v39  ;;  %v159_v59 = vpop.permute.xlu1 %158 }
 0x161   :  { %213 = vperm.xlu1 %3772, %v4510_v36   ;;  %v278_v46 = vmul.f32 %v4401_v10, %v159_v59 }
 0x162   :  { %v1044_v56 = vpack.c.bf16 %v1015_v15, %v1014_v53 }
 0x164   :  { %3839 = vtanh.bf16 %v1044_v56  ;;  %v707_v56 = vmul.f32 %v4409_v13, %v616_v11  ;;  %v940_v11 = vmul.f32 %v4419_v21, %v4493_v26 }
 0x165   :  { %3773 = vset.pattern.permute.xlu1 %v4053_v0  ;;  %v372_v18 = vpop.permute.xlu1 %371 }
 0x166   :  { %411 = vperm.xlu1 %3773, %v4280_v31   ;;  %v472_v43 = vmul.f32 %v4399_v9, %v372_v18 }
 0x168   :  { %v510_v4 = vadd.f32 %v472_v43, %v278_v46 }
 0x169   :  { %v376_v3 = vpop.permute.xlu1 %375 }
 0x16a   :  { %3774 = vset.pattern.permute.xlu1 %v5811_v33  ;;  %v473_v29 = vmul.f32 %v4399_v9, %v376_v3  ;;  %v742_v45 = vadd.f32 %v704_v58, %v510_v4  ;;  %v4755_v3 = vpop.permute.xlu0 %639 }
 0x16b   :  { %643 = vperm.xlu1 %3774, %v4280_v31  }
 0x16c   :  { %v511_v50 = vadd.f32 %v473_v29, %v279_v49 }
 0x16e   :  { %v608_v12 = vpop.permute.xlu1 %607 }
 0x16f   :  { %v3840_v63 = vpop.eup %3839  ;;  %v705_v40 = vmul.f32 %v4409_v13, %v608_v12  ;;  %647 = vperm.xlu1 %3774, %v4510_v36  }
 0x170   :  { %3309 = vmatmul.mubr.msk.bf16.gmra.mrb[32].mxu0 %vm1118_vm1, %v3840_v63  ;;  %v4760_v63 = vpop.permute.xlu0 %651 }
 0x171   :  { %v743_v31 = vadd.f32 %v705_v40, %v511_v50  ;;  %3312 = vmatprep.mubr.msk.bf16.mxu0 %vm4058_vm0, %v5810_v24 }
 0x173   :  { %3775 = vset.pattern.permute.xlu1 %v4056_v6  ;;  %v836_v2 = vpop.permute.xlu1 %835  ;;  %v975_v17 = vadd.f32 %v937_v23, %v743_v31  ;;  %v282_v31 = vmul.f32 %v4401_v10, %v4622_v28  ;;  %v5813_v28 = vsub.s32 1, %v4381_v61 }
 0x174   :  { %v936_v41 = vmul.f32 %v4419_v21, %v836_v2  ;;  %879 = vperm.xlu1 %3775, %v4510_v36   ;;  %v4765_v4 = vpop.permute.xlu0 %663 }
 0x175   :  { %v1017_v25 = vadd.f32 %v4454_v48, %v975_v17 }
 0x176   :  { %v974_v47 = vadd.f32 %v936_v41, %v742_v45 }
 0x178   :  { %v1016_v44 = vadd.f32 %v4454_v48, %v974_v47  ;;  %3776 = vset.pattern.permute.xlu1 %v5812_v39  ;;  %v169_v5 = vpop.permute.xlu1 %168  ;;  %v392_v17 = vpop.permute.xlu0 %391 }
 0x179   :  { %218 = vperm.xlu1 %3776, %v4358_v51   ;;  %v280_v42 = vmul.f32 %v4401_v10, %v169_v5 }
 0x17a   :  { %v1045_v27 = vpack.c.bf16 %v1017_v25, %v1016_v44  ;;  %v477_v25 = vmul.f32 %v4399_v9, %v392_v17 }
 0x17c   :  { %3841 = vtanh.bf16 %v1045_v27  ;;  %v174_v55 = vpop.permute.xlu1 %173 }
 0x17d   :  { %3778 = vset.pattern.permute.xlu1 %v4053_v0  ;;  %v281_v53 = vmul.f32 %v4401_v10, %v174_v55  ;;  %v4781_v55 = vrot.slane %v4441_v35, %v5813_v28 }
 0x17e   :  { %419 = vperm.xlu1 %3778, %v4358_v51  }
 0x181   :  { %v384_v16 = vpop.permute.xlu1 %383 }
 0x182   :  { %423 = vperm.xlu1 %3778, %v4292_v34   ;;  %v475_v8 = vmul.f32 %v4399_v9, %v384_v16 }
 0x184   :  { %v513_v32 = vadd.f32 %v475_v8, %v281_v53 }
 0x186   :  { %3779 = vset.pattern.permute.xlu1 %v5811_v33  ;;  %v612_v36 = vpop.permute.xlu1 %611  ;;  %v745_v60 = vadd.f32 %v707_v56, %v513_v32 }
 0x187   :  { %v3842_v38 = vpop.eup %3841  ;;  %655 = vperm.xlu1 %3779, %v4292_v34   ;;  %v706_v15 = vmul.f32 %v4409_v13, %v612_v36  ;;  %v512_v34 = vadd.f32 %v474_v22, %v280_v42 }
 0x188   :  { %3313 = vmatmul.mubr.msk.bf16.gmra.mrb[36].mxu0 %vm1118_vm1, %v3842_v38 }
 0x189   :  { %3448 = vmatprep.mubr.msk.bf16.mxu0 %vm4058_vm0, %v5810_v24  ;;  %v744_v49 = vadd.f32 %v706_v15, %v512_v34 }
 0x18b   :  { %3780 = vset.pattern.permute.xlu1 %v4056_v6  ;;  %v844_v59 = vpop.permute.xlu1 %843 }
 0x18c   :  { %v938_v18 = vmul.f32 %v4419_v21, %v844_v59  ;;  %883 = vperm.xlu1 %3780, %v4358_v51  }
 0x18e   :  { %v976_v43 = vadd.f32 %v938_v18, %v744_v49 }
 0x18f   :  { %v848_v29 = vpop.permute.xlu1 %847 }
 0x190   :  { %v939_v46 = vmul.f32 %v4419_v21, %v848_v29  ;;  %3781 = vset.pattern.permute.xlu1 %v5812_v39  ;;  %v1018_v50 = vadd.f32 %v4454_v48, %v976_v43 }
 0x191   :  { %228 = vperm.xlu1 %3781, %v4523_v20  }
 0x192   :  { %v977_v12 = vadd.f32 %v939_v46, %v745_v60 }
 0x194   :  { %v1019_v40 = vadd.f32 %v4454_v48, %v977_v12  ;;  %v184_v51 = vpop.permute.xlu1 %183 }
 0x195   :  { %233 = vperm.xlu1 %3781, %v4365_v54   ;;  %v283_v47 = vmul.f32 %v4401_v10, %v184_v51 }
 0x196   :  { %v1046_v23 = vpack.c.bf16 %v1019_v40, %v1018_v50 }
 0x197   :  { %v515_v42 = vadd.f32 %v477_v25, %v283_v47 }
 0x198   :  { %3843 = vtanh.bf16 %v1046_v23 }
 0x199   :  { %3782 = vset.pattern.permute.xlu1 %v4053_v0  ;;  %v388_v58 = vpop.permute.xlu1 %387 }
 0x19a   :  { %431 = vperm.xlu1 %3782, %v4365_v54   ;;  %v476_v2 = vmul.f32 %v4399_v9, %v388_v58 }
 0x19c   :  { %v514_v44 = vadd.f32 %v476_v2, %v282_v31  ;;  %v285_v31 = vmul.f32 %v4401_v10, %v4629_v37  ;;  %v943_v37 = vmul.f32 %v4419_v21, %v4500_v57 }
 0x19e   :  { %3783 = vset.pattern.permute.xlu1 %v5811_v33  ;;  %v620_v45 = vpop.permute.xlu1 %619 }
 0x19f   :  { %659 = vperm.xlu1 %3783, %v4523_v20   ;;  %v708_v41 = vmul.f32 %v4409_v13, %v620_v45 }
 0x1a1   :  { %v746_v16 = vadd.f32 %v708_v41, %v514_v44 }
 0x1a2   :  { %v624_v5 = vpop.permute.xlu1 %623 }
 0x1a3   :  { %v3844_v27 = vpop.eup %3843  ;;  %3785 = vset.pattern.permute.xlu1 %v4056_v6  ;;  %v709_v36 = vmul.f32 %v4409_v13, %v624_v5  ;;  %v978_v59 = vadd.f32 %v940_v11, %v746_v16  ;;  %v710_v5 = vmul.f32 %v4409_v13, %v4739_v30 }
 0x1a4   :  { %891 = vperm.xlu1 %3785, %v4523_v20   ;;  %v1210_v38 = vpop.f32.mrb[0].mxu0  ;;  %3317 = vmatmul.mubr.msk.bf16.vlgmr.msra.gmra.mrb[0].mxu1 %vm1118_vm1, %v3844_v27 }
 0x1a5   :  { %v3278_v22 = vpop.f32.mrb[1].mxu0  ;;  %3320 = vmatprep.mubr.msk.bf16.mxu1 %vm4058_vm0, %v5810_v24  ;;  %v4791_v35 = vadd.f32 %v1210_v38, %v4781_v55  ;;  %v747_v34 = vadd.f32 %v709_v36, %v515_v42  ;;  %v1020_v18 = vadd.f32 %v4454_v48, %v978_v59 }
 0x1a6   :  { %v1213_v8 = vpop.f32.mrb[2].mxu0 }
 0x1a7   :  { %v4794_v53 = vadd.f32 %v1213_v8, %v4781_v55  ;;  %v856_v26 = vpop.permute.xlu1 %855  ;;  %v3279_v15 = vpop.f32.mrb[3].mxu0 }
 0x1a8   :  { %v941_v20 = vmul.f32 %v4419_v21, %v856_v26  ;;  %895 = vperm.xlu1 %3785, %v4365_v54  }
 0x1a9   :  { %v1361_v56 = vpack.c.bf16 %v4794_v53, %v4791_v35 }
 0x1aa   :  { %v979_v32 = vadd.f32 %v941_v20, %v747_v34  ;;  %v404_v34 = vpop.permute.xlu0 %403 }
 0x1ac   :  { %v1021_v49 = vadd.f32 %v4454_v48, %v979_v32  ;;  %3786 = vset.pattern.permute.xlu1 %v5812_v39  ;;  %v189_v29 = vpop.permute.xlu1 %188  ;;  %v1218_v43 = vpop.f32.mrb[4].mxu0 }
 0x1ad   :  { %243 = vperm.xlu1 %3786, %v4541_v19   ;;  %v3282_v60 = vpop.f32.mrb[5].mxu0  ;;  %v4805_v50 = vadd.f32 %v1218_v43, %v4781_v55  ;;  %v284_v17 = vmul.f32 %v4401_v10, %v189_v29  ;;  %v480_v43 = vmul.f32 %v4399_v9, %v404_v34  ;;  %v3805_v34 = vld [vmem:[%s5795_s2 + $0x38] sm:$0xff]  }
 0x1ae   :  { %v1047_v46 = vpack.c.bf16 %v1021_v49, %v1020_v18  ;;  %v1221_v12 = vpop.f32.mrb[6].mxu0 }
 0x1af   :  { %v4808_v54 = vadd.f32 %v1221_v12, %v4781_v55  ;;  %v3283_v40 = vpop.f32.mrb[7].mxu0 }
 0x1b0   :  { %3845 = vtanh.bf16 %v1047_v46 }
 0x1b1   :  { %v1362_v51 = vpack.c.bf16 %v4808_v54, %v4805_v50  ;;  %3787 = vset.pattern.permute.xlu1 %v4053_v0  ;;  %v396_v23 = vpop.permute.xlu1 %395 }
 0x1b2   :  { %435 = vperm.xlu1 %3787, %v4637_v1   ;;  %v478_v45 = vmul.f32 %v4399_v9, %v396_v23  ;;  %v713_v23 = vmul.f32 %v4409_v13, %v4755_v3 }
 0x1b4   :  { %v516_v27 = vadd.f32 %v478_v45, %v284_v17 }
 0x1b5   :  { %v400_v58 = vpop.permute.xlu1 %399 }
 0x1b6   :  { %3789 = vset.pattern.permute.xlu1 %v5811_v33  ;;  %v479_v2 = vmul.f32 %v4399_v9, %v400_v58  ;;  %v748_v16 = vadd.f32 %v710_v5, %v516_v27 }
 0x1b7   :  { %667 = vperm.xlu1 %3789, %v4637_v1  }
 0x1b8   :  { %v517_v25 = vadd.f32 %v479_v2, %v285_v31 }
 0x1ba   :  { %v632_v41 = vpop.permute.xlu1 %631 }
 0x1bb   :  { %v3846_v47 = vpop.eup %3845  ;;  %v711_v44 = vmul.f32 %v4409_v13, %v632_v41  ;;  %671 = vperm.xlu1 %3789, %v4541_v19  }
 0x1bc   :  { %3321 = vmatmul.mubr.msk.bf16.gmra.mrb[4].mxu1 %vm1118_vm1, %v3846_v47 }
 0x1bd   :  { %v749_v1 = vadd.f32 %v711_v44, %v517_v25  ;;  %3324 = vmatprep.mubr.msk.bf16.mxu1 %vm4058_vm0, %v5810_v24 }
 0x1bf   :  { %v981_v28 = vadd.f32 %v943_v37, %v749_v1  ;;  %3791 = vset.pattern.permute.xlu1 %v4056_v6  ;;  %v860_v11 = vpop.permute.xlu1 %859 }
 0x1c0   :  { %v942_v36 = vmul.f32 %v4419_v21, %v860_v11  ;;  %903 = vperm.xlu1 %3791, %v4541_v19   ;;  %v3803_v11 = vld [vmem:[%s5795_s2 + $0x28] sm:$0xff]  }
 0x1c1   :  { %v1023_v38 = vadd.f32 %v4454_v48, %v981_v28  ;;  %3353 = vmatpush3.bf16.msra.mxu1 %v3803_v11 }
 0x1c2   :  { %v980_v30 = vadd.f32 %v942_v36, %v748_v16  ;;  %3354 = vmatprep.subr.bf16.mxu1 %v5810_v24 }
 0x1c4   :  { %v1022_v22 = vadd.f32 %v4454_v48, %v980_v30  ;;  %3792 = vset.pattern.permute.xlu1 %v5812_v39  ;;  %v199_v57 = vpop.permute.xlu1 %198 }
 0x1c5   :  { %248 = vperm.xlu1 %3792, %v4680_v62   ;;  %v286_v29 = vmul.f32 %v4401_v10, %v199_v57 }
 0x1c6   :  { %v1048_v42 = vpack.c.bf16 %v1023_v38, %v1022_v22 }
 0x1c7   :  { %v518_v58 = vadd.f32 %v480_v43, %v286_v29  ;;  %v3806_v29 = vld [vmem:[%s5795_s2 + $0x40] sm:$0xff]   ;;  %v288_v43 = vmul.f32 %v4401_v10, %v4641_v7 }
 0x1c8   :  { %3847 = vtanh.bf16 %v1048_v42  ;;  %v204_v8 = vpop.permute.xlu1 %203 }
 0x1c9   :  { %3793 = vset.pattern.permute.xlu1 %v4053_v0  ;;  %v287_v12 = vmul.f32 %v4401_v10, %v204_v8 }
 0x1ca   :  { %443 = vperm.xlu1 %3793, %v4680_v62  }
 0x1cd   :  { %v408_v26 = vpop.permute.xlu1 %407  ;;  %v1226_v15 = vpop.f32.mrb[8].mxu0 }
 0x1ce   :  { %447 = vperm.xlu1 %3793, %v4671_v14   ;;  %v3286_v19 = vpop.f32.mrb[9].mxu0  ;;  %v4841_v20 = vadd.f32 %v1226_v15, %v4781_v55  ;;  %v481_v60 = vmul.f32 %v4399_v9, %v408_v26  ;;  %v3804_v15 = vld [vmem:[%s5795_s2 + $0x30] sm:$0xff]  }
 0x1cf   :  { %v1229_v59 = vpop.f32.mrb[10].mxu0  ;;  %3355 = vmatpush3.bf16.msra.mxu1 %v3804_v15 }
 0x1d0   :  { %v4844_v39 = vadd.f32 %v1229_v59, %v4781_v55  ;;  %v3287_v32 = vpop.f32.mrb[11].mxu0  ;;  %v519_v2 = vadd.f32 %v481_v60, %v287_v12  ;;  %3356 = vmatprep.subr.bf16.mxu1 %v5810_v24  ;;  %v3807_v12 = vld [vmem:[%s5795_s2 + $0x48] sm:$0xff]  }
 0x1d2   :  { %v1363_v18 = vpack.c.bf16 %v4844_v39, %v4841_v20  ;;  %3795 = vset.pattern.permute.xlu1 %v5811_v33  ;;  %v636_v0 = vpop.permute.xlu1 %635  ;;  %v751_v27 = vadd.f32 %v713_v23, %v519_v2 }
 0x1d3   :  { %v3848_v49 = vpop.eup %3847  ;;  %679 = vperm.xlu1 %3795, %v4671_v14   ;;  %v712_v33 = vmul.f32 %v4409_v13, %v636_v0  ;;  %3357 = vmatpush3.bf16.msra.mxu1 %v3805_v34 }
 0x1d4   :  { %3325 = vmatmul.mubr.msk.bf16.gmra.mrb[8].mxu1 %vm1118_vm1, %v3848_v49  ;;  %3358 = vmatprep.subr.bf16.mxu1 %v5810_v24 }
 0x1d5   :  { %v1234_v46 = vpop.f32.mrb[12].mxu0  ;;  %3328 = vmatprep.mubr.msk.bf16.mxu1 %vm4058_vm0, %v5810_v24  ;;  %v750_v25 = vadd.f32 %v712_v33, %v518_v58 }
 0x1d6   :  { %v3290_v40 = vpop.f32.mrb[13].mxu0  ;;  %v4862_v45 = vadd.f32 %v1234_v46, %v4781_v55 }
 0x1d7   :  { %3796 = vset.pattern.permute.xlu1 %v4056_v6  ;;  %v868_v14 = vpop.permute.xlu1 %867  ;;  %v1237_v31 = vpop.f32.mrb[14].mxu0  ;;  %3359 = vmatpush3.bf16.msra.mxu1 %v3806_v29 }
 0x1d8   :  { %v944_v17 = vmul.f32 %v4419_v21, %v868_v14  ;;  %v4866_v41 = vadd.f32 %v1237_v31, %v4781_v55  ;;  %907 = vperm.xlu1 %3796, %v4680_v62   ;;  %v3291_v47 = vpop.f32.mrb[15].mxu0  ;;  %v416_v6 = vpop.permute.xlu0 %415  ;;  %3360 = vmatprep.subr.bf16.mxu1 %v5810_v24 }
 0x1d9   :  { %v483_v40 = vmul.f32 %v4399_v9, %v416_v6 }
 0x1da   :  { %v1364_v3 = vpack.c.bf16 %v4866_v41, %v4862_v45  ;;  %v982_v5 = vadd.f32 %v944_v17, %v750_v25 }
 0x1db   :  { %v872_v44 = vpop.permute.xlu1 %871  ;;  %3361 = vmatpush3.bf16.msra.mxu1 %v3807_v12 }
 0x1dc   :  { %v945_v37 = vmul.f32 %v4419_v21, %v872_v44  ;;  %v1024_v16 = vadd.f32 %v4454_v48, %v982_v5  ;;  %v4877_v22 = vpop.permute.xlu0 %427  ;;  %3524 = vmatprep.subr.bf16.mxu1 %v5810_v24 }
 0x1de   :  { %v983_v1 = vadd.f32 %v945_v37, %v751_v27 }
 0x1df   :  { %v1242_v28 = vpop.f32.mrb[16].mxu0 }
 0x1e0   :  { %v1025_v62 = vadd.f32 %v4454_v48, %v983_v1  ;;  %v214_v36 = vpop.permute.xlu1 %213  ;;  %v3294_v30 = vpop.f32.mrb[17].mxu0  ;;  %v4880_v42 = vadd.f32 %v1242_v28, %v4781_v55 }
 0x1e1   :  { %v1245_v38 = vpop.f32.mrb[18].mxu0  ;;  %v4895_v32 = vpop.permute.xlu0 %439  ;;  %v289_v33 = vmul.f32 %v4401_v10, %v214_v36 }
 0x1e2   :  { %v1049_v57 = vpack.c.bf16 %v1025_v62, %v1024_v16  ;;  %v4883_v8 = vadd.f32 %v1245_v38, %v4781_v55  ;;  %v3295_v26 = vpop.f32.mrb[19].mxu0 }
 0x1e3   :  { %v521_v17 = vadd.f32 %v483_v40, %v289_v33 }
 0x1e4   :  { %3849 = vtanh.bf16 %v1049_v57  ;;  %v1365_v19 = vpack.c.bf16 %v4883_v8, %v4880_v42 }
 0x1e5   :  { %v412_v59 = vpop.permute.xlu1 %411  ;;  %v876_v46 = vpop.permute.xlu0 %875 }
 0x1e6   :  { %v482_v0 = vmul.f32 %v4399_v9, %v412_v59  ;;  %v946_v7 = vmul.f32 %v4419_v21, %v876_v46 }
 0x1e8   :  { %v520_v23 = vadd.f32 %v482_v0, %v288_v43  ;;  %v291_v0 = vmul.f32 %v4401_v10, %v4648_v52  ;;  %v716_v52 = vmul.f32 %v4409_v13, %v4760_v63 }
 0x1ea   :  { %v644_v49 = vpop.permute.xlu1 %643 }
 0x1eb   :  { %v714_v60 = vmul.f32 %v4409_v13, %v644_v49  ;;  %v888_v49 = vpop.permute.xlu0 %887 }
 0x1ec   :  { %v949_v40 = vmul.f32 %v4419_v21, %v888_v49 }
 0x1ed   :  { %v752_v31 = vadd.f32 %v714_v60, %v520_v23 }
 0x1ee   :  { %v648_v58 = vpop.permute.xlu1 %647 }
 0x1ef   :  { %v3850_v14 = vpop.eup %3849  ;;  %v715_v2 = vmul.f32 %v4409_v13, %v648_v58  ;;  %v984_v25 = vadd.f32 %v946_v7, %v752_v31 }
 0x1f0   :  { %3329 = vmatmul.mubr.msk.bf16.gmra.mrb[12].mxu1 %vm1118_vm1, %v3850_v14 }
 0x1f1   :  { %3332 = vmatprep.mubr.msk.bf16.mxu1 %vm4058_vm0, %v5810_v24  ;;  %v753_v44 = vadd.f32 %v715_v2, %v521_v17  ;;  %v1026_v37 = vadd.f32 %v4454_v48, %v984_v25 }
 0x1f3   :  { %v880_v47 = vpop.permute.xlu1 %879 }
 0x1f4   :  { %v947_v6 = vmul.f32 %v4419_v21, %v880_v47 }
 0x1f6   :  { %v985_v5 = vadd.f32 %v947_v6, %v753_v44 }
 0x1f7   :  { %v1250_v27 = vpop.f32.mrb[20].mxu0 }
 0x1f8   :  { %v1027_v1 = vadd.f32 %v4454_v48, %v985_v5  ;;  %v219_v28 = vpop.permute.xlu1 %218  ;;  %v3298_v11 = vpop.f32.mrb[21].mxu0  ;;  %v4921_v36 = vadd.f32 %v1250_v27, %v4781_v55 }
 0x1f9   :  { %v1253_v16 = vpop.f32.mrb[22].mxu0  ;;  %v290_v29 = vmul.f32 %v4401_v10, %v219_v28 }
 0x1fa   :  { %v1050_v62 = vpack.c.bf16 %v1027_v1, %v1026_v37  ;;  %v4924_v30 = vadd.f32 %v1253_v16, %v4781_v55  ;;  %v3299_v38 = vpop.f32.mrb[23].mxu0 }
 0x1fc   :  { %3851 = vtanh.bf16 %v1050_v62  ;;  %v1366_v57 = vpack.c.bf16 %v4924_v30, %v4921_v36 }
 0x1fd   :  { %v420_v26 = vpop.permute.xlu1 %419 }
 0x1fe   :  { %v484_v34 = vmul.f32 %v4399_v9, %v420_v26  ;;  %v486_v26 = vmul.f32 %v4399_v9, %v4877_v22  ;;  %v719_v22 = vmul.f32 %v4409_v13, %v4765_v4 }
 0x200   :  { %v522_v33 = vadd.f32 %v484_v34, %v290_v29 }
 0x201   :  { %v424_v15 = vpop.permute.xlu1 %423 }
 0x202   :  { %v485_v59 = vmul.f32 %v4399_v9, %v424_v15  ;;  %v754_v31 = vadd.f32 %v716_v52, %v522_v33 }
 0x204   :  { %v523_v46 = vadd.f32 %v485_v59, %v291_v0 }
 0x206   :  { %v656_v43 = vpop.permute.xlu1 %655 }
 0x207   :  { %v3852_v60 = vpop.eup %3851  ;;  %v717_v12 = vmul.f32 %v4409_v13, %v656_v43 }
 0x208   :  { %3333 = vmatmul.mubr.msk.bf16.gmra.mrb[16].mxu1 %vm1118_vm1, %v3852_v60 }
 0x209   :  { %v755_v23 = vadd.f32 %v717_v12, %v523_v46  ;;  %3336 = vmatprep.mubr.msk.bf16.mxu1 %vm4058_vm0, %v5810_v24 }
 0x20b   :  { %v884_v58 = vpop.permute.xlu1 %883  ;;  %v987_v14 = vadd.f32 %v949_v40, %v755_v23 }
 0x20c   :  { %v948_v7 = vmul.f32 %v4419_v21, %v884_v58 }
 0x20d   :  { %v1029_v47 = vadd.f32 %v4454_v48, %v987_v14 }
 0x20e   :  { %v986_v2 = vadd.f32 %v948_v7, %v754_v31 }
 0x20f   :  { %v1258_v17 = vpop.f32.mrb[24].mxu0 }
 0x210   :  { %v1028_v25 = vadd.f32 %v4454_v48, %v986_v2  ;;  %v229_v44 = vpop.permute.xlu1 %228  ;;  %v3302_v6 = vpop.f32.mrb[25].mxu0  ;;  %v4944_v37 = vadd.f32 %v1258_v17, %v4781_v55 }
 0x211   :  { %v1261_v5 = vpop.f32.mrb[26].mxu0  ;;  %v292_v15 = vmul.f32 %v4401_v10, %v229_v44 }
 0x212   :  { %v1051_v27 = vpack.c.bf16 %v1029_v47, %v1028_v25  ;;  %v4947_v63 = vadd.f32 %v1261_v5, %v4781_v55  ;;  %v3303_v1 = vpop.f32.mrb[27].mxu0  ;;  %v900_v47 = vpop.permute.xlu0 %899 }
 0x213   :  { %v524_v29 = vadd.f32 %v486_v26, %v292_v15 }
 0x214   :  { %3853 = vtanh.bf16 %v1051_v27  ;;  %v1367_v28 = vpack.c.bf16 %v4947_v63, %v4944_v37  ;;  %v234_v11 = vpop.permute.xlu1 %233 }
 0x215   :  { %v293_v34 = vmul.f32 %v4401_v10, %v234_v11 }
 0x216   :  { %v239_v1 = vpop.permute.xlu0 %238 }
 0x219   :  { %v432_v16 = vpop.permute.xlu1 %431 }
 0x21a   :  { %v487_v59 = vmul.f32 %v4399_v9, %v432_v16  ;;  %v294_v16 = vmul.f32 %v4401_v10, %v239_v1 }
 0x21c   :  { %v525_v43 = vadd.f32 %v487_v59, %v293_v34 }
 0x21e   :  { %v660_v62 = vpop.permute.xlu1 %659  ;;  %v757_v40 = vadd.f32 %v719_v22, %v525_v43 }
 0x21f   :  { %v3854_v38 = vpop.eup %3853  ;;  %v718_v0 = vmul.f32 %v4409_v13, %v660_v62 }
 0x220   :  { %3337 = vmatmul.mubr.msk.bf16.gmra.mrb[20].mxu1 %vm1118_vm1, %v3854_v38 }
 0x221   :  { %3340 = vmatprep.mubr.msk.bf16.mxu1 %vm4058_vm0, %v5810_v24  ;;  %v756_v46 = vadd.f32 %v718_v0, %v524_v29  ;;  %v489_v0 = vmul.f32 %v4399_v9, %v4895_v32 }
 0x223   :  { %v892_v49 = vpop.permute.xlu1 %891 }
 0x224   :  { %v950_v60 = vmul.f32 %v4419_v21, %v892_v49  ;;  %v952_v49 = vmul.f32 %v4419_v21, %v900_v47 }
 0x226   :  { %v988_v33 = vadd.f32 %v950_v60, %v756_v46 }
 0x227   :  { %v896_v12 = vpop.permute.xlu1 %895 }
 0x228   :  { %v951_v23 = vmul.f32 %v4419_v21, %v896_v12  ;;  %v1030_v14 = vadd.f32 %v4454_v48, %v988_v33 }
 0x22a   :  { %v989_v52 = vadd.f32 %v951_v23, %v757_v40 }
 0x22b   :  { %v1266_v58 = vpop.f32.mrb[28].mxu0 }
 0x22c   :  { %v1031_v31 = vadd.f32 %v4454_v48, %v989_v52  ;;  %v244_v7 = vpop.permute.xlu1 %243  ;;  %v3306_v2 = vpop.f32.mrb[29].mxu0  ;;  %v4967_v44 = vadd.f32 %v1266_v58, %v4781_v55 }
 0x22d   :  { %v1269_v17 = vpop.f32.mrb[30].mxu0  ;;  %v295_v26 = vmul.f32 %v4401_v10, %v244_v7 }
 0x22e   :  { %v1052_v25 = vpack.c.bf16 %v1031_v31, %v1030_v14  ;;  %v4970_v4 = vadd.f32 %v1269_v17, %v4781_v55  ;;  %v3307_v6 = vpop.f32.mrb[31].mxu0 }
 0x22f   :  { %v527_v60 = vadd.f32 %v489_v0, %v295_v26 }
 0x230   :  { %3855 = vtanh.bf16 %v1052_v25  ;;  %v1368_v5 = vpack.c.bf16 %v4970_v4, %v4967_v44  ;;  %v254_v25 = vpop.permute.xlu0 %253 }
 0x231   :  { %v436_v27 = vpop.permute.xlu1 %435 }
 0x232   :  { %v488_v11 = vmul.f32 %v4399_v9, %v436_v27 }
 0x234   :  { %v526_v15 = vadd.f32 %v488_v11, %v294_v16  ;;  %v676_v1 = vpop.permute.xlu0 %675 }
 0x236   :  { %v668_v62 = vpop.permute.xlu1 %667 }
 0x237   :  { %v720_v38 = vmul.f32 %v4409_v13, %v668_v62 }
 0x238   :  { %v912_v26 = vpop.permute.xlu0 %911 }
 0x239   :  { %v758_v29 = vadd.f32 %v720_v38, %v526_v15  ;;  %v297_v38 = vmul.f32 %v4401_v10, %v254_v25 }
 0x23a   :  { %v672_v59 = vpop.permute.xlu1 %671 }
 0x23b   :  { %v3856_v34 = vpop.eup %3855  ;;  %v721_v43 = vmul.f32 %v4409_v13, %v672_v59  ;;  %v990_v46 = vadd.f32 %v952_v49, %v758_v29 }
 0x23c   :  { %3341 = vmatmul.mubr.msk.bf16.gmra.mrb[24].mxu1 %vm1118_vm1, %v3856_v34 }
 0x23d   :  { %3344 = vmatprep.mubr.msk.bf16.mxu1 %vm4058_vm0, %v5810_v24  ;;  %v759_v12 = vadd.f32 %v721_v43, %v527_v60  ;;  %v1032_v32 = vadd.f32 %v4454_v48, %v990_v46  ;;  %v722_v43 = vmul.f32 %v4409_v13, %v676_v1  ;;  %v955_v60 = vmul.f32 %v4419_v21, %v912_v26  ;;  %v3808_v26 = vld [vmem:[%s5795_s2 + $0x50] sm:$0xff]  }
 0x23e   :  { %3439 = vmatpush3.bf16.msra.mxu0 %v3808_v26 }
 0x23f   :  { %v904_v22 = vpop.permute.xlu1 %903  ;;  %3440 = vmatprep.subr.bf16.mxu0 %v5810_v24 }
 0x240   :  { %v953_v33 = vmul.f32 %v4419_v21, %v904_v22 }
 0x242   :  { %v991_v40 = vadd.f32 %v953_v33, %v759_v12 }
 0x243   :  { %v1274_v23 = vpop.f32.mrb[32].mxu0 }
 0x244   :  { %v1033_v52 = vadd.f32 %v4454_v48, %v991_v40  ;;  %v249_v58 = vpop.permute.xlu1 %248  ;;  %v3310_v14 = vpop.f32.mrb[33].mxu0  ;;  %v4989_v2 = vadd.f32 %v1274_v23, %v4781_v55 }
 0x245   :  { %v1277_v31 = vpop.f32.mrb[34].mxu0  ;;  %v296_v15 = vmul.f32 %v4401_v10, %v249_v58 }
 0x246   :  { %v1053_v7 = vpack.c.bf16 %v1033_v52, %v1032_v32  ;;  %v4992_v17 = vadd.f32 %v1277_v31, %v4781_v55  ;;  %v3311_v47 = vpop.f32.mrb[35].mxu0 }
 0x248   :  { %3857 = vtanh.bf16 %v1053_v7  ;;  %v1369_v6 = vpack.c.bf16 %v4992_v17, %v4989_v2 }
 0x249   :  { %v444_v27 = vpop.permute.xlu1 %443 }
 0x24a   :  { %v490_v62 = vmul.f32 %v4399_v9, %v444_v27 }
 0x24c   :  { %v528_v29 = vadd.f32 %v490_v62, %v296_v15 }
 0x24d   :  { %v448_v11 = vpop.permute.xlu1 %447 }
 0x24e   :  { %v491_v16 = vmul.f32 %v4399_v9, %v448_v11  ;;  %v760_v46 = vadd.f32 %v722_v43, %v528_v29  ;;  %v3810_v43 = vld [vmem:[%s5795_s2 + $0x60] sm:$0xff]  }
 0x250   :  { %v529_v0 = vadd.f32 %v491_v16, %v297_v38 }
 0x252   :  { %v680_v59 = vpop.permute.xlu1 %679 }
 0x253   :  { %v3858_v34 = vpop.eup %3857  ;;  %v723_v49 = vmul.f32 %v4409_v13, %v680_v59 }
 0x254   :  { %3345 = vmatmul.mubr.msk.bf16.gmra.mrb[28].mxu1 %vm1118_vm1, %v3858_v34 }
 0x255   :  { %v761_v22 = vadd.f32 %v723_v49, %v529_v0  ;;  %3348 = vmatprep.mubr.msk.bf16.mxu1 %vm4058_vm0, %v5810_v24  ;;  %v3809_v49 = vld [vmem:[%s5795_s2 + $0x58] sm:$0xff]  }
 0x256   :  { %3441 = vmatpush3.bf16.msra.mxu0 %v3809_v49 }
 0x257   :  { %v908_v9 = vpop.permute.xlu1 %907  ;;  %v993_v12 = vadd.f32 %v955_v60, %v761_v22  ;;  %3442 = vmatprep.subr.bf16.mxu0 %v5810_v24  ;;  %v3811_v60 = vld [vmem:[%s5795_s2 + $0x68] sm:$0xff]  }
 0x258   :  { %v954_v10 = vmul.f32 %v4419_v21, %v908_v9  ;;  %v3812_v9 = vld [vmem:[%s5795_s2 + $0x70] sm:$0xff]  }
 0x259   :  { %v1035_v23 = vadd.f32 %v4454_v48, %v993_v12 }
 0x25a   :  { %v992_v33 = vadd.f32 %v954_v10, %v760_v46  ;;  %3443 = vmatpush3.bf16.msra.mxu0 %v3810_v43 }
 0x25b   :  { %v1282_v40 = vpop.f32.mrb[36].mxu0  ;;  %3444 = vmatprep.subr.bf16.mxu0 %v5810_v24 }
 0x25c   :  { %v1034_v32 = vadd.f32 %v4454_v48, %v992_v33  ;;  %v3314_v13 = vpop.f32.mrb[37].mxu0  ;;  %v1283_v14 = vadd.f32 %v1282_v40, %v4781_v55 }
 0x25d   :  { %v1285_v52 = vpop.f32.mrb[38].mxu0 }
 0x25e   :  { %v1054_v58 = vpack.c.bf16 %v1035_v23, %v1034_v32  ;;  %v1286_v31 = vadd.f32 %v1285_v52, %v4781_v55  ;;  %v3315_v7 = vpop.f32.mrb[39].mxu0  ;;  %3445 = vmatpush3.bf16.msra.mxu0 %v3811_v60 }
 0x25f   :  { %3446 = vmatprep.subr.bf16.mxu0 %v5810_v24 }
 0x260   :  { %3859 = vtanh.bf16 %v1054_v58  ;;  %v1370_v47 = vpack.c.bf16 %v1286_v31, %v1283_v14 }
 0x261   :  { %3861 = vtanh.bf16 %v1361_v56 }
 0x262   :  { %3863 = vtanh.bf16 %v1362_v51  ;;  %3447 = vmatpush3.bf16.msra.mxu0 %v3812_v9 }
 0x263   :  { %3865 = vtanh.bf16 %v1363_v18  ;;  %3610 = vmatprep.subr.bf16.mxu0 %v5810_v24 }
 0x264   :  { %3867 = vtanh.bf16 %v1364_v3 }
 0x265   :  { %3869 = vtanh.bf16 %v1365_v19 }
 0x266   :  { %3871 = vtanh.bf16 %v1366_v57 }
 0x267   :  { %3873 = vtanh.bf16 %v1367_v28 }
 0x268   :  { %3875 = vtanh.bf16 %v1368_v5 }
 0x269   :  { %3877 = vtanh.bf16 %v1369_v6 }
 0x26a   :  { %3879 = vtanh.bf16 %v1370_v47 }
 0x26b   :  { %v3860_v21 = vpop.eup %3859 }
 0x26c   :  { %3349 = vmatmul.mubr.msk.bf16.gmra.mrb[32].mxu1 %vm1118_vm1, %v3860_v21  ;;  %v3862_v48 = vpop.eup %3861 }
 0x26d   :  { %3362 = vmatprep.mubr.msk.bf16.mxu1 %vm4058_vm0, %v5810_v24  ;;  %v3864_v50 = vpop.eup %3863 }
 0x26e   :  { %v3866_v51 = vpop.eup %3865 }
 0x26f   :  { %v3868_v20 = vpop.eup %3867 }
 0x270   :  { %v3870_v42 = vpop.eup %3869 }
 0x271   :  { %v3872_v19 = vpop.eup %3871 }
 0x272   :  { %v3874_v36 = vpop.eup %3873 }
 0x273   :  { %v3876_v44 = vpop.eup %3875 }
 0x274   :  { %3363 = vmatmul.mubr.msk.bf16.vlgmr.msra.gmra.mrb[36].mxu1 %vm1118_vm1, %v3862_v48  ;;  %v3878_v5 = vpop.eup %3877 }
 0x275   :  { %3366 = vmatprep.mubr.msk.bf16.mxu1 %vm4058_vm0, %v5810_v24  ;;  %v3880_v2 = vpop.eup %3879 }
 0x277   :  { %v1290_v25 = vpop.f32.mrb[0].mxu1 }
 0x278   :  { %v3318_v35 = vpop.f32.mrb[1].mxu1  ;;  %v1291_v56 = vadd.f32 %v1290_v25, %v4781_v55 }
 0x279   :  { %v1293_v53 = vpop.f32.mrb[2].mxu1 }
 0x27a   :  { %v1294_v27 = vadd.f32 %v1293_v53, %v4781_v55  ;;  %v3319_v1 = vpop.f32.mrb[3].mxu1 }
 0x27c   :  { %v1371_v54 = vpack.c.bf16 %v1294_v27, %v1291_v56  ;;  %3367 = vmatmul.mubr.msk.bf16.gmra.mrb[40].mxu1 %vm1118_vm1, %v3864_v50 }
 0x27d   :  { %3370 = vmatprep.mubr.msk.bf16.mxu1 %vm4058_vm0, %v5810_v24 }
 0x27e   :  { %3881 = vtanh.bf16 %v1371_v54 }
 0x284   :  { %3371 = vmatmul.mubr.msk.bf16.gmra.mrb[44].mxu1 %vm1118_vm1, %v3866_v51 }
 0x285   :  { %3374 = vmatprep.mubr.msk.bf16.mxu1 %vm4058_vm0, %v5810_v24 }
 0x289   :  { %v3882_v17 = vpop.eup %3881 }
 0x28c   :  { %3375 = vmatmul.mubr.msk.bf16.gmra.mrb[48].mxu1 %vm1118_vm1, %v3868_v20 }
 0x28d   :  { %3378 = vmatprep.mubr.msk.bf16.mxu1 %vm4058_vm0, %v5810_v24 }
 0x28f   :  { %v1298_v39 = vpop.f32.mrb[4].mxu1 }
 0x290   :  { %v3322_v18 = vpop.f32.mrb[5].mxu1  ;;  %v1299_v41 = vadd.f32 %v1298_v39, %v4781_v55 }
 0x291   :  { %v1301_v45 = vpop.f32.mrb[6].mxu1 }
 0x292   :  { %v1302_v3 = vadd.f32 %v1301_v45, %v4781_v55  ;;  %v3323_v11 = vpop.f32.mrb[7].mxu1 }
 0x294   :  { %v1372_v8 = vpack.c.bf16 %v1302_v3, %v1299_v41  ;;  %3379 = vmatmul.mubr.msk.bf16.gmra.mrb[52].mxu1 %vm1118_vm1, %v3870_v42 }
 0x295   :  { %3382 = vmatprep.mubr.msk.bf16.mxu1 %vm4058_vm0, %v5810_v24 }
 0x296   :  { %3883 = vtanh.bf16 %v1372_v8 }
 0x29c   :  { %3383 = vmatmul.mubr.msk.bf16.gmra.mrb[56].mxu1 %vm1118_vm1, %v3872_v19 }
 0x29d   :  { %3386 = vmatprep.mubr.msk.bf16.mxu1 %vm4058_vm0, %v5810_v24 }
 0x2a1   :  { %v3884_v29 = vpop.eup %3883 }
 0x2a4   :  { %3387 = vmatmul.mubr.msk.bf16.gmra.mrb[60].mxu1 %vm1118_vm1, %v3874_v36 }
 0x2a5   :  { %3390 = vmatprep.mubr.msk.bf16.mxu1 %vm4058_vm0, %v5810_v24 }
 0x2a7   :  { %v1306_v30 = vpop.f32.mrb[8].mxu1 }
 0x2a8   :  { %v3326_v57 = vpop.f32.mrb[9].mxu1  ;;  %v1307_v63 = vadd.f32 %v1306_v30, %v4781_v55 }
 0x2a9   :  { %v1309_v37 = vpop.f32.mrb[10].mxu1 }
 0x2aa   :  { %v1310_v28 = vadd.f32 %v1309_v37, %v4781_v55  ;;  %v3327_v16 = vpop.f32.mrb[11].mxu1 }
 0x2ab   :  { %v5814_v16 = vsub.s32 2, %v4381_v61 }
 0x2ac   :  { %v1373_v4 = vpack.c.bf16 %v1310_v28, %v1307_v63  ;;  %3391 = vmatmul.mubr.msk.bf16.gmra.mrb[64].mxu1 %vm1118_vm1, %v3876_v44  ;;  %v5136_v28 = vld [vmem:[%s5797_s4] sm:$0x3f] }
 0x2ad   :  { %3394 = vmatprep.mubr.msk.bf16.mxu1 %vm4058_vm0, %v5810_v24  ;;  %v5141_v44 = vrot.slane %v5136_v28, %v5814_v16 }
 0x2ae   :  { %3885 = vtanh.bf16 %v1373_v4 }
 0x2b4   :  { %3395 = vmatmul.mubr.msk.bf16.gmra.mrb[68].mxu1 %vm1118_vm1, %v3878_v5 }
 0x2b5   :  { %3398 = vmatprep.mubr.msk.bf16.mxu1 %vm4058_vm0, %v5810_v24 }
 0x2b9   :  { %v3886_v22 = vpop.eup %3885 }
 0x2bc   :  { %3399 = vmatmul.mubr.msk.bf16.gmra.mrb[72].mxu1 %vm1118_vm1, %v3880_v2 }
 0x2bd   :  { %3402 = vmatprep.mubr.msk.bf16.mxu1 %vm4058_vm0, %v5810_v24 }
 0x2c3   :  { %v1314_v6 = vpop.f32.mrb[12].mxu1 }
 0x2c4   :  { %v3330_v62 = vpop.f32.mrb[13].mxu1  ;;  %3403 = vmatmul.mubr.msk.bf16.gmra.mrb[76].mxu1 %vm1118_vm1, %v3882_v17  ;;  %v1315_v15 = vadd.f32 %v1314_v6, %v4781_v55 }
 0x2c5   :  { %v1317_v38 = vpop.f32.mrb[14].mxu1  ;;  %3406 = vmatprep.mubr.msk.bf16.mxu1 %vm4058_vm0, %v5810_v24 }
 0x2c6   :  { %v1318_v59 = vadd.f32 %v1317_v38, %v4781_v55  ;;  %v3331_v34 = vpop.f32.mrb[15].mxu1 }
 0x2c8   :  { %v1374_v0 = vpack.c.bf16 %v1318_v59, %v1315_v15 }
 0x2ca   :  { %3887 = vtanh.bf16 %v1374_v0 }
 0x2cc   :  { %3407 = vmatmul.mubr.msk.bf16.gmra.mrb[80].mxu1 %vm1118_vm1, %v3884_v29 }
 0x2cd   :  { %3410 = vmatprep.mubr.msk.bf16.mxu1 %vm4058_vm0, %v5810_v24 }
 0x2d4   :  { %3411 = vmatmul.mubr.msk.bf16.gmra.mrb[84].mxu1 %vm1118_vm1, %v3886_v22 }
 0x2d5   :  { %3414 = vmatprep.mubr.msk.bf16.mxu1 %vm4058_vm0, %v5810_v24  ;;  %v3888_v46 = vpop.eup %3887 }
 0x2db   :  { %v1322_v12 = vpop.f32.mrb[16].mxu1 }
 0x2dc   :  { %v3334_v10 = vpop.f32.mrb[17].mxu1  ;;  %3415 = vmatmul.mubr.msk.bf16.gmra.mrb[88].mxu1 %vm1118_vm1, %v3888_v46  ;;  %v1323_v40 = vadd.f32 %v1322_v12, %v4781_v55 }
 0x2dd   :  { %v1325_v33 = vpop.f32.mrb[18].mxu1  ;;  %3418 = vmatprep.mubr.msk.bf16.mxu1 %vm4058_vm0, %v5810_v24 }
 0x2de   :  { %v1326_v23 = vadd.f32 %v1325_v33, %v4781_v55  ;;  %v3335_v32 = vpop.f32.mrb[19].mxu1 }
 0x2e0   :  { %v1375_v13 = vpack.c.bf16 %v1326_v23, %v1323_v40 }
 0x2e2   :  { %3889 = vtanh.bf16 %v1375_v13 }
 0x2ed   :  { %v3890_v52 = vpop.eup %3889 }
 0x2ee   :  { %3419 = vmatmul.mubr.msk.bf16.gmra.mrb[92].mxu1 %vm1118_vm1, %v3890_v52 }
 0x2ef   :  { %3422 = vmatprep.mubr.msk.bf16.mxu1 %vm4058_vm0, %v5810_v24 }
 0x2f3   :  { %v1330_v58 = vpop.f32.mrb[20].mxu1 }
 0x2f4   :  { %v3338_v14 = vpop.f32.mrb[21].mxu1  ;;  %v1331_v7 = vadd.f32 %v1330_v58, %v4781_v55 }
 0x2f5   :  { %v1333_v31 = vpop.f32.mrb[22].mxu1 }
 0x2f6   :  { %v1334_v47 = vadd.f32 %v1333_v31, %v4781_v55  ;;  %v3339_v21 = vpop.f32.mrb[23].mxu1 }
 0x2f8   :  { %v1376_v48 = vpack.c.bf16 %v1334_v47, %v1331_v7 }
 0x2fa   :  { %3891 = vtanh.bf16 %v1376_v48 }
 0x305   :  { %v3892_v25 = vpop.eup %3891 }
 0x306   :  { %3423 = vmatmul.mubr.msk.bf16.gmra.mrb[96].mxu1 %vm1118_vm1, %v3892_v25 }
 0x307   :  { %3426 = vmatprep.mubr.msk.bf16.mxu1 %vm4058_vm0, %v5810_v24 }
 0x30f   :  { %v1338_v35 = vpop.f32.mrb[24].mxu1 }
 0x310   :  { %v3342_v53 = vpop.f32.mrb[25].mxu1  ;;  %v1339_v27 = vadd.f32 %v1338_v35, %v4781_v55 }
 0x311   :  { %v1341_v56 = vpop.f32.mrb[26].mxu1 }
 0x312   :  { %v1342_v1 = vadd.f32 %v1341_v56, %v4781_v55  ;;  %v3343_v50 = vpop.f32.mrb[27].mxu1 }
 0x314   :  { %v1377_v54 = vpack.c.bf16 %v1342_v1, %v1339_v27 }
 0x316   :  { %3893 = vtanh.bf16 %v1377_v54 }
 0x321   :  { %v3894_v51 = vpop.eup %3893 }
 0x322   :  { %3427 = vmatmul.mubr.msk.bf16.gmra.mrb[100].mxu1 %vm1118_vm1, %v3894_v51 }
 0x323   :  { %3430 = vmatprep.mubr.msk.bf16.mxu1 %vm4058_vm0, %v5810_v24 }
 0x327   :  { %v1346_v20 = vpop.f32.mrb[28].mxu1 }
 0x328   :  { %v3346_v39 = vpop.f32.mrb[29].mxu1  ;;  %v1347_v45 = vadd.f32 %v1346_v20, %v4781_v55 }
 0x329   :  { %v1349_v18 = vpop.f32.mrb[30].mxu1 }
 0x32a   :  { %v1350_v41 = vadd.f32 %v1349_v18, %v4781_v55  ;;  %v3347_v3 = vpop.f32.mrb[31].mxu1 }
 0x32c   :  { %v1378_v11 = vpack.c.bf16 %v1350_v41, %v1347_v45  ;;  %v3813_v45 = vld [vmem:[%s5795_s2 + $0x78] sm:$0xff]  }
 0x32d   :  { %3525 = vmatpush3.bf16.msra.mxu1 %v3813_v45 }
 0x32e   :  { %3895 = vtanh.bf16 %v1378_v11  ;;  %3526 = vmatprep.subr.bf16.mxu1 %v5810_v24 }
 0x339   :  { %v3896_v42 = vpop.eup %3895 }
 0x33a   :  { %3431 = vmatmul.mubr.msk.bf16.gmra.mrb[104].mxu1 %vm1118_vm1, %v3896_v42 }
 0x33b   :  { %3434 = vmatprep.mubr.msk.bf16.mxu1 %vm4058_vm0, %v5810_v24 }
 0x33f   :  { %v1354_v8 = vpop.f32.mrb[32].mxu1 }
 0x340   :  { %v3350_v19 = vpop.f32.mrb[33].mxu1  ;;  %v1355_v30 = vadd.f32 %v1354_v8, %v4781_v55 }
 0x341   :  { %v1357_v36 = vpop.f32.mrb[34].mxu1 }
 0x342   :  { %v1358_v57 = vadd.f32 %v1357_v36, %v4781_v55  ;;  %v3351_v37 = vpop.f32.mrb[35].mxu1 }
 0x344   :  { %v1379_v63 = vpack.c.bf16 %v1358_v57, %v1355_v30 }
 0x346   :  { %3897 = vtanh.bf16 %v1379_v63 }
 0x347   :  { %v1535_v4 = vpop.f32.mrb[36].mxu1 }
 0x348   :  { %v3364_v5 = vpop.f32.mrb[37].mxu1  ;;  %v1536_v17 = vadd.f32 %v1535_v4, %v5141_v44 }
 0x349   :  { %v1538_v2 = vpop.f32.mrb[38].mxu1 }
 0x34a   :  { %v1539_v55 = vadd.f32 %v1538_v2, %v5141_v44  ;;  %v3365_v6 = vpop.f32.mrb[39].mxu1 }
 0x34c   :  { %v1686_v62 = vpack.c.bf16 %v1539_v55, %v1536_v17 }
 0x34e   :  { %3899 = vtanh.bf16 %v1686_v62 }
 0x34f   :  { %v1543_v38 = vpop.f32.mrb[40].mxu1 }
 0x350   :  { %v3368_v26 = vpop.f32.mrb[41].mxu1  ;;  %v1544_v34 = vadd.f32 %v1543_v38, %v5141_v44 }
 0x351   :  { %v3898_v15 = vpop.eup %3897  ;;  %v1546_v59 = vpop.f32.mrb[42].mxu1 }
 0x352   :  { %v1547_v0 = vadd.f32 %v1546_v59, %v5141_v44  ;;  %v3369_v49 = vpop.f32.mrb[43].mxu1  ;;  %3435 = vmatmul.mubr.msk.bf16.gmra.mrb[108].mxu1 %vm1118_vm1, %v3898_v15 }
 0x353   :  { %3534 = vmatprep.mubr.msk.bf16.mxu1 %vm4058_vm0, %v5810_v24 }
 0x354   :  { %v1687_v29 = vpack.c.bf16 %v1547_v0, %v1544_v34 }
 0x356   :  { %3901 = vtanh.bf16 %v1687_v29 }
 0x357   :  { %v1551_v43 = vpop.f32.mrb[44].mxu1 }
 0x358   :  { %v3372_v60 = vpop.f32.mrb[45].mxu1  ;;  %v1552_v46 = vadd.f32 %v1551_v43, %v5141_v44 }
 0x359   :  { %v3900_v22 = vpop.eup %3899  ;;  %v1554_v9 = vpop.f32.mrb[46].mxu1 }
 0x35a   :  { %v1555_v12 = vadd.f32 %v1554_v9, %v5141_v44  ;;  %v3373_v10 = vpop.f32.mrb[47].mxu1  ;;  %3449 = vmatmul.mubr.msk.bf16.vlgmr.msra.gmra.mrb[40].mxu0 %vm1118_vm1, %v3900_v22 }
 0x35b   :  { %3452 = vmatprep.mubr.msk.bf16.mxu0 %vm4058_vm0, %v5810_v24 }
 0x35c   :  { %v1688_v33 = vpack.c.bf16 %v1555_v12, %v1552_v46  ;;  %v3814_v12 = vld [vmem:[%s5795_s2 + $0x80] sm:$0xff]  }
 0x35d   :  { %3527 = vmatpush3.bf16.msra.mxu1 %v3814_v12 }
 0x35e   :  { %3903 = vtanh.bf16 %v1688_v33  ;;  %3528 = vmatprep.subr.bf16.mxu1 %v5810_v24 }
 0x35f   :  { %v1559_v40 = vpop.f32.mrb[48].mxu1 }
 0x360   :  { %v3376_v23 = vpop.f32.mrb[49].mxu1  ;;  %v1560_v52 = vadd.f32 %v1559_v40, %v5141_v44 }
 0x361   :  { %v3902_v32 = vpop.eup %3901  ;;  %v1562_v13 = vpop.f32.mrb[50].mxu1 }
 0x362   :  { %v1563_v58 = vadd.f32 %v1562_v13, %v5141_v44  ;;  %v3377_v14 = vpop.f32.mrb[51].mxu1  ;;  %3453 = vmatmul.mubr.msk.bf16.gmra.mrb[44].mxu0 %vm1118_vm1, %v3902_v32 }
 0x363   :  { %3456 = vmatprep.mubr.msk.bf16.mxu0 %vm4058_vm0, %v5810_v24 }
 0x364   :  { %v1689_v31 = vpack.c.bf16 %v1563_v58, %v1560_v52 }
 0x366   :  { %3905 = vtanh.bf16 %v1689_v31 }
 0x367   :  { %v1567_v7 = vpop.f32.mrb[52].mxu1 }
 0x368   :  { %v3380_v47 = vpop.f32.mrb[53].mxu1  ;;  %v1568_v25 = vadd.f32 %v1567_v7, %v5141_v44 }
 0x369   :  { %v3904_v21 = vpop.eup %3903  ;;  %v1570_v48 = vpop.f32.mrb[54].mxu1 }
 0x36a   :  { %v1571_v35 = vadd.f32 %v1570_v48, %v5141_v44  ;;  %v3381_v53 = vpop.f32.mrb[55].mxu1  ;;  %3457 = vmatmul.mubr.msk.bf16.gmra.mrb[48].mxu0 %vm1118_vm1, %v3904_v21 }
 0x36b   :  { %3460 = vmatprep.mubr.msk.bf16.mxu0 %vm4058_vm0, %v5810_v24 }
 0x36c   :  { %v1690_v56 = vpack.c.bf16 %v1571_v35, %v1568_v25 }
 0x36e   :  { %3907 = vtanh.bf16 %v1690_v56 }
 0x36f   :  { %v1575_v27 = vpop.f32.mrb[56].mxu1 }
 0x370   :  { %v3384_v1 = vpop.f32.mrb[57].mxu1  ;;  %v1576_v51 = vadd.f32 %v1575_v27, %v5141_v44 }
 0x371   :  { %v3906_v50 = vpop.eup %3905  ;;  %v1578_v54 = vpop.f32.mrb[58].mxu1 }
 0x372   :  { %v1579_v20 = vadd.f32 %v1578_v54, %v5141_v44  ;;  %v3385_v39 = vpop.f32.mrb[59].mxu1  ;;  %3461 = vmatmul.mubr.msk.bf16.gmra.mrb[52].mxu0 %vm1118_vm1, %v3906_v50 }
 0x373   :  { %3464 = vmatprep.mubr.msk.bf16.mxu0 %vm4058_vm0, %v5810_v24 }
 0x374   :  { %v1691_v18 = vpack.c.bf16 %v1579_v20, %v1576_v51 }
 0x376   :  { %3909 = vtanh.bf16 %v1691_v18 }
 0x377   :  { %v1583_v41 = vpop.f32.mrb[60].mxu1 }
 0x378   :  { %v3388_v3 = vpop.f32.mrb[61].mxu1  ;;  %v1584_v8 = vadd.f32 %v1583_v41, %v5141_v44 }
 0x379   :  { %v3908_v11 = vpop.eup %3907  ;;  %v1586_v42 = vpop.f32.mrb[62].mxu1 }
 0x37a   :  { %v1587_v19 = vadd.f32 %v1586_v42, %v5141_v44  ;;  %v3389_v36 = vpop.f32.mrb[63].mxu1  ;;  %3465 = vmatmul.mubr.msk.bf16.gmra.mrb[56].mxu0 %vm1118_vm1, %v3908_v11 }
 0x37b   :  { %3468 = vmatprep.mubr.msk.bf16.mxu0 %vm4058_vm0, %v5810_v24  ;;  %v3816_v36 = vld [vmem:[%s5795_s2 + $0x90] sm:$0xff]  }
 0x37c   :  { %v1692_v30 = vpack.c.bf16 %v1587_v19, %v1584_v8  ;;  %v3815_v8 = vld [vmem:[%s5795_s2 + $0x88] sm:$0xff]  }
 0x37d   :  { %3529 = vmatpush3.bf16.msra.mxu1 %v3815_v8 }
 0x37e   :  { %3911 = vtanh.bf16 %v1692_v30  ;;  %3530 = vmatprep.subr.bf16.mxu1 %v5810_v24 }
 0x37f   :  { %v1591_v57 = vpop.f32.mrb[64].mxu1 }
 0x380   :  { %v3392_v37 = vpop.f32.mrb[65].mxu1  ;;  %v1592_v4 = vadd.f32 %v1591_v57, %v5141_v44  ;;  %v3817_v57 = vld [vmem:[%s5795_s2 + $0x98] sm:$0xff]  }
 0x381   :  { %v3910_v63 = vpop.eup %3909  ;;  %v1594_v16 = vpop.f32.mrb[66].mxu1  ;;  %3531 = vmatpush3.bf16.msra.mxu1 %v3816_v36 }
 0x382   :  { %v1595_v5 = vadd.f32 %v1594_v16, %v5141_v44  ;;  %v3393_v2 = vpop.f32.mrb[67].mxu1  ;;  %3469 = vmatmul.mubr.msk.bf16.gmra.mrb[60].mxu0 %vm1118_vm1, %v3910_v63  ;;  %3532 = vmatprep.subr.bf16.mxu1 %v5810_v24 }
 0x383   :  { %3472 = vmatprep.mubr.msk.bf16.mxu0 %vm4058_vm0, %v5810_v24 }
 0x384   :  { %v1693_v17 = vpack.c.bf16 %v1595_v5, %v1592_v4 }
 0x385   :  { %3533 = vmatpush3.bf16.msra.mxu1 %v3817_v57 }
 0x386   :  { %3913 = vtanh.bf16 %v1693_v17 }
 0x387   :  { %v1599_v55 = vpop.f32.mrb[68].mxu1 }
 0x388   :  { %v3396_v6 = vpop.f32.mrb[69].mxu1  ;;  %v1600_v26 = vadd.f32 %v1599_v55, %v5141_v44 }
 0x389   :  { %v3912_v62 = vpop.eup %3911  ;;  %v1602_v38 = vpop.f32.mrb[70].mxu1 }
 0x38a   :  { %v1603_v15 = vadd.f32 %v1602_v38, %v5141_v44  ;;  %v3397_v59 = vpop.f32.mrb[71].mxu1  ;;  %3473 = vmatmul.mubr.msk.bf16.gmra.mrb[64].mxu0 %vm1118_vm1, %v3912_v62 }
 0x38b   :  { %3476 = vmatprep.mubr.msk.bf16.mxu0 %vm4058_vm0, %v5810_v24 }
 0x38c   :  { %v1694_v34 = vpack.c.bf16 %v1603_v15, %v1600_v26 }
 0x38e   :  { %3915 = vtanh.bf16 %v1694_v34 }
 0x38f   :  { %v1607_v0 = vpop.f32.mrb[72].mxu1 }
 0x390   :  { %v3400_v49 = vpop.f32.mrb[73].mxu1  ;;  %v1608_v60 = vadd.f32 %v1607_v0, %v5141_v44 }
 0x391   :  { %v3914_v29 = vpop.eup %3913  ;;  %v1610_v43 = vpop.f32.mrb[74].mxu1 }
 0x392   :  { %v1611_v22 = vadd.f32 %v1610_v43, %v5141_v44  ;;  %v3401_v9 = vpop.f32.mrb[75].mxu1  ;;  %3477 = vmatmul.mubr.msk.bf16.gmra.mrb[68].mxu0 %vm1118_vm1, %v3914_v29 }
 0x393   :  { %3480 = vmatprep.mubr.msk.bf16.mxu0 %vm4058_vm0, %v5810_v24 }
 0x394   :  { %v1695_v46 = vpack.c.bf16 %v1611_v22, %v1608_v60 }
 0x396   :  { %3917 = vtanh.bf16 %v1695_v46 }
 0x397   :  { %v1615_v10 = vpop.f32.mrb[76].mxu1 }
 0x398   :  { %v3404_v33 = vpop.f32.mrb[77].mxu1  ;;  %v1616_v32 = vadd.f32 %v1615_v10, %v5141_v44 }
 0x399   :  { %v3916_v40 = vpop.eup %3915  ;;  %v1618_v23 = vpop.f32.mrb[78].mxu1 }
 0x39a   :  { %v1619_v13 = vadd.f32 %v1618_v23, %v5141_v44  ;;  %v3405_v52 = vpop.f32.mrb[79].mxu1  ;;  %3481 = vmatmul.mubr.msk.bf16.gmra.mrb[72].mxu0 %vm1118_vm1, %v3916_v40 }
 0x39b   :  { %3484 = vmatprep.mubr.msk.bf16.mxu0 %vm4058_vm0, %v5810_v24 }
 0x39c   :  { %v1696_v58 = vpack.c.bf16 %v1619_v13, %v1616_v32 }
 0x39e   :  { %3919 = vtanh.bf16 %v1696_v58 }
 0x39f   :  { %v1623_v14 = vpop.f32.mrb[80].mxu1 }
 0x3a0   :  { %v3408_v31 = vpop.f32.mrb[81].mxu1  ;;  %v1624_v21 = vadd.f32 %v1623_v14, %v5141_v44 }
 0x3a1   :  { %v3918_v7 = vpop.eup %3917  ;;  %v1626_v47 = vpop.f32.mrb[82].mxu1 }
 0x3a2   :  { %v1627_v48 = vadd.f32 %v1626_v47, %v5141_v44  ;;  %v3409_v25 = vpop.f32.mrb[83].mxu1  ;;  %3485 = vmatmul.mubr.msk.bf16.gmra.mrb[76].mxu0 %vm1118_vm1, %v3918_v7 }
 0x3a3   :  { %3488 = vmatprep.mubr.msk.bf16.mxu0 %vm4058_vm0, %v5810_v24 }
 0x3a4   :  { %v1697_v35 = vpack.c.bf16 %v1627_v48, %v1624_v21 }
 0x3a6   :  { %3921 = vtanh.bf16 %v1697_v35 }
 0x3a7   :  { %v1631_v53 = vpop.f32.mrb[84].mxu1 }
 0x3a8   :  { %v3412_v56 = vpop.f32.mrb[85].mxu1  ;;  %v1632_v50 = vadd.f32 %v1631_v53, %v5141_v44  ;;  %v5815_v53 = vsub.s32 3, %v4381_v61 }
 0x3a9   :  { %v3920_v27 = vpop.eup %3919  ;;  %v1634_v1 = vpop.f32.mrb[86].mxu1 }
 0x3aa   :  { %v1635_v54 = vadd.f32 %v1634_v1, %v5141_v44  ;;  %v3413_v51 = vpop.f32.mrb[87].mxu1  ;;  %3489 = vmatmul.mubr.msk.bf16.gmra.mrb[80].mxu0 %vm1118_vm1, %v3920_v27  ;;  %v5260_v56 = vrot.slane %v5136_v28, %v5815_v53 }
 0x3ab   :  { %3492 = vmatprep.mubr.msk.bf16.mxu0 %vm4058_vm0, %v5810_v24 }
 0x3ac   :  { %v1698_v20 = vpack.c.bf16 %v1635_v54, %v1632_v50 }
 0x3ae   :  { %3923 = vtanh.bf16 %v1698_v20 }
 0x3af   :  { %v1639_v39 = vpop.f32.mrb[88].mxu1 }
 0x3b0   :  { %v3416_v18 = vpop.f32.mrb[89].mxu1  ;;  %v1640_v3 = vadd.f32 %v1639_v39, %v5141_v44 }
 0x3b1   :  { %v3922_v45 = vpop.eup %3921  ;;  %v1642_v41 = vpop.f32.mrb[90].mxu1 }
 0x3b2   :  { %v1643_v11 = vadd.f32 %v1642_v41, %v5141_v44  ;;  %v3417_v42 = vpop.f32.mrb[91].mxu1  ;;  %3493 = vmatmul.mubr.msk.bf16.gmra.mrb[84].mxu0 %vm1118_vm1, %v3922_v45 }
 0x3b3   :  { %3496 = vmatprep.mubr.msk.bf16.mxu0 %vm4058_vm0, %v5810_v24 }
 0x3b4   :  { %v1699_v19 = vpack.c.bf16 %v1643_v11, %v1640_v3 }
 0x3b6   :  { %3925 = vtanh.bf16 %v1699_v19 }
 0x3b9   :  { %v3924_v30 = vpop.eup %3923 }
 0x3ba   :  { %3497 = vmatmul.mubr.msk.bf16.gmra.mrb[88].mxu0 %vm1118_vm1, %v3924_v30 }
 0x3bb   :  { %3500 = vmatprep.mubr.msk.bf16.mxu0 %vm4058_vm0, %v5810_v24 }
 0x3c1   :  { %v3926_v37 = vpop.eup %3925  ;;  %v1647_v63 = vpop.f32.mrb[92].mxu1 }
 0x3c2   :  { %v3420_v16 = vpop.f32.mrb[93].mxu1  ;;  %3501 = vmatmul.mubr.msk.bf16.gmra.mrb[92].mxu0 %vm1118_vm1, %v3926_v37  ;;  %v1648_v5 = vadd.f32 %v1647_v63, %v5141_v44 }
 0x3c3   :  { %v1650_v4 = vpop.f32.mrb[94].mxu1  ;;  %3504 = vmatprep.mubr.msk.bf16.mxu0 %vm4058_vm0, %v5810_v24 }
 0x3c4   :  { %v1651_v2 = vadd.f32 %v1650_v4, %v5141_v44  ;;  %v3421_v17 = vpop.f32.mrb[95].mxu1 }
 0x3c6   :  { %v1700_v55 = vpack.c.bf16 %v1651_v2, %v1648_v5 }
 0x3c8   :  { %3927 = vtanh.bf16 %v1700_v55 }
 0x3d3   :  { %v3928_v6 = vpop.eup %3927 }
 0x3d4   :  { %3505 = vmatmul.mubr.msk.bf16.gmra.mrb[96].mxu0 %vm1118_vm1, %v3928_v6 }
 0x3d5   :  { %3508 = vmatprep.mubr.msk.bf16.mxu0 %vm4058_vm0, %v5810_v24 }
 0x3d9   :  { %v1655_v62 = vpop.f32.mrb[96].mxu1 }
 0x3da   :  { %v3424_v38 = vpop.f32.mrb[97].mxu1  ;;  %v1656_v15 = vadd.f32 %v1655_v62, %v5141_v44 }
 0x3db   :  { %v1658_v26 = vpop.f32.mrb[98].mxu1 }
 0x3dc   :  { %v1659_v59 = vadd.f32 %v1658_v26, %v5141_v44  ;;  %v3425_v34 = vpop.f32.mrb[99].mxu1 }
 0x3de   :  { %v1701_v0 = vpack.c.bf16 %v1659_v59, %v1656_v15 }
 0x3e0   :  { %3929 = vtanh.bf16 %v1701_v0 }
 0x3eb   :  { %v3930_v49 = vpop.eup %3929 }
 0x3ec   :  { %3509 = vmatmul.mubr.msk.bf16.gmra.mrb[100].mxu0 %vm1118_vm1, %v3930_v49 }
 0x3ed   :  { %3512 = vmatprep.mubr.msk.bf16.mxu0 %vm4058_vm0, %v5810_v24 }
 0x3f5   :  { %v1663_v29 = vpop.f32.mrb[100].mxu1 }
 0x3f6   :  { %v3428_v43 = vpop.f32.mrb[101].mxu1  ;;  %v1664_v22 = vadd.f32 %v1663_v29, %v5141_v44 }
 0x3f7   :  { %v1666_v60 = vpop.f32.mrb[102].mxu1 }
 0x3f8   :  { %v1667_v9 = vadd.f32 %v1666_v60, %v5141_v44  ;;  %v3429_v46 = vpop.f32.mrb[103].mxu1 }
 0x3fa   :  { %v1702_v12 = vpack.c.bf16 %v1667_v9, %v1664_v22 }
 0x3fc   :  { %3931 = vtanh.bf16 %v1702_v12 }
 0x407   :  { %v3932_v10 = vpop.eup %3931 }
 0x408   :  { %3513 = vmatmul.mubr.msk.bf16.gmra.mrb[104].mxu0 %vm1118_vm1, %v3932_v10 }
 0x409   :  { %3516 = vmatprep.mubr.msk.bf16.mxu0 %vm4058_vm0, %v5810_v24 }
 0x40d   :  { %v1671_v33 = vpop.f32.mrb[104].mxu1 }
 0x40e   :  { %v3432_v40 = vpop.f32.mrb[105].mxu1  ;;  %v1672_v32 = vadd.f32 %v1671_v33, %v5141_v44 }
 0x40f   :  { %v1674_v23 = vpop.f32.mrb[106].mxu1 }
 0x410   :  { %v1675_v13 = vadd.f32 %v1674_v23, %v5141_v44  ;;  %v3433_v52 = vpop.f32.mrb[107].mxu1 }
 0x412   :  { %v1703_v58 = vpack.c.bf16 %v1675_v13, %v1672_v32  ;;  %v3818_v32 = vld [vmem:[%s5795_s2 + $0xa0] sm:$0xff]  }
 0x413   :  { %3611 = vmatpush3.bf16.msra.mxu0 %v3818_v32 }
 0x414   :  { %3933 = vtanh.bf16 %v1703_v58  ;;  %3612 = vmatprep.subr.bf16.mxu0 %v5810_v24 }
 0x41f   :  { %v3934_v14 = vpop.eup %3933 }
 0x420   :  { %3517 = vmatmul.mubr.msk.bf16.gmra.mrb[108].mxu0 %vm1118_vm1, %v3934_v14 }
 0x421   :  { %3520 = vmatprep.mubr.msk.bf16.mxu0 %vm4058_vm0, %v5810_v24 }
 0x425   :  { %v1679_v31 = vpop.f32.mrb[108].mxu1 }
 0x426   :  { %v3436_v7 = vpop.f32.mrb[109].mxu1  ;;  %v1680_v21 = vadd.f32 %v1679_v31, %v5141_v44 }
 0x427   :  { %v1682_v47 = vpop.f32.mrb[110].mxu1 }
 0x428   :  { %v1683_v48 = vadd.f32 %v1682_v47, %v5141_v44  ;;  %v3437_v25 = vpop.f32.mrb[111].mxu1 }
 0x42a   :  { %v1704_v35 = vpack.c.bf16 %v1683_v48, %v1680_v21 }
 0x42c   :  { %3935 = vtanh.bf16 %v1704_v35 }
 0x42d   :  { %v1860_v27 = vpop.f32.mrb[40].mxu0 }
 0x42e   :  { %v3450_v1 = vpop.f32.mrb[41].mxu0  ;;  %v1861_v54 = vadd.f32 %v1860_v27, %v5260_v56 }
 0x42f   :  { %v1863_v50 = vpop.f32.mrb[42].mxu0 }
 0x430   :  { %v1864_v51 = vadd.f32 %v1863_v50, %v5260_v56  ;;  %v3451_v20 = vpop.f32.mrb[43].mxu0 }
 0x432   :  { %v2011_v39 = vpack.c.bf16 %v1864_v51, %v1861_v54 }
 0x434   :  { %3937 = vtanh.bf16 %v2011_v39 }
 0x435   :  { %v1868_v18 = vpop.f32.mrb[44].mxu0 }
 0x436   :  { %v3454_v44 = vpop.f32.mrb[45].mxu0  ;;  %v1869_v3 = vadd.f32 %v1868_v18, %v5260_v56 }
 0x437   :  { %v3936_v45 = vpop.eup %3935  ;;  %v1871_v41 = vpop.f32.mrb[46].mxu0 }
 0x438   :  { %v1872_v11 = vadd.f32 %v1871_v41, %v5260_v56  ;;  %v3455_v42 = vpop.f32.mrb[47].mxu0  ;;  %3521 = vmatmul.mubr.msk.bf16.gmra.mrb[112].mxu0 %vm1118_vm1, %v3936_v45 }
 0x439   :  { %3620 = vmatprep.mubr.msk.bf16.mxu0 %vm4058_vm0, %v5810_v24 }
 0x43a   :  { %v2012_v8 = vpack.c.bf16 %v1872_v11, %v1869_v3 }
 0x43c   :  { %3939 = vtanh.bf16 %v2012_v8 }
 0x43d   :  { %v1876_v19 = vpop.f32.mrb[48].mxu0 }
 0x43e   :  { %v3458_v36 = vpop.f32.mrb[49].mxu0  ;;  %v1877_v37 = vadd.f32 %v1876_v19, %v5260_v56 }
 0x43f   :  { %v3938_v30 = vpop.eup %3937  ;;  %v1879_v57 = vpop.f32.mrb[50].mxu0 }
 0x440   :  { %v1880_v63 = vadd.f32 %v1879_v57, %v5260_v56  ;;  %v3459_v16 = vpop.f32.mrb[51].mxu0  ;;  %3535 = vmatmul.mubr.msk.bf16.vlgmr.msra.gmra.mrb[112].mxu1 %vm1118_vm1, %v3938_v30 }
 0x441   :  { %3538 = vmatprep.mubr.msk.bf16.mxu1 %vm4058_vm0, %v5810_v24 }
 0x442   :  { %v2013_v4 = vpack.c.bf16 %v1880_v63, %v1877_v37  ;;  %v3819_v63 = vld [vmem:[%s5795_s2 + $0xa8] sm:$0xff]  }
 0x443   :  { %3613 = vmatpush3.bf16.msra.mxu0 %v3819_v63 }
 0x444   :  { %3941 = vtanh.bf16 %v2013_v4  ;;  %3614 = vmatprep.subr.bf16.mxu0 %v5810_v24 }
 0x445   :  { %v1884_v5 = vpop.f32.mrb[52].mxu0 }
 0x446   :  { %v3462_v2 = vpop.f32.mrb[53].mxu0  ;;  %v1885_v6 = vadd.f32 %v1884_v5, %v5260_v56 }
 0x447   :  { %v3940_v17 = vpop.eup %3939  ;;  %v1887_v55 = vpop.f32.mrb[54].mxu0 }
 0x448   :  { %v1888_v62 = vadd.f32 %v1887_v55, %v5260_v56  ;;  %v3463_v38 = vpop.f32.mrb[55].mxu0  ;;  %3539 = vmatmul.mubr.msk.bf16.gmra.mrb[116].mxu1 %vm1118_vm1, %v3940_v17 }
 0x449   :  { %3542 = vmatprep.mubr.msk.bf16.mxu1 %vm4058_vm0, %v5810_v24 }
 0x44a   :  { %v2014_v26 = vpack.c.bf16 %v1888_v62, %v1885_v6 }
 0x44c   :  { %3943 = vtanh.bf16 %v2014_v26 }
 0x44d   :  { %v1892_v15 = vpop.f32.mrb[56].mxu0 }
 0x44e   :  { %v3466_v59 = vpop.f32.mrb[57].mxu0  ;;  %v1893_v49 = vadd.f32 %v1892_v15, %v5260_v56 }
 0x44f   :  { %v3942_v34 = vpop.eup %3941  ;;  %v1895_v0 = vpop.f32.mrb[58].mxu0 }
 0x450   :  { %v1896_v29 = vadd.f32 %v1895_v0, %v5260_v56  ;;  %v3467_v43 = vpop.f32.mrb[59].mxu0  ;;  %3543 = vmatmul.mubr.msk.bf16.gmra.mrb[120].mxu1 %vm1118_vm1, %v3942_v34 }
 0x451   :  { %3546 = vmatprep.mubr.msk.bf16.mxu1 %vm4058_vm0, %v5810_v24 }
 0x452   :  { %v2015_v60 = vpack.c.bf16 %v1896_v29, %v1893_v49 }
 0x454   :  { %3945 = vtanh.bf16 %v2015_v60 }
 0x455   :  { %v1900_v22 = vpop.f32.mrb[60].mxu0 }
 0x456   :  { %v3470_v9 = vpop.f32.mrb[61].mxu0  ;;  %v1901_v10 = vadd.f32 %v1900_v22, %v5260_v56 }
 0x457   :  { %v3944_v46 = vpop.eup %3943  ;;  %v1903_v12 = vpop.f32.mrb[62].mxu0 }
 0x458   :  { %v1904_v33 = vadd.f32 %v1903_v12, %v5260_v56  ;;  %v3471_v40 = vpop.f32.mrb[63].mxu0  ;;  %3547 = vmatmul.mubr.msk.bf16.gmra.mrb[124].mxu1 %vm1118_vm1, %v3944_v46 }
 0x459   :  { %3550 = vmatprep.mubr.msk.bf16.mxu1 %vm4058_vm0, %v5810_v24 }
 0x45a   :  { %v2016_v23 = vpack.c.bf16 %v1904_v33, %v1901_v10 }
 0x45c   :  { %3947 = vtanh.bf16 %v2016_v23 }
 0x45d   :  { %v1908_v13 = vpop.f32.mrb[64].mxu0 }
 0x45e   :  { %v3474_v52 = vpop.f32.mrb[65].mxu0  ;;  %v1909_v31 = vadd.f32 %v1908_v13, %v5260_v56 }
 0x45f   :  { %v3946_v58 = vpop.eup %3945  ;;  %v1911_v14 = vpop.f32.mrb[66].mxu0 }
 0x460   :  { %v1912_v7 = vadd.f32 %v1911_v14, %v5260_v56  ;;  %v3475_v47 = vpop.f32.mrb[67].mxu0  ;;  %3551 = vmatmul.mubr.msk.bf16.gmra.mrb[128].mxu1 %vm1118_vm1, %v3946_v58 }
 0x461   :  { %3554 = vmatprep.mubr.msk.bf16.mxu1 %vm4058_vm0, %v5810_v24  ;;  %v3821_v47 = vld [vmem:[%s5795_s2 + $0xb8] sm:$0xff]  }
 0x462   :  { %v2017_v21 = vpack.c.bf16 %v1912_v7, %v1909_v31  ;;  %v3820_v31 = vld [vmem:[%s5795_s2 + $0xb0] sm:$0xff]  }
 0x463   :  { %3615 = vmatpush3.bf16.msra.mxu0 %v3820_v31 }
 0x464   :  { %3949 = vtanh.bf16 %v2017_v21  ;;  %3616 = vmatprep.subr.bf16.mxu0 %v5810_v24 }
 0x465   :  { %v1916_v48 = vpop.f32.mrb[68].mxu0 }
 0x466   :  { %v3478_v25 = vpop.f32.mrb[69].mxu0  ;;  %v1917_v27 = vadd.f32 %v1916_v48, %v5260_v56  ;;  %v3822_v48 = vld [vmem:[%s5795_s2 + $0xc0] sm:$0xff]  }
 0x467   :  { %v3948_v35 = vpop.eup %3947  ;;  %v1919_v53 = vpop.f32.mrb[70].mxu0  ;;  %3617 = vmatpush3.bf16.msra.mxu0 %v3821_v47 }
 0x468   :  { %v1920_v1 = vadd.f32 %v1919_v53, %v5260_v56  ;;  %v3479_v50 = vpop.f32.mrb[71].mxu0  ;;  %3555 = vmatmul.mubr.msk.bf16.gmra.mrb[132].mxu1 %vm1118_vm1, %v3948_v35  ;;  %3618 = vmatprep.subr.bf16.mxu0 %v5810_v24 }
 0x469   :  { %3558 = vmatprep.mubr.msk.bf16.mxu1 %vm4058_vm0, %v5810_v24 }
 0x46a   :  { %v2018_v54 = vpack.c.bf16 %v1920_v1, %v1917_v27 }
 0x46b   :  { %3619 = vmatpush3.bf16.msra.mxu0 %v3822_v48 }
 0x46c   :  { %3951 = vtanh.bf16 %v2018_v54 }
 0x46d   :  { %v1924_v51 = vpop.f32.mrb[72].mxu0 }
 0x46e   :  { %v3482_v20 = vpop.f32.mrb[73].mxu0  ;;  %v1925_v44 = vadd.f32 %v1924_v51, %v5260_v56 }
 0x46f   :  { %v3950_v39 = vpop.eup %3949  ;;  %v1927_v18 = vpop.f32.mrb[74].mxu0 }
 0x470   :  { %v1928_v45 = vadd.f32 %v1927_v18, %v5260_v56  ;;  %v3483_v41 = vpop.f32.mrb[75].mxu0  ;;  %3559 = vmatmul.mubr.msk.bf16.gmra.mrb[136].mxu1 %vm1118_vm1, %v3950_v39 }
 0x471   :  { %3562 = vmatprep.mubr.msk.bf16.mxu1 %vm4058_vm0, %v5810_v24 }
 0x472   :  { %v2019_v3 = vpack.c.bf16 %v1928_v45, %v1925_v44 }
 0x474   :  { %3953 = vtanh.bf16 %v2019_v3 }
 0x475   :  { %v1932_v11 = vpop.f32.mrb[76].mxu0 }
 0x476   :  { %v3486_v42 = vpop.f32.mrb[77].mxu0  ;;  %v1933_v36 = vadd.f32 %v1932_v11, %v5260_v56 }
 0x477   :  { %v3952_v8 = vpop.eup %3951  ;;  %v1935_v19 = vpop.f32.mrb[78].mxu0 }
 0x478   :  { %v1936_v30 = vadd.f32 %v1935_v19, %v5260_v56  ;;  %v3487_v57 = vpop.f32.mrb[79].mxu0  ;;  %3563 = vmatmul.mubr.msk.bf16.gmra.mrb[140].mxu1 %vm1118_vm1, %v3952_v8 }
 0x479   :  { %3566 = vmatprep.mubr.msk.bf16.mxu1 %vm4058_vm0, %v5810_v24 }
 0x47a   :  { %v2020_v37 = vpack.c.bf16 %v1936_v30, %v1933_v36 }
 0x47c   :  { %3955 = vtanh.bf16 %v2020_v37 }
 0x47d   :  { %v1940_v16 = vpop.f32.mrb[80].mxu0 }
 0x47e   :  { %v3490_v4 = vpop.f32.mrb[81].mxu0  ;;  %v1941_v17 = vadd.f32 %v1940_v16, %v5260_v56 }
 0x47f   :  { %v3954_v5 = vpop.eup %3953  ;;  %v1943_v2 = vpop.f32.mrb[82].mxu0 }
 0x480   :  { %v1944_v55 = vadd.f32 %v1943_v2, %v5260_v56  ;;  %v3491_v6 = vpop.f32.mrb[83].mxu0  ;;  %3567 = vmatmul.mubr.msk.bf16.gmra.mrb[144].mxu1 %vm1118_vm1, %v3954_v5 }
 0x481   :  { %3570 = vmatprep.mubr.msk.bf16.mxu1 %vm4058_vm0, %v5810_v24 }
 0x482   :  { %v2021_v62 = vpack.c.bf16 %v1944_v55, %v1941_v17 }
 0x484   :  { %3957 = vtanh.bf16 %v2021_v62 }
 0x485   :  { %v1948_v38 = vpop.f32.mrb[84].mxu0 }
 0x486   :  { %v3494_v26 = vpop.f32.mrb[85].mxu0  ;;  %v1949_v34 = vadd.f32 %v1948_v38, %v5260_v56 }
 0x487   :  { %v3956_v15 = vpop.eup %3955  ;;  %v1951_v59 = vpop.f32.mrb[86].mxu0 }
 0x488   :  { %v1952_v0 = vadd.f32 %v1951_v59, %v5260_v56  ;;  %v3495_v49 = vpop.f32.mrb[87].mxu0  ;;  %3571 = vmatmul.mubr.msk.bf16.gmra.mrb[148].mxu1 %vm1118_vm1, %v3956_v15 }
 0x489   :  { %3574 = vmatprep.mubr.msk.bf16.mxu1 %vm4058_vm0, %v5810_v24 }
 0x48a   :  { %v2022_v29 = vpack.c.bf16 %v1952_v0, %v1949_v34  ;;  %v2062_v34 = vsub.s32 4, %v4381_v61 }
 0x48c   :  { %3959 = vtanh.bf16 %v2022_v29 }
 0x48d   :  { %v1956_v43 = vpop.f32.mrb[88].mxu0 }
 0x48e   :  { %v3498_v60 = vpop.f32.mrb[89].mxu0  ;;  %v1957_v46 = vadd.f32 %v1956_v43, %v5260_v56 }
 0x48f   :  { %v3958_v22 = vpop.eup %3957  ;;  %v1959_v9 = vpop.f32.mrb[90].mxu0  ;;  %v5378_v60 = vrot.slane %v5136_v28, %v2062_v34 }
 0x490   :  { %v1960_v12 = vadd.f32 %v1959_v9, %v5260_v56  ;;  %v3499_v10 = vpop.f32.mrb[91].mxu0  ;;  %3575 = vmatmul.mubr.msk.bf16.gmra.mrb[152].mxu1 %vm1118_vm1, %v3958_v22 }
 0x491   :  { %3578 = vmatprep.mubr.msk.bf16.mxu1 %vm4058_vm0, %v5810_v24 }
 0x492   :  { %v2023_v33 = vpack.c.bf16 %v1960_v12, %v1957_v46 }
 0x494   :  { %3961 = vtanh.bf16 %v2023_v33 }
 0x495   :  { %v1964_v40 = vpop.f32.mrb[92].mxu0 }
 0x496   :  { %v3502_v23 = vpop.f32.mrb[93].mxu0  ;;  %v1965_v52 = vadd.f32 %v1964_v40, %v5260_v56 }
 0x497   :  { %v3960_v32 = vpop.eup %3959  ;;  %v1967_v13 = vpop.f32.mrb[94].mxu0 }
 0x498   :  { %v1968_v58 = vadd.f32 %v1967_v13, %v5260_v56  ;;  %v3503_v14 = vpop.f32.mrb[95].mxu0  ;;  %3579 = vmatmul.mubr.msk.bf16.gmra.mrb[156].mxu1 %vm1118_vm1, %v3960_v32 }
 0x499   :  { %3582 = vmatprep.mubr.msk.bf16.mxu1 %vm4058_vm0, %v5810_v24 }
 0x49a   :  { %v2024_v7 = vpack.c.bf16 %v1968_v58, %v1965_v52 }
 0x49c   :  { %3963 = vtanh.bf16 %v2024_v7 }
 0x49f   :  { %v3962_v21 = vpop.eup %3961 }
 0x4a0   :  { %3583 = vmatmul.mubr.msk.bf16.gmra.mrb[160].mxu1 %vm1118_vm1, %v3962_v21 }
 0x4a1   :  { %3586 = vmatprep.mubr.msk.bf16.mxu1 %vm4058_vm0, %v5810_v24 }
 0x4a7   :  { %v3964_v25 = vpop.eup %3963  ;;  %v1972_v35 = vpop.f32.mrb[96].mxu0 }
 0x4a8   :  { %v3506_v53 = vpop.f32.mrb[97].mxu0  ;;  %3587 = vmatmul.mubr.msk.bf16.gmra.mrb[164].mxu1 %vm1118_vm1, %v3964_v25  ;;  %v1973_v1 = vadd.f32 %v1972_v35, %v5260_v56 }
 0x4a9   :  { %v1975_v27 = vpop.f32.mrb[98].mxu0  ;;  %3590 = vmatprep.mubr.msk.bf16.mxu1 %vm4058_vm0, %v5810_v24 }
 0x4aa   :  { %v1976_v50 = vadd.f32 %v1975_v27, %v5260_v56  ;;  %v3507_v54 = vpop.f32.mrb[99].mxu0 }
 0x4ac   :  { %v2025_v51 = vpack.c.bf16 %v1976_v50, %v1973_v1 }
 0x4ae   :  { %3965 = vtanh.bf16 %v2025_v51 }
 0x4b9   :  { %v3966_v20 = vpop.eup %3965 }
 0x4ba   :  { %3591 = vmatmul.mubr.msk.bf16.gmra.mrb[168].mxu1 %vm1118_vm1, %v3966_v20 }
 0x4bb   :  { %3594 = vmatprep.mubr.msk.bf16.mxu1 %vm4058_vm0, %v5810_v24 }
 0x4bf   :  { %v1980_v39 = vpop.f32.mrb[100].mxu0 }
 0x4c0   :  { %v3510_v18 = vpop.f32.mrb[101].mxu0  ;;  %v1981_v45 = vadd.f32 %v1980_v39, %v5260_v56 }
 0x4c1   :  { %v1983_v44 = vpop.f32.mrb[102].mxu0 }
 0x4c2   :  { %v1984_v41 = vadd.f32 %v1983_v44, %v5260_v56  ;;  %v3511_v3 = vpop.f32.mrb[103].mxu0 }
 0x4c4   :  { %v2026_v11 = vpack.c.bf16 %v1984_v41, %v1981_v45 }
 0x4c6   :  { %3967 = vtanh.bf16 %v2026_v11 }
 0x4d1   :  { %v3968_v42 = vpop.eup %3967 }
 0x4d2   :  { %3595 = vmatmul.mubr.msk.bf16.gmra.mrb[172].mxu1 %vm1118_vm1, %v3968_v42 }
 0x4d3   :  { %3598 = vmatprep.mubr.msk.bf16.mxu1 %vm4058_vm0, %v5810_v24 }
 0x4db   :  { %v1988_v8 = vpop.f32.mrb[104].mxu0 }
 0x4dc   :  { %v3514_v19 = vpop.f32.mrb[105].mxu0  ;;  %v1989_v30 = vadd.f32 %v1988_v8, %v5260_v56 }
 0x4dd   :  { %v1991_v36 = vpop.f32.mrb[106].mxu0 }
 0x4de   :  { %v1992_v57 = vadd.f32 %v1991_v36, %v5260_v56  ;;  %v3515_v37 = vpop.f32.mrb[107].mxu0 }
 0x4e0   :  { %v2027_v63 = vpack.c.bf16 %v1992_v57, %v1989_v30 }
 0x4e2   :  { %3969 = vtanh.bf16 %v2027_v63 }
 0x4ed   :  { %v3970_v16 = vpop.eup %3969 }
 0x4ee   :  { %3599 = vmatmul.mubr.msk.bf16.gmra.mrb[176].mxu1 %vm1118_vm1, %v3970_v16 }
 0x4ef   :  { %3602 = vmatprep.mubr.msk.bf16.mxu1 %vm4058_vm0, %v5810_v24 }
 0x4f3   :  { %v1996_v4 = vpop.f32.mrb[108].mxu0 }
 0x4f4   :  { %v3518_v5 = vpop.f32.mrb[109].mxu0  ;;  %v1997_v17 = vadd.f32 %v1996_v4, %v5260_v56 }
 0x4f5   :  { %v1999_v2 = vpop.f32.mrb[110].mxu0 }
 0x4f6   :  { %v2000_v55 = vadd.f32 %v1999_v2, %v5260_v56  ;;  %v3519_v6 = vpop.f32.mrb[111].mxu0 }
 0x4f8   :  { %v2028_v62 = vpack.c.bf16 %v2000_v55, %v1997_v17 }
 0x4fa   :  { %3971 = vtanh.bf16 %v2028_v62 }
 0x505   :  { %v3972_v38 = vpop.eup %3971 }
 0x506   :  { %3603 = vmatmul.mubr.msk.bf16.gmra.mrb[180].mxu1 %vm1118_vm1, %v3972_v38 }
 0x507   :  { %3606 = vmatprep.mubr.msk.bf16.mxu1 %vm4058_vm0, %v5810_v24 }
 0x50b   :  { %v2004_v26 = vpop.f32.mrb[112].mxu0 }
 0x50c   :  { %v3522_v15 = vpop.f32.mrb[113].mxu0  ;;  %v2005_v0 = vadd.f32 %v2004_v26, %v5260_v56 }
 0x50d   :  { %v2007_v59 = vpop.f32.mrb[114].mxu0 }
 0x50e   :  { %v2008_v49 = vadd.f32 %v2007_v59, %v5260_v56  ;;  %v3523_v29 = vpop.f32.mrb[115].mxu0 }
 0x510   :  { %v2029_v43 = vpack.c.bf16 %v2008_v49, %v2005_v0 }
 0x512   :  { %3973 = vtanh.bf16 %v2029_v43 }
 0x513   :  { %v2185_v22 = vpop.f32.mrb[112].mxu1 }
 0x514   :  { %v3536_v9 = vpop.f32.mrb[113].mxu1  ;;  %v2186_v12 = vadd.f32 %v2185_v22, %v5378_v60 }
 0x515   :  { %v2188_v46 = vpop.f32.mrb[114].mxu1 }
 0x516   :  { %v2189_v10 = vadd.f32 %v2188_v46, %v5378_v60  ;;  %v3537_v33 = vpop.f32.mrb[115].mxu1 }
 0x518   :  { %v2336_v40 = vpack.c.bf16 %v2189_v10, %v2186_v12 }
 0x51a   :  { %3975 = vtanh.bf16 %v2336_v40 }
 0x51b   :  { %v2193_v23 = vpop.f32.mrb[116].mxu1 }
 0x51c   :  { %v3540_v32 = vpop.f32.mrb[117].mxu1  ;;  %v2194_v52 = vadd.f32 %v2193_v23, %v5378_v60 }
 0x51d   :  { %v3974_v13 = vpop.eup %3973  ;;  %v2196_v56 = vpop.f32.mrb[118].mxu1 }
 0x51e   :  { %v2197_v58 = vadd.f32 %v2196_v56, %v5378_v60  ;;  %v3541_v28 = vpop.f32.mrb[119].mxu1  ;;  %3607 = vmatmul.mubr.msk.bf16.gmra.mrb[184].mxu1 %vm1118_vm1, %v3974_v13 }
 0x520   :  { %v2337_v14 = vpack.c.bf16 %v2197_v58, %v2194_v52 }
 0x522   :  { %3977 = vtanh.bf16 %v2337_v14 }
 0x523   :  { %v2201_v31 = vpop.f32.mrb[120].mxu1 }
 0x524   :  { %v3544_v7 = vpop.f32.mrb[121].mxu1  ;;  %v2202_v48 = vadd.f32 %v2201_v31, %v5378_v60 }
 0x525   :  { %v3976_v47 = vpop.eup %3975  ;;  %v2204_v21 = vpop.f32.mrb[122].mxu1 }
 0x526   :  { %v2205_v25 = vadd.f32 %v2204_v21, %v5378_v60  ;;  %v3545_v35 = vpop.f32.mrb[123].mxu1  ;;  %3621 = vmatmul.mubr.msk.bf16.vlgmr.msra.gmra.mrb[116].mxu0 %vm1118_vm1, %v3976_v47 }
 0x527   :  { %3624 = vmatprep.mubr.msk.bf16.mxu0 %vm4058_vm0, %v5810_v24 }
 0x528   :  { %v2338_v53 = vpack.c.bf16 %v2205_v25, %v2202_v48 }
 0x52a   :  { %3979 = vtanh.bf16 %v2338_v53 }
 0x52b   :  { %v2209_v27 = vpop.f32.mrb[124].mxu1 }
 0x52c   :  { %v3548_v1 = vpop.f32.mrb[125].mxu1  ;;  %v2210_v51 = vadd.f32 %v2209_v27, %v5378_v60 }
 0x52d   :  { %v3978_v50 = vpop.eup %3977  ;;  %v2212_v54 = vpop.f32.mrb[126].mxu1 }
 0x52e   :  { %v2213_v20 = vadd.f32 %v2212_v54, %v5378_v60  ;;  %v3549_v39 = vpop.f32.mrb[127].mxu1  ;;  %3625 = vmatmul.mubr.msk.bf16.gmra.mrb[120].mxu0 %vm1118_vm1, %v3978_v50 }
 0x52f   :  { %3628 = vmatprep.mubr.msk.bf16.mxu0 %vm4058_vm0, %v5810_v24 }
 0x530   :  { %v2339_v18 = vpack.c.bf16 %v2213_v20, %v2210_v51 }
 0x532   :  { %3981 = vtanh.bf16 %v2339_v18 }
 0x533   :  { %v2217_v44 = vpop.f32.mrb[128].mxu1 }
 0x534   :  { %v3552_v45 = vpop.f32.mrb[129].mxu1  ;;  %v2218_v11 = vadd.f32 %v2217_v44, %v5378_v60 }
 0x535   :  { %v3980_v41 = vpop.eup %3979  ;;  %v2220_v3 = vpop.f32.mrb[130].mxu1 }
 0x536   :  { %v2221_v42 = vadd.f32 %v2220_v3, %v5378_v60  ;;  %v3553_v8 = vpop.f32.mrb[131].mxu1  ;;  %3629 = vmatmul.mubr.msk.bf16.gmra.mrb[124].mxu0 %vm1118_vm1, %v3980_v41 }
 0x537   :  { %3632 = vmatprep.mubr.msk.bf16.mxu0 %vm4058_vm0, %v5810_v24 }
 0x538   :  { %v2340_v19 = vpack.c.bf16 %v2221_v42, %v2218_v11 }
 0x53a   :  { %3983 = vtanh.bf16 %v2340_v19 }
 0x53b   :  { %v2225_v36 = vpop.f32.mrb[132].mxu1 }
 0x53c   :  { %v3556_v30 = vpop.f32.mrb[133].mxu1  ;;  %v2226_v63 = vadd.f32 %v2225_v36, %v5378_v60 }
 0x53d   :  { %v3982_v57 = vpop.eup %3981  ;;  %v2228_v37 = vpop.f32.mrb[134].mxu1 }
 0x53e   :  { %v2229_v16 = vadd.f32 %v2228_v37, %v5378_v60  ;;  %v3557_v4 = vpop.f32.mrb[135].mxu1  ;;  %3633 = vmatmul.mubr.msk.bf16.gmra.mrb[128].mxu0 %vm1118_vm1, %v3982_v57 }
 0x53f   :  { %3636 = vmatprep.mubr.msk.bf16.mxu0 %vm4058_vm0, %v5810_v24 }
 0x540   :  { %v2341_v5 = vpack.c.bf16 %v2229_v16, %v2226_v63 }
 0x542   :  { %3985 = vtanh.bf16 %v2341_v5 }
 0x543   :  { %v2233_v2 = vpop.f32.mrb[136].mxu1 }
 0x544   :  { %v3560_v17 = vpop.f32.mrb[137].mxu1  ;;  %v2234_v62 = vadd.f32 %v2233_v2, %v5378_v60 }
 0x545   :  { %v3984_v55 = vpop.eup %3983  ;;  %v2236_v6 = vpop.f32.mrb[138].mxu1 }
 0x546   :  { %v2237_v38 = vadd.f32 %v2236_v6, %v5378_v60  ;;  %v3561_v26 = vpop.f32.mrb[139].mxu1  ;;  %3637 = vmatmul.mubr.msk.bf16.gmra.mrb[132].mxu0 %vm1118_vm1, %v3984_v55 }
 0x547   :  { %3640 = vmatprep.mubr.msk.bf16.mxu0 %vm4058_vm0, %v5810_v24 }
 0x548   :  { %v2342_v15 = vpack.c.bf16 %v2237_v38, %v2234_v62 }
 0x54a   :  { %3987 = vtanh.bf16 %v2342_v15 }
 0x54b   :  { %v2241_v59 = vpop.f32.mrb[140].mxu1 }
 0x54c   :  { %v3564_v34 = vpop.f32.mrb[141].mxu1  ;;  %v2242_v29 = vadd.f32 %v2241_v59, %v5378_v60 }
 0x54d   :  { %v3986_v0 = vpop.eup %3985  ;;  %v2244_v49 = vpop.f32.mrb[142].mxu1 }
 0x54e   :  { %v2245_v43 = vadd.f32 %v2244_v49, %v5378_v60  ;;  %v3565_v22 = vpop.f32.mrb[143].mxu1  ;;  %3641 = vmatmul.mubr.msk.bf16.gmra.mrb[136].mxu0 %vm1118_vm1, %v3986_v0 }
 0x54f   :  { %3644 = vmatprep.mubr.msk.bf16.mxu0 %vm4058_vm0, %v5810_v24 }
 0x550   :  { %v2343_v9 = vpack.c.bf16 %v2245_v43, %v2242_v29 }
 0x552   :  { %3989 = vtanh.bf16 %v2343_v9 }
 0x553   :  { %v2249_v46 = vpop.f32.mrb[144].mxu1 }
 0x554   :  { %v3568_v12 = vpop.f32.mrb[145].mxu1  ;;  %v2250_v40 = vadd.f32 %v2249_v46, %v5378_v60 }
 0x555   :  { %v3988_v10 = vpop.eup %3987  ;;  %v2252_v33 = vpop.f32.mrb[146].mxu1 }
 0x556   :  { %v2253_v23 = vadd.f32 %v2252_v33, %v5378_v60  ;;  %v3569_v32 = vpop.f32.mrb[147].mxu1  ;;  %3645 = vmatmul.mubr.msk.bf16.gmra.mrb[140].mxu0 %vm1118_vm1, %v3988_v10 }
 0x557   :  { %3648 = vmatprep.mubr.msk.bf16.mxu0 %vm4058_vm0, %v5810_v24 }
 0x558   :  { %v2344_v13 = vpack.c.bf16 %v2253_v23, %v2250_v40 }
 0x55a   :  { %3991 = vtanh.bf16 %v2344_v13 }
 0x55b   :  { %v2257_v56 = vpop.f32.mrb[148].mxu1 }
 0x55c   :  { %v3572_v52 = vpop.f32.mrb[149].mxu1  ;;  %v2258_v14 = vadd.f32 %v2257_v56, %v5378_v60 }
 0x55d   :  { %v3990_v58 = vpop.eup %3989  ;;  %v2260_v28 = vpop.f32.mrb[150].mxu1 }
 0x55e   :  { %v2261_v31 = vadd.f32 %v2260_v28, %v5378_v60  ;;  %v3573_v7 = vpop.f32.mrb[151].mxu1  ;;  %3649 = vmatmul.mubr.msk.bf16.gmra.mrb[144].mxu0 %vm1118_vm1, %v3990_v58 }
 0x55f   :  { %3652 = vmatprep.mubr.msk.bf16.mxu0 %vm4058_vm0, %v5810_v24 }
 0x560   :  { %v2345_v47 = vpack.c.bf16 %v2261_v31, %v2258_v14 }
 0x562   :  { %3993 = vtanh.bf16 %v2345_v47 }
 0x563   :  { %v2265_v21 = vpop.f32.mrb[152].mxu1 }
 0x564   :  { %v3576_v48 = vpop.f32.mrb[153].mxu1  ;;  %v2266_v53 = vadd.f32 %v2265_v21, %v5378_v60 }
 0x565   :  { %v3992_v25 = vpop.eup %3991  ;;  %v2268_v35 = vpop.f32.mrb[154].mxu1 }
 0x566   :  { %v2269_v27 = vadd.f32 %v2268_v35, %v5378_v60  ;;  %v3577_v1 = vpop.f32.mrb[155].mxu1  ;;  %3653 = vmatmul.mubr.msk.bf16.gmra.mrb[148].mxu0 %vm1118_vm1, %v3992_v25 }
 0x567   :  { %3656 = vmatprep.mubr.msk.bf16.mxu0 %vm4058_vm0, %v5810_v24 }
 0x568   :  { %v2346_v50 = vpack.c.bf16 %v2269_v27, %v2266_v53 }
 0x56a   :  { %3995 = vtanh.bf16 %v2346_v50 }
 0x56b   :  { %v2273_v54 = vpop.f32.mrb[156].mxu1 }
 0x56c   :  { %v3580_v51 = vpop.f32.mrb[157].mxu1  ;;  %v2274_v18 = vadd.f32 %v2273_v54, %v5378_v60 }
 0x56d   :  { %v3994_v20 = vpop.eup %3993  ;;  %v2276_v39 = vpop.f32.mrb[158].mxu1 }
 0x56e   :  { %v2277_v44 = vadd.f32 %v2276_v39, %v5378_v60  ;;  %v3581_v45 = vpop.f32.mrb[159].mxu1  ;;  %3657 = vmatmul.mubr.msk.bf16.gmra.mrb[152].mxu0 %vm1118_vm1, %v3994_v20  ;;  %v2387_v39 = vsub.s32 5, %v4381_v61 }
 0x56f   :  { %3660 = vmatprep.mubr.msk.bf16.mxu0 %vm4058_vm0, %v5810_v24 }
 0x570   :  { %v2347_v41 = vpack.c.bf16 %v2277_v44, %v2274_v18  ;;  %v4052_v44 = vld [vmem:[%s5797_s4] sm:$0x3f] }
 0x571   :  { %v5477_v45 = vrot.slane %v4052_v44, %v2387_v39 }
 0x572   :  { %3997 = vtanh.bf16 %v2347_v41 }
 0x573   :  { %v2281_v3 = vpop.f32.mrb[160].mxu1 }
 0x574   :  { %v3584_v11 = vpop.f32.mrb[161].mxu1  ;;  %v2282_v19 = vadd.f32 %v2281_v3, %v5378_v60 }
 0x575   :  { %v3996_v42 = vpop.eup %3995  ;;  %v2284_v8 = vpop.f32.mrb[162].mxu1 }
 0x576   :  { %v2285_v36 = vadd.f32 %v2284_v8, %v5378_v60  ;;  %v3585_v30 = vpop.f32.mrb[163].mxu1  ;;  %3661 = vmatmul.mubr.msk.bf16.gmra.mrb[156].mxu0 %vm1118_vm1, %v3996_v42 }
 0x577   :  { %3664 = vmatprep.mubr.msk.bf16.mxu0 %vm4058_vm0, %v5810_v24 }
 0x578   :  { %v2348_v57 = vpack.c.bf16 %v2285_v36, %v2282_v19 }
 0x57a   :  { %3999 = vtanh.bf16 %v2348_v57 }
 0x57b   :  { %v2289_v37 = vpop.f32.mrb[164].mxu1 }
 0x57c   :  { %v3588_v63 = vpop.f32.mrb[165].mxu1  ;;  %v2290_v5 = vadd.f32 %v2289_v37, %v5378_v60 }
 0x57d   :  { %v3998_v16 = vpop.eup %3997  ;;  %v2292_v4 = vpop.f32.mrb[166].mxu1 }
 0x57e   :  { %v2293_v2 = vadd.f32 %v2292_v4, %v5378_v60  ;;  %v3589_v17 = vpop.f32.mrb[167].mxu1  ;;  %3665 = vmatmul.mubr.msk.bf16.gmra.mrb[160].mxu0 %vm1118_vm1, %v3998_v16 }
 0x57f   :  { %3668 = vmatprep.mubr.msk.bf16.mxu0 %vm4058_vm0, %v5810_v24 }
 0x580   :  { %v2349_v55 = vpack.c.bf16 %v2293_v2, %v2290_v5 }
 0x582   :  { %4001 = vtanh.bf16 %v2349_v55  ;;  %v5487_v55 = vld [vmem:[%s5798_s3] ss:$0 sm:$0xff] }
 0x585   :  { %v4000_v6 = vpop.eup %3999 }
 0x586   :  { %3669 = vmatmul.mubr.msk.bf16.gmra.mrb[164].mxu0 %vm1118_vm1, %v4000_v6 }
 0x587   :  { %3672 = vmatprep.mubr.msk.bf16.mxu0 %vm4058_vm0, %v5810_v24 }
 0x58d   :  { %v4002_v62 = vpop.eup %4001  ;;  %v2297_v38 = vpop.f32.mrb[168].mxu1 }
 0x58e   :  { %v3592_v26 = vpop.f32.mrb[169].mxu1  ;;  %3673 = vmatmul.mubr.msk.bf16.gmra.mrb[168].mxu0 %vm1118_vm1, %v4002_v62  ;;  %v2298_v59 = vadd.f32 %v2297_v38, %v5378_v60 }
 0x58f   :  { %v2300_v15 = vpop.f32.mrb[170].mxu1  ;;  %3676 = vmatprep.mubr.msk.bf16.mxu0 %vm4058_vm0, %v5810_v24 }
 0x590   :  { %v2301_v34 = vadd.f32 %v2300_v15, %v5378_v60  ;;  %v3593_v0 = vpop.f32.mrb[171].mxu1 }
 0x592   :  { %v2350_v49 = vpack.c.bf16 %v2301_v34, %v2298_v59 }
 0x594   :  { %4003 = vtanh.bf16 %v2350_v49 }
 0x59f   :  { %v4004_v29 = vpop.eup %4003 }
 0x5a0   :  { %3677 = vmatmul.mubr.msk.bf16.gmra.mrb[172].mxu0 %vm1118_vm1, %v4004_v29 }
 0x5a1   :  { %3680 = vmatprep.mubr.msk.bf16.mxu0 %vm4058_vm0, %v5810_v24 }
 0x5a5   :  { %v2305_v43 = vpop.f32.mrb[172].mxu1 }
 0x5a6   :  { %v3596_v22 = vpop.f32.mrb[173].mxu1  ;;  %v2306_v46 = vadd.f32 %v2305_v43, %v5378_v60 }
 0x5a7   :  { %v2308_v9 = vpop.f32.mrb[174].mxu1 }
 0x5a8   :  { %v2309_v12 = vadd.f32 %v2308_v9, %v5378_v60  ;;  %v3597_v10 = vpop.f32.mrb[175].mxu1 }
 0x5aa   :  { %v2351_v33 = vpack.c.bf16 %v2309_v12, %v2306_v46  ;;  %v11_v12 = vstv %s5799_s5 }
 0x5ab   :  { %12 = vst [vmem:[#allocation2] sm:$0x1] %v11_v12 }
 0x5ac   :  { %4005 = vtanh.bf16 %v2351_v33 }
 0x5b7   :  { %v4006_v40 = vpop.eup %4005 }
 0x5b8   :  { %3681 = vmatmul.mubr.msk.bf16.gmra.mrb[176].mxu0 %vm1118_vm1, %v4006_v40 }
 0x5b9   :  { %3684 = vmatprep.mubr.msk.bf16.mxu0 %vm4058_vm0, %v5810_v24 }
 0x5c1   :  { %v2313_v23 = vpop.f32.mrb[176].mxu1 }
 0x5c2   :  { %v3600_v32 = vpop.f32.mrb[177].mxu1  ;;  %v2314_v56 = vadd.f32 %v2313_v23, %v5378_v60 }
 0x5c3   :  { %v2316_v13 = vpop.f32.mrb[178].mxu1 }
 0x5c4   :  { %v2317_v52 = vadd.f32 %v2316_v13, %v5378_v60  ;;  %v3601_v58 = vpop.f32.mrb[179].mxu1 }
 0x5c6   :  { %v2352_v28 = vpack.c.bf16 %v2317_v52, %v2314_v56 }
 0x5c8   :  { %4007 = vtanh.bf16 %v2352_v28 }
 0x5d3   :  { %v4008_v14 = vpop.eup %4007 }
 0x5d4   :  { %3685 = vmatmul.mubr.msk.bf16.gmra.mrb[180].mxu0 %vm1118_vm1, %v4008_v14 }
 0x5d5   :  { %3688 = vmatprep.mubr.msk.bf16.mxu0 %vm4058_vm0, %v5810_v24 }
 0x5d9   :  { %v2321_v31 = vpop.f32.mrb[180].mxu1 }
 0x5da   :  { %v3604_v7 = vpop.f32.mrb[181].mxu1  ;;  %v2322_v21 = vadd.f32 %v2321_v31, %v5378_v60 }
 0x5db   :  { %v2324_v47 = vpop.f32.mrb[182].mxu1 }
 0x5dc   :  { %v2325_v48 = vadd.f32 %v2324_v47, %v5378_v60  ;;  %v3605_v25 = vpop.f32.mrb[183].mxu1 }
 0x5de   :  { %v2353_v35 = vpack.c.bf16 %v2325_v48, %v2322_v21 }
 0x5e0   :  { %4009 = vtanh.bf16 %v2353_v35 }
 0x5eb   :  { %v4010_v53 = vpop.eup %4009 }
 0x5ec   :  { %3689 = vmatmul.mubr.msk.bf16.gmra.mrb[184].mxu0 %vm1118_vm1, %v4010_v53 }
 0x5ed   :  { %3692 = vmatprep.mubr.msk.bf16.mxu0 %vm4058_vm0, %v5810_v24 }
 0x5f1   :  { %v2329_v27 = vpop.f32.mrb[184].mxu1 }
 0x5f2   :  { %v3608_v1 = vpop.f32.mrb[185].mxu1  ;;  %v2330_v54 = vadd.f32 %v2329_v27, %v5378_v60 }
 0x5f3   :  { %v2332_v50 = vpop.f32.mrb[186].mxu1 }
 0x5f4   :  { %v2333_v51 = vadd.f32 %v2332_v50, %v5378_v60  ;;  %v3609_v20 = vpop.f32.mrb[187].mxu1 }
 0x5f6   :  { %v2354_v18 = vpack.c.bf16 %v2333_v51, %v2330_v54 }
 0x5f8   :  { %4011 = vtanh.bf16 %v2354_v18 }
 0x5f9   :  { %v2510_v41 = vpop.f32.mrb[116].mxu0 }
 0x5fa   :  { %v3622_v24 = vpop.f32.mrb[117].mxu0  ;;  %v2511_v11 = vadd.f32 %v2510_v41, %v5477_v45 }
 0x5fb   :  { %v2513_v3 = vpop.f32.mrb[118].mxu0 }
 0x5fc   :  { %v2514_v42 = vadd.f32 %v2513_v3, %v5477_v45  ;;  %v3623_v8 = vpop.f32.mrb[119].mxu0 }
 0x5fe   :  { %v2661_v60 = vpack.c.bf16 %v2514_v42, %v2511_v11 }
 0x600   :  { %4013 = vtanh.bf16 %v2661_v60 }
 0x601   :  { %v2518_v19 = vpop.f32.mrb[120].mxu0 }
 0x602   :  { %v3626_v61 = vpop.f32.mrb[121].mxu0  ;;  %v2519_v57 = vadd.f32 %v2518_v19, %v5477_v45 }
 0x603   :  { %v4012_v36 = vpop.eup %4011  ;;  %v2521_v30 = vpop.f32.mrb[122].mxu0 }
 0x604   :  { %v2522_v37 = vadd.f32 %v2521_v30, %v5477_v45  ;;  %v3627_v63 = vpop.f32.mrb[123].mxu0  ;;  %3693 = vmatmul.mubr.msk.bf16.gmra.mrb[188].mxu0 %vm1118_vm1, %v4012_v36 }
 0x606   :  { %v2662_v16 = vpack.c.bf16 %v2522_v37, %v2519_v57 }
 0x608   :  { %4015 = vtanh.bf16 %v2662_v16 }
 0x609   :  { %v2526_v4 = vpop.f32.mrb[124].mxu0 }
 0x60a   :  { %v3630_v5 = vpop.f32.mrb[125].mxu0  ;;  %v2527_v6 = vadd.f32 %v2526_v4, %v5477_v45 }
 0x60b   :  { %v4014_v2 = vpop.eup %4013  ;;  %v2529_v17 = vpop.f32.mrb[126].mxu0 }
 0x60c   :  { %v2530_v62 = vadd.f32 %v2529_v17, %v5477_v45  ;;  %v3631_v38 = vpop.f32.mrb[127].mxu0  ;;  %v2700_v26 = vunpack.c.h.bf16 %v4014_v2  ;;  %v2699_v15 = vunpack.c.l.bf16 %v4014_v2 }
 0x60e   :  { %v2663_v59 = vpack.c.bf16 %v2530_v62, %v2527_v6  ;;  %v2745_v34 = vmul.f32 %v5487_v55, %v2700_v26  ;;  %v2744_v0 = vmul.f32 %v5487_v55, %v2699_v15 }
 0x610   :  { %4017 = vtanh.bf16 %v2663_v59  ;;  %v2785_v49 = vsel %vm1118_vm1, %v2745_v34, 0.0  ;;  %v2782_v29 = vsel %vm1118_vm1, %v2744_v0, 0.0 }
 0x611   :  { %2786 = vadd.xlane.f32.xlu0 %v2785_v49  ;;  %2783 = vadd.xlane.f32.xlu1 %v2782_v29  ;;  %v2534_v43 = vpop.f32.mrb[128].mxu0 }
 0x612   :  { %v3634_v22 = vpop.f32.mrb[129].mxu0  ;;  %v2535_v10 = vadd.f32 %v2534_v43, %v5477_v45 }
 0x613   :  { %v4016_v9 = vpop.eup %4015  ;;  %v2537_v46 = vpop.f32.mrb[130].mxu0 }
 0x614   :  { %v2538_v33 = vadd.f32 %v2537_v46, %v5477_v45  ;;  %v3635_v40 = vpop.f32.mrb[131].mxu0  ;;  %v2702_v23 = vunpack.c.h.bf16 %v4016_v9  ;;  %v2701_v32 = vunpack.c.l.bf16 %v4016_v9 }
 0x616   :  { %v2664_v13 = vpack.c.bf16 %v2538_v33, %v2535_v10  ;;  %v2747_v56 = vmul.f32 %v5487_v55, %v2702_v23  ;;  %v2746_v52 = vmul.f32 %v5487_v55, %v2701_v32 }
 0x618   :  { %4019 = vtanh.bf16 %v2664_v13  ;;  %v2791_v58 = vsel %vm1118_vm1, %v2747_v56, 0.0  ;;  %v2788_v28 = vsel %vm1118_vm1, %v2746_v52, 0.0 }
 0x619   :  { %2792 = vadd.xlane.f32.xlu0 %v2791_v58  ;;  %2789 = vadd.xlane.f32.xlu1 %v2788_v28  ;;  %v2542_v14 = vpop.f32.mrb[132].mxu0 }
 0x61a   :  { %v3638_v31 = vpop.f32.mrb[133].mxu0  ;;  %v2543_v21 = vadd.f32 %v2542_v14, %v5477_v45 }
 0x61b   :  { %v4018_v7 = vpop.eup %4017  ;;  %v2545_v47 = vpop.f32.mrb[134].mxu0 }
 0x61c   :  { %v2546_v48 = vadd.f32 %v2545_v47, %v5477_v45  ;;  %v3639_v25 = vpop.f32.mrb[135].mxu0  ;;  %v2704_v35 = vunpack.c.h.bf16 %v4018_v7  ;;  %v2703_v53 = vunpack.c.l.bf16 %v4018_v7 }
 0x61e   :  { %v2665_v27 = vpack.c.bf16 %v2546_v48, %v2543_v21  ;;  %v2749_v1 = vmul.f32 %v5487_v55, %v2704_v35  ;;  %v2748_v50 = vmul.f32 %v5487_v55, %v2703_v53 }
 0x620   :  { %4021 = vtanh.bf16 %v2665_v27  ;;  %v2797_v54 = vsel %vm1118_vm1, %v2749_v1, 0.0  ;;  %v2794_v51 = vsel %vm1118_vm1, %v2748_v50, 0.0 }
 0x621   :  { %2798 = vadd.xlane.f32.xlu0 %v2797_v54  ;;  %2795 = vadd.xlane.f32.xlu1 %v2794_v51  ;;  %v2550_v20 = vpop.f32.mrb[136].mxu0 }
 0x622   :  { %v3642_v39 = vpop.f32.mrb[137].mxu0  ;;  %v2551_v41 = vadd.f32 %v2550_v20, %v5477_v45 }
 0x623   :  { %v4020_v18 = vpop.eup %4019  ;;  %v2553_v44 = vpop.f32.mrb[138].mxu0 }
 0x624   :  { %v2554_v24 = vadd.f32 %v2553_v44, %v5477_v45  ;;  %v3643_v3 = vpop.f32.mrb[139].mxu0  ;;  %v2706_v11 = vunpack.c.h.bf16 %v4020_v18  ;;  %v2705_v42 = vunpack.c.l.bf16 %v4020_v18 }
 0x626   :  { %v2666_v8 = vpack.c.bf16 %v2554_v24, %v2551_v41  ;;  %v2751_v60 = vmul.f32 %v5487_v55, %v2706_v11  ;;  %v2750_v19 = vmul.f32 %v5487_v55, %v2705_v42 }
 0x628   :  { %4023 = vtanh.bf16 %v2666_v8  ;;  %v2803_v61 = vsel %vm1118_vm1, %v2751_v60, 0.0  ;;  %v2800_v36 = vsel %vm1118_vm1, %v2750_v19, 0.0 }
 0x629   :  { %2804 = vadd.xlane.f32.xlu0 %v2803_v61  ;;  %2801 = vadd.xlane.f32.xlu1 %v2800_v36  ;;  %v2558_v30 = vpop.f32.mrb[140].mxu0 }
 0x62a   :  { %v3646_v57 = vpop.f32.mrb[141].mxu0  ;;  %v2559_v16 = vadd.f32 %v2558_v30, %v5477_v45 }
 0x62b   :  { %v4022_v37 = vpop.eup %4021  ;;  %v2561_v63 = vpop.f32.mrb[142].mxu0 }
 0x62c   :  { %v2562_v4 = vadd.f32 %v2561_v63, %v5477_v45  ;;  %v3647_v5 = vpop.f32.mrb[143].mxu0  ;;  %v2708_v2 = vunpack.c.h.bf16 %v4022_v37  ;;  %v2707_v17 = vunpack.c.l.bf16 %v4022_v37 }
 0x62e   :  { %v2667_v6 = vpack.c.bf16 %v2562_v4, %v2559_v16  ;;  %v2753_v62 = vmul.f32 %v5487_v55, %v2708_v2  ;;  %v2752_v38 = vmul.f32 %v5487_v55, %v2707_v17 }
 0x630   :  { %4025 = vtanh.bf16 %v2667_v6  ;;  %v2809_v26 = vsel %vm1118_vm1, %v2753_v62, 0.0  ;;  %v2806_v15 = vsel %vm1118_vm1, %v2752_v38, 0.0 }
 0x631   :  { %2810 = vadd.xlane.f32.xlu0 %v2809_v26  ;;  %2807 = vadd.xlane.f32.xlu1 %v2806_v15  ;;  %v2566_v59 = vpop.f32.mrb[144].mxu0 }
 0x632   :  { %v3650_v34 = vpop.f32.mrb[145].mxu0  ;;  %v2567_v29 = vadd.f32 %v2566_v59, %v5477_v45 }
 0x633   :  { %v4024_v0 = vpop.eup %4023  ;;  %v2569_v49 = vpop.f32.mrb[146].mxu0 }
 0x634   :  { %v2570_v43 = vadd.f32 %v2569_v49, %v5477_v45  ;;  %v3651_v22 = vpop.f32.mrb[147].mxu0  ;;  %v2710_v9 = vunpack.c.h.bf16 %v4024_v0  ;;  %v2709_v46 = vunpack.c.l.bf16 %v4024_v0 }
 0x636   :  { %v2668_v12 = vpack.c.bf16 %v2570_v43, %v2567_v29  ;;  %v2755_v10 = vmul.f32 %v5487_v55, %v2710_v9  ;;  %v2754_v33 = vmul.f32 %v5487_v55, %v2709_v46 }
 0x638   :  { %4027 = vtanh.bf16 %v2668_v12  ;;  %v2815_v40 = vsel %vm1118_vm1, %v2755_v10, 0.0  ;;  %v2812_v23 = vsel %vm1118_vm1, %v2754_v33, 0.0 }
 0x639   :  { %2816 = vadd.xlane.f32.xlu0 %v2815_v40  ;;  %2813 = vadd.xlane.f32.xlu1 %v2812_v23  ;;  %v2574_v32 = vpop.f32.mrb[148].mxu0 }
 0x63a   :  { %v3654_v13 = vpop.f32.mrb[149].mxu0  ;;  %v2575_v58 = vadd.f32 %v2574_v32, %v5477_v45 }
 0x63b   :  { %v4026_v56 = vpop.eup %4025  ;;  %v2577_v52 = vpop.f32.mrb[150].mxu0 }
 0x63c   :  { %v2578_v28 = vadd.f32 %v2577_v52, %v5477_v45  ;;  %v3655_v14 = vpop.f32.mrb[151].mxu0  ;;  %v2712_v31 = vunpack.c.h.bf16 %v4026_v56  ;;  %v2711_v7 = vunpack.c.l.bf16 %v4026_v56 }
 0x63e   :  { %v2669_v47 = vpack.c.bf16 %v2578_v28, %v2575_v58  ;;  %v2757_v21 = vmul.f32 %v5487_v55, %v2712_v31  ;;  %v2756_v48 = vmul.f32 %v5487_v55, %v2711_v7 }
 0x640   :  { %4029 = vtanh.bf16 %v2669_v47  ;;  %v2821_v25 = vsel %vm1118_vm1, %v2757_v21, 0.0  ;;  %v2818_v35 = vsel %vm1118_vm1, %v2756_v48, 0.0 }
 0x641   :  { %2822 = vadd.xlane.f32.xlu0 %v2821_v25  ;;  %2819 = vadd.xlane.f32.xlu1 %v2818_v35  ;;  %v2582_v53 = vpop.f32.mrb[152].mxu0 }
 0x642   :  { %v3658_v27 = vpop.f32.mrb[153].mxu0  ;;  %v2583_v54 = vadd.f32 %v2582_v53, %v5477_v45 }
 0x643   :  { %v4028_v1 = vpop.eup %4027  ;;  %v2585_v50 = vpop.f32.mrb[154].mxu0 }
 0x644   :  { %v2586_v51 = vadd.f32 %v2585_v50, %v5477_v45  ;;  %v3659_v20 = vpop.f32.mrb[155].mxu0  ;;  %v2714_v39 = vunpack.c.h.bf16 %v4028_v1  ;;  %v2713_v18 = vunpack.c.l.bf16 %v4028_v1 }
 0x646   :  { %v2670_v44 = vpack.c.bf16 %v2586_v51, %v2583_v54  ;;  %v2759_v41 = vmul.f32 %v5487_v55, %v2714_v39  ;;  %v2758_v24 = vmul.f32 %v5487_v55, %v2713_v18 }
 0x648   :  { %4031 = vtanh.bf16 %v2670_v44  ;;  %v2827_v3 = vsel %vm1118_vm1, %v2759_v41, 0.0  ;;  %v2824_v11 = vsel %vm1118_vm1, %v2758_v24, 0.0 }
 0x649   :  { %2828 = vadd.xlane.f32.xlu0 %v2827_v3  ;;  %2825 = vadd.xlane.f32.xlu1 %v2824_v11  ;;  %v2590_v42 = vpop.f32.mrb[156].mxu0 }
 0x64a   :  { %v3662_v8 = vpop.f32.mrb[157].mxu0  ;;  %v2591_v61 = vadd.f32 %v2590_v42, %v5477_v45 }
 0x64b   :  { %v4030_v60 = vpop.eup %4029  ;;  %v2593_v19 = vpop.f32.mrb[158].mxu0 }
 0x64c   :  { %v2594_v36 = vadd.f32 %v2593_v19, %v5477_v45  ;;  %v3663_v30 = vpop.f32.mrb[159].mxu0  ;;  %v2716_v57 = vunpack.c.h.bf16 %v4030_v60  ;;  %v2715_v37 = vunpack.c.l.bf16 %v4030_v60 }
 0x64e   :  { %v2671_v63 = vpack.c.bf16 %v2594_v36, %v2591_v61  ;;  %v2761_v16 = vmul.f32 %v5487_v55, %v2716_v57  ;;  %v2760_v4 = vmul.f32 %v5487_v55, %v2715_v37 }
 0x650   :  { %4033 = vtanh.bf16 %v2671_v63  ;;  %v2833_v5 = vsel %vm1118_vm1, %v2761_v16, 0.0  ;;  %v2830_v2 = vsel %vm1118_vm1, %v2760_v4, 0.0 }
 0x651   :  { %2834 = vadd.xlane.f32.xlu0 %v2833_v5  ;;  %2831 = vadd.xlane.f32.xlu1 %v2830_v2  ;;  %v2598_v17 = vpop.f32.mrb[160].mxu0 }
 0x652   :  { %v3666_v6 = vpop.f32.mrb[161].mxu0  ;;  %v2599_v26 = vadd.f32 %v2598_v17, %v5477_v45 }
 0x653   :  { %v4032_v62 = vpop.eup %4031  ;;  %v2601_v38 = vpop.f32.mrb[162].mxu0 }
 0x654   :  { %v2602_v15 = vadd.f32 %v2601_v38, %v5477_v45  ;;  %v3667_v59 = vpop.f32.mrb[163].mxu0  ;;  %v2718_v34 = vunpack.c.h.bf16 %v4032_v62  ;;  %v2717_v0 = vunpack.c.l.bf16 %v4032_v62 }
 0x656   :  { %v2672_v49 = vpack.c.bf16 %v2602_v15, %v2599_v26  ;;  %v2763_v29 = vmul.f32 %v5487_v55, %v2718_v34  ;;  %v2762_v43 = vmul.f32 %v5487_v55, %v2717_v0 }
 0x658   :  { %4035 = vtanh.bf16 %v2672_v49  ;;  %v2839_v22 = vsel %vm1118_vm1, %v2763_v29, 0.0  ;;  %v2836_v9 = vsel %vm1118_vm1, %v2762_v43, 0.0 }
 0x659   :  { %2840 = vadd.xlane.f32.xlu0 %v2839_v22  ;;  %2837 = vadd.xlane.f32.xlu1 %v2836_v9  ;;  %v2606_v46 = vpop.f32.mrb[164].mxu0 }
 0x65a   :  { %v3670_v12 = vpop.f32.mrb[165].mxu0  ;;  %v2607_v40 = vadd.f32 %v2606_v46, %v5477_v45 }
 0x65b   :  { %v4034_v10 = vpop.eup %4033  ;;  %v2609_v33 = vpop.f32.mrb[166].mxu0  ;;  %v5580_v12 = vld [vmem:[#allocation2] ss:$0 sm:$0xff] }
 0x65c   :  { %v2610_v23 = vadd.f32 %v2609_v33, %v5477_v45  ;;  %v3671_v32 = vpop.f32.mrb[167].mxu0  ;;  %v2720_v13 = vunpack.c.h.bf16 %v4034_v10  ;;  %v2719_v56 = vunpack.c.l.bf16 %v4034_v10 }
 0x65e   :  { %v2673_v52 = vpack.c.bf16 %v2610_v23, %v2607_v40  ;;  %v2765_v58 = vmul.f32 %v5487_v55, %v2720_v13  ;;  %v2764_v28 = vmul.f32 %v5487_v55, %v2719_v56 }
 0x660   :  { %4037 = vtanh.bf16 %v2673_v52  ;;  %v2845_v14 = vsel %vm1118_vm1, %v2765_v58, 0.0  ;;  %v2842_v31 = vsel %vm1118_vm1, %v2764_v28, 0.0 }
 0x661   :  { %2846 = vadd.xlane.f32.xlu0 %v2845_v14  ;;  %2843 = vadd.xlane.f32.xlu1 %v2842_v31  ;;  %v2614_v7 = vpop.f32.mrb[168].mxu0 }
 0x662   :  { %v3674_v47 = vpop.f32.mrb[169].mxu0  ;;  %v2615_v25 = vadd.f32 %v2614_v7, %v5477_v45 }
 0x663   :  { %v4036_v21 = vpop.eup %4035  ;;  %v2617_v48 = vpop.f32.mrb[170].mxu0 }
 0x664   :  { %v2618_v35 = vadd.f32 %v2617_v48, %v5477_v45  ;;  %v3675_v53 = vpop.f32.mrb[171].mxu0  ;;  %v2722_v27 = vunpack.c.h.bf16 %v4036_v21  ;;  %v2721_v1 = vunpack.c.l.bf16 %v4036_v21 }
 0x666   :  { %v2674_v50 = vpack.c.bf16 %v2618_v35, %v2615_v25  ;;  %v2767_v54 = vmul.f32 %v5487_v55, %v2722_v27  ;;  %v2766_v51 = vmul.f32 %v5487_v55, %v2721_v1 }
 0x668   :  { %4039 = vtanh.bf16 %v2674_v50  ;;  %v2851_v20 = vsel %vm1118_vm1, %v2767_v54, 0.0  ;;  %v2848_v39 = vsel %vm1118_vm1, %v2766_v51, 0.0 }
 0x669   :  { %2852 = vadd.xlane.f32.xlu0 %v2851_v20  ;;  %2849 = vadd.xlane.f32.xlu1 %v2848_v39 }
 0x66b   :  { %v4038_v18 = vpop.eup %4037 }
 0x66c   :  { %v2724_v44 = vunpack.c.h.bf16 %v4038_v18  ;;  %v2723_v41 = vunpack.c.l.bf16 %v4038_v18 }
 0x66e   :  { %v2769_v24 = vmul.f32 %v5487_v55, %v2724_v44  ;;  %v2768_v3 = vmul.f32 %v5487_v55, %v2723_v41 }
 0x670   :  { %v2857_v11 = vsel %vm1118_vm1, %v2769_v24, 0.0  ;;  %v2854_v42 = vsel %vm1118_vm1, %v2768_v3, 0.0 }
 0x671   :  { %2858 = vadd.xlane.f32.xlu0 %v2857_v11  ;;  %2855 = vadd.xlane.f32.xlu1 %v2854_v42 }
 0x673   :  { %v4040_v8 = vpop.eup %4039  ;;  %v2622_v60 = vpop.f32.mrb[172].mxu0 }
 0x674   :  { %v3678_v19 = vpop.f32.mrb[173].mxu0  ;;  %v2726_v61 = vunpack.c.h.bf16 %v4040_v8  ;;  %v2725_v36 = vunpack.c.l.bf16 %v4040_v8  ;;  %v2623_v57 = vadd.f32 %v2622_v60, %v5477_v45 }
 0x675   :  { %v2625_v30 = vpop.f32.mrb[174].mxu0 }
 0x676   :  { %v2626_v37 = vadd.f32 %v2625_v30, %v5477_v45  ;;  %v3679_v63 = vpop.f32.mrb[175].mxu0  ;;  %v2771_v16 = vmul.f32 %v5487_v55, %v2726_v61  ;;  %v2770_v4 = vmul.f32 %v5487_v55, %v2725_v36 }
 0x678   :  { %v2675_v5 = vpack.c.bf16 %v2626_v37, %v2623_v57  ;;  %v2863_v2 = vsel %vm1118_vm1, %v2771_v16, 0.0  ;;  %v2860_v17 = vsel %vm1118_vm1, %v2770_v4, 0.0 }
 0x679   :  { %2864 = vadd.xlane.f32.xlu0 %v2863_v2  ;;  %2861 = vadd.xlane.f32.xlu1 %v2860_v17 }
 0x67a   :  { %4041 = vtanh.bf16 %v2675_v5 }
 0x685   :  { %v4042_v6 = vpop.eup %4041 }
 0x686   :  { %v2728_v62 = vunpack.c.h.bf16 %v4042_v6  ;;  %v2727_v38 = vunpack.c.l.bf16 %v4042_v6 }
 0x688   :  { %v2773_v26 = vmul.f32 %v5487_v55, %v2728_v62  ;;  %v2772_v15 = vmul.f32 %v5487_v55, %v2727_v38 }
 0x68a   :  { %v2869_v59 = vsel %vm1118_vm1, %v2773_v26, 0.0  ;;  %v2866_v34 = vsel %vm1118_vm1, %v2772_v15, 0.0 }
 0x68b   :  { %2870 = vadd.xlane.f32.xlu0 %v2869_v59  ;;  %2867 = vadd.xlane.f32.xlu1 %v2866_v34  ;;  %v2630_v0 = vpop.f32.mrb[176].mxu0 }
 0x68c   :  { %v3682_v49 = vpop.f32.mrb[177].mxu0  ;;  %v2631_v43 = vadd.f32 %v2630_v0, %v5477_v45 }
 0x68d   :  { %v2633_v29 = vpop.f32.mrb[178].mxu0 }
 0x68e   :  { %v2634_v22 = vadd.f32 %v2633_v29, %v5477_v45  ;;  %v3683_v9 = vpop.f32.mrb[179].mxu0 }
 0x690   :  { %v2676_v46 = vpack.c.bf16 %v2634_v22, %v2631_v43 }
 0x692   :  { %4043 = vtanh.bf16 %v2676_v46 }
 0x69d   :  { %v4044_v10 = vpop.eup %4043 }
 0x69e   :  { %v2787_v33 = vpop.xlane.xlu0 %2786  ;;  %v2784_v40 = vpop.xlane.xlu1 %2783  ;;  %v2730_v23 = vunpack.c.h.bf16 %v4044_v10  ;;  %v2729_v32 = vunpack.c.l.bf16 %v4044_v10 }
 0x69f   :  { %v2904_v13 = vadd.f32 %v5580_v12, %v2787_v33  ;;  %v2903_v56 = vadd.f32 %v5580_v12, %v2784_v40 }
 0x6a0   :  { %v2775_v52 = vmul.f32 %v5487_v55, %v2730_v23  ;;  %v2774_v58 = vmul.f32 %v5487_v55, %v2729_v32 }
 0x6a1   :  { %2943 = vst.msk [vmem:[%s5800_s6 + $0x8] sm:$0xff] %vm2941_vm2, %v2904_v13  ;;  %2942 = vst.msk [vmem:[%s5800_s6] sm:$0xff] %vm2941_vm2, %v2903_v56 }
 0x6a2   :  { %v2875_v28 = vsel %vm1118_vm1, %v2775_v52, 0.0  ;;  %v2872_v14 = vsel %vm1118_vm1, %v2774_v58, 0.0 }
 0x6a3   :  { %2876 = vadd.xlane.f32.xlu0 %v2875_v28  ;;  %2873 = vadd.xlane.f32.xlu1 %v2872_v14 }
 0x6a6   :  { %v2793_v31 = vpop.xlane.xlu0 %2792  ;;  %v2790_v7 = vpop.xlane.xlu1 %2789 }
 0x6a7   :  { %v2906_v47 = vadd.f32 %v5580_v12, %v2793_v31  ;;  %v2905_v21 = vadd.f32 %v5580_v12, %v2790_v7  ;;  %v2638_v48 = vpop.f32.mrb[180].mxu0 }
 0x6a8   :  { %v3686_v25 = vpop.f32.mrb[181].mxu0  ;;  %v2639_v53 = vadd.f32 %v2638_v48, %v5477_v45 }
 0x6a9   :  { %2945 = vst.msk [vmem:[%s5800_s6 + $0x18] sm:$0xff] %vm2941_vm2, %v2906_v47  ;;  %2944 = vst.msk [vmem:[%s5800_s6 + $0x10] sm:$0xff] %vm2941_vm2, %v2905_v21  ;;  %v2641_v35 = vpop.f32.mrb[182].mxu0 }
 0x6aa   :  { %v2642_v27 = vadd.f32 %v2641_v35, %v5477_v45  ;;  %v3687_v1 = vpop.f32.mrb[183].mxu0 }
 0x6ac   :  { %v2677_v50 = vpack.c.bf16 %v2642_v27, %v2639_v53 }
 0x6ae   :  { %4045 = vtanh.bf16 %v2677_v50  ;;  %v2799_v54 = vpop.xlane.xlu0 %2798  ;;  %v2796_v51 = vpop.xlane.xlu1 %2795 }
 0x6af   :  { %v2908_v20 = vadd.f32 %v5580_v12, %v2799_v54  ;;  %v2907_v39 = vadd.f32 %v5580_v12, %v2796_v51 }
 0x6b1   :  { %2947 = vst.msk [vmem:[%s5800_s6 + $0x28] sm:$0xff] %vm2941_vm2, %v2908_v20  ;;  %2946 = vst.msk [vmem:[%s5800_s6 + $0x20] sm:$0xff] %vm2941_vm2, %v2907_v39 }
 0x6b6   :  { %v2805_v18 = vpop.xlane.xlu0 %2804  ;;  %v2802_v44 = vpop.xlane.xlu1 %2801 }
 0x6b7   :  { %v2910_v41 = vadd.f32 %v5580_v12, %v2805_v18  ;;  %v2909_v24 = vadd.f32 %v5580_v12, %v2802_v44 }
 0x6b9   :  { %v4046_v3 = vpop.eup %4045  ;;  %2949 = vst.msk [vmem:[%s5800_s6 + $0x38] sm:$0xff] %vm2941_vm2, %v2910_v41  ;;  %2948 = vst.msk [vmem:[%s5800_s6 + $0x30] sm:$0xff] %vm2941_vm2, %v2909_v24 }
 0x6ba   :  { %v2732_v11 = vunpack.c.h.bf16 %v4046_v3  ;;  %v2731_v42 = vunpack.c.l.bf16 %v4046_v3 }
 0x6bc   :  { %v2777_v8 = vmul.f32 %v5487_v55, %v2732_v11  ;;  %v2776_v60 = vmul.f32 %v5487_v55, %v2731_v42 }
 0x6be   :  { %v2811_v19 = vpop.xlane.xlu0 %2810  ;;  %v2808_v61 = vpop.xlane.xlu1 %2807  ;;  %v2881_v36 = vsel %vm1118_vm1, %v2777_v8, 0.0  ;;  %v2878_v30 = vsel %vm1118_vm1, %v2776_v60, 0.0 }
 0x6bf   :  { %v2912_v57 = vadd.f32 %v5580_v12, %v2811_v19  ;;  %v2911_v37 = vadd.f32 %v5580_v12, %v2808_v61  ;;  %2882 = vadd.xlane.f32.xlu0 %v2881_v36  ;;  %2879 = vadd.xlane.f32.xlu1 %v2878_v30  ;;  %v2646_v63 = vpop.f32.mrb[184].mxu0 }
 0x6c0   :  { %v3690_v16 = vpop.f32.mrb[185].mxu0  ;;  %v2647_v5 = vadd.f32 %v2646_v63, %v5477_v45 }
 0x6c1   :  { %2951 = vst.msk [vmem:[%s5800_s6 + $0x48] sm:$0xff] %vm2941_vm2, %v2912_v57  ;;  %2950 = vst.msk [vmem:[%s5800_s6 + $0x40] sm:$0xff] %vm2941_vm2, %v2911_v37  ;;  %v2649_v4 = vpop.f32.mrb[186].mxu0 }
 0x6c2   :  { %v2650_v2 = vadd.f32 %v2649_v4, %v5477_v45  ;;  %v3691_v17 = vpop.f32.mrb[187].mxu0 }
 0x6c4   :  { %v2678_v6 = vpack.c.bf16 %v2650_v2, %v2647_v5 }
 0x6c6   :  { %4047 = vtanh.bf16 %v2678_v6  ;;  %v2817_v62 = vpop.xlane.xlu0 %2816  ;;  %v2814_v38 = vpop.xlane.xlu1 %2813 }
 0x6c7   :  { %v2914_v26 = vadd.f32 %v5580_v12, %v2817_v62  ;;  %v2913_v15 = vadd.f32 %v5580_v12, %v2814_v38 }
 0x6c9   :  { %2953 = vst.msk [vmem:[%s5800_s6 + $0x58] sm:$0xff] %vm2941_vm2, %v2914_v26  ;;  %2952 = vst.msk [vmem:[%s5800_s6 + $0x50] sm:$0xff] %vm2941_vm2, %v2913_v15 }
 0x6ce   :  { %v2823_v59 = vpop.xlane.xlu0 %2822  ;;  %v2820_v34 = vpop.xlane.xlu1 %2819 }
 0x6cf   :  { %v2916_v0 = vadd.f32 %v5580_v12, %v2823_v59  ;;  %v2915_v49 = vadd.f32 %v5580_v12, %v2820_v34 }
 0x6d1   :  { %v4048_v29 = vpop.eup %4047  ;;  %2955 = vst.msk [vmem:[%s5800_s6 + $0x68] sm:$0xff] %vm2941_vm2, %v2916_v0  ;;  %2954 = vst.msk [vmem:[%s5800_s6 + $0x60] sm:$0xff] %vm2941_vm2, %v2915_v49 }
 0x6d2   :  { %v2734_v43 = vunpack.c.h.bf16 %v4048_v29  ;;  %v2733_v22 = vunpack.c.l.bf16 %v4048_v29 }
 0x6d4   :  { %v2779_v9 = vmul.f32 %v5487_v55, %v2734_v43  ;;  %v2778_v46 = vmul.f32 %v5487_v55, %v2733_v22 }
 0x6d6   :  { %v2829_v10 = vpop.xlane.xlu0 %2828  ;;  %v2826_v33 = vpop.xlane.xlu1 %2825  ;;  %v2887_v40 = vsel %vm1118_vm1, %v2779_v9, 0.0  ;;  %v2884_v23 = vsel %vm1118_vm1, %v2778_v46, 0.0 }
 0x6d7   :  { %v2918_v32 = vadd.f32 %v5580_v12, %v2829_v10  ;;  %v2917_v13 = vadd.f32 %v5580_v12, %v2826_v33  ;;  %2888 = vadd.xlane.f32.xlu0 %v2887_v40  ;;  %2885 = vadd.xlane.f32.xlu1 %v2884_v23  ;;  %v2654_v56 = vpop.f32.mrb[188].mxu0 }
 0x6d8   :  { %v3694_v52 = vpop.f32.mrb[189].mxu0  ;;  %v2655_v28 = vadd.f32 %v2654_v56, %v5477_v45 }
 0x6d9   :  { %2957 = vst.msk [vmem:[%s5800_s6 + $0x78] sm:$0xff] %vm2941_vm2, %v2918_v32  ;;  %2956 = vst.msk [vmem:[%s5800_s6 + $0x70] sm:$0xff] %vm2941_vm2, %v2917_v13  ;;  %v2657_v58 = vpop.f32.mrb[190].mxu0 }
 0x6da   :  { %v2658_v14 = vadd.f32 %v2657_v58, %v5477_v45  ;;  %v3695_v31 = vpop.f32.mrb[191].mxu0 }
 0x6dc   :  { %v2679_v7 = vpack.c.bf16 %v2658_v14, %v2655_v28 }
 0x6de   :  { %4049 = vtanh.bf16 %v2679_v7  ;;  %v2835_v47 = vpop.xlane.xlu0 %2834  ;;  %v2832_v21 = vpop.xlane.xlu1 %2831 }
 0x6df   :  { %v2920_v48 = vadd.f32 %v5580_v12, %v2835_v47  ;;  %v2919_v25 = vadd.f32 %v5580_v12, %v2832_v21 }
 0x6e1   :  { %2959 = vst.msk [vmem:[%s5800_s6 + $0x88] sm:$0xff] %vm2941_vm2, %v2920_v48  ;;  %2958 = vst.msk [vmem:[%s5800_s6 + $0x80] sm:$0xff] %vm2941_vm2, %v2919_v25 }
 0x6e6   :  { %v2841_v45 = vpop.xlane.xlu0 %2840  ;;  %v2838_v35 = vpop.xlane.xlu1 %2837 }
 0x6e7   :  { %v2922_v53 = vadd.f32 %v5580_v12, %v2841_v45  ;;  %v2921_v27 = vadd.f32 %v5580_v12, %v2838_v35 }
 0x6e9   :  { %v4050_v1 = vpop.eup %4049  ;;  %2961 = vst.msk [vmem:[%s5800_s6 + $0x98] sm:$0xff] %vm2941_vm2, %v2922_v53  ;;  %2960 = vst.msk [vmem:[%s5800_s6 + $0x90] sm:$0xff] %vm2941_vm2, %v2921_v27 }
 0x6ea   :  { %v2736_v50 = vunpack.c.h.bf16 %v4050_v1  ;;  %v2735_v54 = vunpack.c.l.bf16 %v4050_v1 }
 0x6ec   :  { %v2781_v51 = vmul.f32 %v5487_v55, %v2736_v50  ;;  %v2780_v20 = vmul.f32 %v5487_v55, %v2735_v54 }
 0x6ee   :  { %v2847_v39 = vpop.xlane.xlu0 %2846  ;;  %v2844_v18 = vpop.xlane.xlu1 %2843  ;;  %v2893_v44 = vsel %vm1118_vm1, %v2781_v51, 0.0  ;;  %v2890_v41 = vsel %vm1118_vm1, %v2780_v20, 0.0 }
 0x6ef   :  { %v2924_v24 = vadd.f32 %v5580_v12, %v2847_v39  ;;  %v2923_v3 = vadd.f32 %v5580_v12, %v2844_v18  ;;  %2894 = vadd.xlane.f32.xlu0 %v2893_v44  ;;  %2891 = vadd.xlane.f32.xlu1 %v2890_v41 }
 0x6f1   :  { %2963 = vst.msk [vmem:[%s5800_s6 + $0xa8] sm:$0xff] %vm2941_vm2, %v2924_v24  ;;  %2962 = vst.msk [vmem:[%s5800_s6 + $0xa0] sm:$0xff] %vm2941_vm2, %v2923_v3 }
 0x6f6   :  { %v2853_v55 = vpop.xlane.xlu0 %2852  ;;  %v2850_v11 = vpop.xlane.xlu1 %2849 }
 0x6f7   :  { %v2926_v42 = vadd.f32 %v5580_v12, %v2853_v55  ;;  %v2925_v8 = vadd.f32 %v5580_v12, %v2850_v11 }
 0x6f9   :  { %2965 = vst.msk [vmem:[%s5800_s6 + $0xb8] sm:$0xff] %vm2941_vm2, %v2926_v42  ;;  %2964 = vst.msk [vmem:[%s5800_s6 + $0xb0] sm:$0xff] %vm2941_vm2, %v2925_v8 }
 0x6fe   :  { %v2859_v60 = vpop.xlane.xlu0 %2858  ;;  %v2856_v19 = vpop.xlane.xlu1 %2855 }
 0x6ff   :  { %v2928_v61 = vadd.f32 %v5580_v12, %v2859_v60  ;;  %v2927_v36 = vadd.f32 %v5580_v12, %v2856_v19 }
 0x701   :  { %2967 = vst.msk [vmem:[%s5800_s6 + $0xc8] sm:$0xff] %vm2941_vm2, %v2928_v61  ;;  %2966 = vst.msk [vmem:[%s5800_s6 + $0xc0] sm:$0xff] %vm2941_vm2, %v2927_v36 }
 0x706   :  { %v2865_v30 = vpop.xlane.xlu0 %2864  ;;  %v2862_v57 = vpop.xlane.xlu1 %2861 }
 0x707   :  { %v2930_v37 = vadd.f32 %v5580_v12, %v2865_v30  ;;  %v2929_v63 = vadd.f32 %v5580_v12, %v2862_v57 }
 0x709   :  { %2969 = vst.msk [vmem:[%s5800_s6 + $0xd8] sm:$0xff] %vm2941_vm2, %v2930_v37  ;;  %2968 = vst.msk [vmem:[%s5800_s6 + $0xd0] sm:$0xff] %vm2941_vm2, %v2929_v63 }
 0x718   :  { %v2871_v16 = vpop.xlane.xlu0 %2870  ;;  %v2868_v4 = vpop.xlane.xlu1 %2867 }
 0x719   :  { %v2932_v5 = vadd.f32 %v5580_v12, %v2871_v16  ;;  %v2931_v2 = vadd.f32 %v5580_v12, %v2868_v4 }
 0x71b   :  { %2971 = vst.msk [vmem:[%s5800_s6 + $0xe8] sm:$0xff] %vm2941_vm2, %v2932_v5  ;;  %2970 = vst.msk [vmem:[%s5800_s6 + $0xe0] sm:$0xff] %vm2941_vm2, %v2931_v2 }
 0x730   :  { %v2877_v17 = vpop.xlane.xlu0 %2876  ;;  %v2874_v6 = vpop.xlane.xlu1 %2873 }
 0x731   :  { %v2934_v62 = vadd.f32 %v5580_v12, %v2877_v17  ;;  %v2933_v38 = vadd.f32 %v5580_v12, %v2874_v6 }
 0x733   :  { %2973 = vst.msk [vmem:[%s5800_s6 + $0xf8] sm:$0xff] %vm2941_vm2, %v2934_v62  ;;  %2972 = vst.msk [vmem:[%s5800_s6 + $0xf0] sm:$0xff] %vm2941_vm2, %v2933_v38 }
 0x74c   :  { %v2883_v26 = vpop.xlane.xlu0 %2882  ;;  %v2880_v15 = vpop.xlane.xlu1 %2879 }
 0x74d   :  { %v2936_v59 = vadd.f32 %v5580_v12, %v2883_v26  ;;  %v2935_v34 = vadd.f32 %v5580_v12, %v2880_v15 }
 0x74f   :  { %2975 = vst.msk [vmem:[%s5800_s6 + $0x108] sm:$0xff] %vm2941_vm2, %v2936_v59  ;;  %2974 = vst.msk [vmem:[%s5800_s6 + $0x100] sm:$0xff] %vm2941_vm2, %v2935_v34 }
 0x764   :  { %v2889_v0 = vpop.xlane.xlu0 %2888  ;;  %v2886_v49 = vpop.xlane.xlu1 %2885 }
 0x765   :  { %v2938_v29 = vadd.f32 %v5580_v12, %v2889_v0  ;;  %v2937_v43 = vadd.f32 %v5580_v12, %v2886_v49 }
 0x767   :  { %2977 = vst.msk [vmem:[%s5800_s6 + $0x118] sm:$0xff] %vm2941_vm2, %v2938_v29  ;;  %2976 = vst.msk [vmem:[%s5800_s6 + $0x110] sm:$0xff] %vm2941_vm2, %v2937_v43 }
 0x77c   :  { %v2895_v22 = vpop.xlane.xlu0 %2894  ;;  %v2892_v9 = vpop.xlane.xlu1 %2891 }
 0x77d   :  { %v2940_v46 = vadd.f32 %v5580_v12, %v2895_v22  ;;  %v2939_v10 = vadd.f32 %v5580_v12, %v2892_v9 }
 0x77f   :  { %2979 = vst.msk [vmem:[%s5800_s6 + $0x128] sm:$0xff] %vm2941_vm2, %v2940_v46  ;;  %2978 = vst.msk [vmem:[%s5800_s6 + $0x120] sm:$0xff] %vm2941_vm2, %v2939_v10 }

</bundles_post_ra>
